<compile_context>
chip_gen: v6e
topology: v6e:2x2x1
jax: 0.10.0
libtpu: 0.0.40
codegen_flags: <defaults>
</compile_context>

<pallas_src>
import math
import numpy as np
import jax
import jax.numpy as jnp
from jax import lax
from jax.experimental import pallas as pl
from jax.experimental.pallas import tpu as pltpu

# ---------------- config (small, consistent with the module, scaled down) ----
SRC_VOCAB = 32
TRG_VOCAB = 32
SRC_PAD = 0
TRG_PAD = 0          # unused: reference trg mask is causal-only (and masks don't affect the output)
EMBED = 32
HEADS = 4
HEAD_DIM = EMBED // HEADS
NUM_LAYERS = 2
FWD_EXP = 4
HIDDEN = FWD_EXP * EMBED
MAX_LEN = 16
BATCH = 2
SRC_LEN = 8
TRG_LEN = 8
VOCAB_PAD = 128      # lane-dense vocab projection; sliced back to TRG_VOCAB in the wrapper


def _tensorcores_per_chip():
    """2 on dual-TensorCore v7x (keep batch grid parallel), else 1 (collapse grid)."""
    try:
        kind = jax.devices()[0].device_kind.lower()
    except Exception:
        return 1
    return 2 if ("v7" in kind or "tpu7" in kind) else 1


TC_PER_CHIP = _tensorcores_per_chip()
GRID_STEPS = TC_PER_CHIP if (TC_PER_CHIP > 1 and BATCH % TC_PER_CHIP == 0) else 1
BPG = BATCH // GRID_STEPS            # batch elements handled per grid step


# ---------------- in-kernel building blocks ----------------
def _layernorm(x, gamma, beta):
    mean = jnp.mean(x, axis=-1, keepdims=True)
    xc = x - mean
    var = jnp.mean(xc * xc, axis=-1, keepdims=True)
    return xc * lax.rsqrt(var + 1e-5) * gamma + beta


def _attn_from_colsum(v_colsum, wv_blk, wo_t, bo):
    """Reference SelfAttention output (exact): softmax row-sums are identically 1,
    so out_row = colsum(V) @ Wv_blk @ Wo_t + bo, broadcast over all queries."""
    vh = jnp.dot(v_colsum.astype(jnp.bfloat16), wv_blk,
                 preferred_element_type=jnp.float32)                    # (1, E)
    return jnp.dot(vh.astype(jnp.bfloat16), wo_t,
                   preferred_element_type=jnp.float32) + bo             # (1, E)


def _ffn(x, w1, b1, w2, b2):
    h = jnp.dot(x.astype(jnp.bfloat16), w1, preferred_element_type=jnp.float32) + b1
    h = jnp.maximum(h, 0.0)
    return jnp.dot(h.astype(jnp.bfloat16), w2, preferred_element_type=jnp.float32) + b2


def _transformer_block(v_colsum, q, wv, wo, bo, g1, b1n, g2, b2n, w1, b1, w2, b2):
    attn = _attn_from_colsum(v_colsum, wv, wo, bo)      # (1,E) row, broadcasts over q
    x = _layernorm(attn + q, g1, b1n)                   # dropout(p=0) == identity
    ff = _ffn(x, w1, b1, w2, b2)
    return _layernorm(ff + x, g2, b2n)


# ---------------- fused encoder+decoder kernel ----------------
def make_transformer_kernel(bpg):
    def kernel(srcx_ref, trgx_ref, mats_ref, vecs_ref, w1s_ref, b1s_ref,
               w2s_ref, fcw_ref, fcb_ref, out_ref):
        fcw = fcw_ref[...]                     # (E, VOCAB_PAD) bf16 (hoisted)
        fcb = fcb_ref[...]                     # (1, VOCAB_PAD) f32
        for b in range(bpg):                   # static: 1 (v7x) or BATCH (v5e/v6e)
            # ---------------- encoder stack (resident in VMEM/vregs) --------
            x = srcx_ref[b]                    # (Ls, E) f32
            for l in range(NUM_LAYERS):        # static unrolled
                mats_l = mats_ref[l]           # (6, E, E) bf16
                vec = vecs_ref[l]              # (15, E) f32
                w1_l = w1s_ref[l]              # (2, E, H) bf16
                b1_l = b1s_ref[l]              # (2, H)    f32
                w2_l = w2s_ref[l]              # (2, H, E) bf16
                x = _transformer_block(
                    jnp.sum(x, axis=0, keepdims=True), x,
                    mats_l[0], mats_l[1],
                    vec[0:1], vec[1:2], vec[2:3], vec[3:4], vec[4:5],
                    w1_l[0], b1_l[0:1], w2_l[0], vec[5:6])
            enc_colsum = jnp.sum(x, axis=0, keepdims=True)   # hoisted: reused by every dec layer
            # ---------------- decoder stack + vocab head --------------------
            y = trgx_ref[b]                    # (Lt, E) f32
            for l in range(NUM_LAYERS):
                mats_l = mats_ref[l]
                vec = vecs_ref[l]
                w1_l = w1s_ref[l]
                b1_l = b1s_ref[l]
                w2_l = w2s_ref[l]
                # masked causal self-attention (mask provably cancels)
                sa = _attn_from_colsum(jnp.sum(y, axis=0, keepdims=True),
                                       mats_l[2], mats_l[3], vec[6:7])
                query = _layernorm(sa + y, vec[7:8], vec[8:9])
                # cross-attention block: values/keys = encoder output
                y = _transformer_block(
                    enc_colsum, query,
                    mats_l[4], mats_l[5],
                    vec[9:10], vec[10:11], vec[11:12], vec[12:13], vec[13:14],
                    w1_l[1], b1_l[1:2], w2_l[1], vec[14:15])
            # lane-dense (128-wide) vocab projection -> unmasked stores
            out_ref[b] = (jnp.dot(y.astype(jnp.bfloat16), fcw,
                                  preferred_element_type=jnp.float32) + fcb)
    return kernel


# ---------------- parameter init (deterministic, synthetic, packed) ----------
def build_pe(max_length, embed_size):
    pe = np.zeros((max_length, embed_size), np.float32)
    for pos in range(max_length):
        for i in range(0, embed_size, 2):
            angle = pos / (10000.0 ** (2 * i / embed_size))
            pe[pos, i] = math.sin(angle)
            pe[pos, i + 1] = math.cos(angle)
    return jnp.asarray(pe)


def init_params(seed=0):
    key = jax.random.PRNGKey(seed)

    def nxt():
        nonlocal key
        key, sub = jax.random.split(key)
        return sub

    def rnd(shape):
        return jax.random.normal(nxt(), shape, jnp.float32) * 0.02

    eye = jnp.eye(HEADS, dtype=jnp.float32)

    def attn_weights():
        # same (hd,hd) Linear applied to every head -> block-diagonal (E,E)
        wv_blk = jnp.kron(eye, rnd((HEAD_DIM, HEAD_DIM)))
        wo_t = rnd((EMBED, EMBED))
        bo = jnp.zeros((EMBED,), jnp.float32)
        return wv_blk, wo_t, bo

    ones_e = jnp.ones((EMBED,), jnp.float32)
    zeros_e = jnp.zeros((EMBED,), jnp.float32)

    mats, vecs, w1s, b1s, w2s = [], [], [], [], []
    for _ in range(NUM_LAYERS):
        # encoder TransformerBlock
        e_wv, e_wo, e_bo = attn_weights()
        e_w1, e_b1 = rnd((EMBED, HIDDEN)), jnp.zeros((HIDDEN,), jnp.float32)
        e_w2, e_b2 = rnd((HIDDEN, EMBED)), zeros_e
        # decoder block: self-attn + norm + cross TransformerBlock
        s_wv, s_wo, s_bo = attn_weights()
        c_wv, c_wo, c_bo = attn_weights()
        d_w1, d_b1 = rnd((EMBED, HIDDEN)), jnp.zeros((HIDDEN,), jnp.float32)
        d_w2, d_b2 = rnd((HIDDEN, EMBED)), zeros_e

        mats.append(jnp.stack([e_wv, e_wo, s_wv, s_wo, c_wv, c_wo]))         # (6,E,E)
        vecs.append(jnp.stack([e_bo, ones_e, zeros_e, ones_e, zeros_e, e_b2,  # enc: bo,g1,b1,g2,b2,ffn_b2
                               s_bo, ones_e, zeros_e,                         # dec self: bo, norm g/b
                               c_bo, ones_e, zeros_e, ones_e, zeros_e, d_b2]))  # dec cross
        w1s.append(jnp.stack([e_w1, d_w1]))                                   # (2,E,H)
        b1s.append(jnp.stack([e_b1, d_b1]))                                   # (2,H)
        w2s.append(jnp.stack([e_w2, d_w2]))                                   # (2,H,E)

    fcw = rnd((EMBED, TRG_VOCAB))
    fcw_pad = jnp.zeros((EMBED, VOCAB_PAD), jnp.float32).at[:, :TRG_VOCAB].set(fcw)
    fcb_pad = jnp.zeros((1, VOCAB_PAD), jnp.float32)

    return {
        "enc_word_emb": rnd((SRC_VOCAB, EMBED)),
        "enc_pos_emb": rnd((MAX_LEN, EMBED)),
        "dec_word_emb": rnd((TRG_VOCAB, EMBED)),
        "dec_pos_emb": rnd((MAX_LEN, EMBED)),
        "pe": build_pe(MAX_LEN, EMBED),
        "mats": jnp.stack(mats).astype(jnp.bfloat16),   # (L, 6, E, E)
        "vecs": jnp.stack(vecs),                        # (L, 15, E) f32
        "w1s": jnp.stack(w1s).astype(jnp.bfloat16),     # (L, 2, E, H)
        "b1s": jnp.stack(b1s),                          # (L, 2, H)  f32
        "w2s": jnp.stack(w2s).astype(jnp.bfloat16),     # (L, 2, H, E)
        "fcw_pad": fcw_pad.astype(jnp.bfloat16),        # (E, 128)
        "fcb_pad": fcb_pad,                             # (1, 128)  f32
    }


# ---------------- model forward (embedding glue in JAX, compute in Pallas) ----
def _embed(word_emb, pos_emb, pe, tokens):
    # nn.Embedding gathers stay in XLA (data-dependent gather; no cheap Pallas win here)
    N, L = tokens.shape
    positions = jnp.broadcast_to(jnp.arange(L, dtype=jnp.int32)[None, :], (N, L))
    pos = jnp.take(pos_emb, positions, axis=0)        # position_mapper
    emb = jnp.take(word_emb, tokens, axis=0)          # word_embedding
    # PositionalEncoder applied to the learned positional embedding (as in ref)
    return emb + pos * math.sqrt(float(EMBED)) + pe[None, :L, :]


def transformer_forward(params, src, trg):
    N, _ = src.shape
    _, Lt = trg.shape
    srcx = _embed(params["enc_word_emb"], params["enc_pos_emb"], params["pe"], src)
    trgx = _embed(params["dec_word_emb"], params["dec_pos_emb"], params["pe"], trg)

    args = (srcx, trgx, params["mats"], params["vecs"], params["w1s"],
            params["b1s"], params["w2s"], params["fcw_pad"], params["fcb_pad"])

    def batched(shape):
        return pl.BlockSpec((BPG,) + tuple(shape[1:]), lambda g: (g, 0, 0))

    def rep(arr):
        nd = arr.ndim
        return pl.BlockSpec(tuple(arr.shape), lambda g, _nd=nd: (0,) * _nd)

    out = pl.pallas_call(
        make_transformer_kernel(BPG),
        out_shape=jax.ShapeDtypeStruct((N, Lt, VOCAB_PAD), jnp.float32),
        grid=(GRID_STEPS,),
        in_specs=[batched(srcx.shape), batched(trgx.shape)] + [rep(a) for a in args[2:]],
        out_specs=pl.BlockSpec((BPG, Lt, VOCAB_PAD), lambda g: (g, 0, 0)),
        compiler_params=pltpu.CompilerParams(dimension_semantics=("parallel",)),
    )(*args)
    return out[..., :TRG_VOCAB]          # un-pad the lane-dense vocab projection


# ---------------- pure-JAX f32 reference (full softmax path, same weights) ----
def reference_forward(params, src, trg):
    Hn, hd = HEADS, HEAD_DIM
    mats = params["mats"].astype(jnp.float32)
    vecs = params["vecs"]
    w1s = params["w1s"].astype(jnp.float32)
    b1s = params["b1s"]
    w2s = params["w2s"].astype(jnp.float32)
    fcw = params["fcw_pad"].astype(jnp.float32)[:, :TRG_VOCAB]
    fcb = params["fcb_pad"][:, :TRG_VOCAB]

    def layernorm(x, g, b):
        mu = jnp.mean(x, -1, keepdims=True)
        var = jnp.mean((x - mu) ** 2, -1, keepdims=True)
        return (x - mu) / jnp.sqrt(var + 1e-5) * g + b

    def attention(values, keys, query, mask, wv_blk, wo_t, bo):
        n, vlen = values.shape[0], values.shape[1]
        qlen, klen = query.shape[1], keys.shape[1]
        vh = (values @ wv_blk).reshape(n, vlen, Hn, hd)
        qh = query.reshape(n, qlen, Hn, hd)      # q/k head projections provably cancel
        kh = keys.reshape(n, klen, Hn, hd)
        energy = jnp.einsum("nqhd,nkhd->nhqk", qh, kh)
        energy = jnp.where(mask == 0, -1e20, energy)
        att = jax.nn.softmax(energy / math.sqrt(EMBED), axis=3)
        out = jnp.einsum("nhqk,nvhd->nqhd", att, vh).reshape(n, qlen, EMBED)
        return out @ wo_t + bo

    def transformer_block(value, key, query, mask, l, m_off, v_off, s):
        a = attention(value, key, query, mask, mats[l, m_off], mats[l, m_off + 1],
                      vecs[l, v_off])
        x = layernorm(a + query, vecs[l, v_off + 1], vecs[l, v_off + 2])
        ff = jnp.maximum(x @ w1s[l, s] + b1s[l, s], 0.0) @ w2s[l, s] + vecs[l, v_off + 5]
        return layernorm(ff + x, vecs[l, v_off + 3], vecs[l, v_off + 4])

    src_mask = (src != SRC_PAD)[:, None, None, :]                     # (N,1,1,Ls)
    Lt = trg.shape[1]
    trg_mask = jnp.tril(jnp.ones((Lt, Lt), jnp.float32))[None, None]  # (1,1,Lt,Lt)

    x = _embed(params["enc_word_emb"], params["enc_pos_emb"], params["pe"], src)
    for l in range(NUM_LAYERS):
        x = transformer_block(x, x, x, src_mask, l, 0, 0, 0)
    y = _embed(params["dec_word_emb"], params["dec_pos_emb"], params["pe"], trg)
    for l in range(NUM_LAYERS):
        sa = attention(y, y, y, trg_mask, mats[l, 2], mats[l, 3], vecs[l, 6])
        q = layernorm(sa + y, vecs[l, 7], vecs[l, 8])
        y = transformer_block(x, x, q, src_mask, l, 4, 9, 1)
    return y @ fcw + fcb


# ---------------- main ----------------
if __name__ == "__main__":
    key = jax.random.PRNGKey(0)
    k_src, k_trg = jax.random.split(key)
    src = jax.random.randint(k_src, (BATCH, SRC_LEN), 0, SRC_VOCAB, dtype=jnp.int32)
    trg = jax.random.randint(k_trg, (BATCH, TRG_LEN), 0, TRG_VOCAB, dtype=jnp.int32)

    params = init_params(seed=0)
    fwd = jax.jit(transformer_forward)
    out = jax.block_until_ready(fwd(params, src, trg))

    assert out.shape == (BATCH, TRG_LEN, TRG_VOCAB)
    assert bool(jnp.all(jnp.isfinite(out)))

    # correctness vs. the full (non-degenerate) softmax reference, f32, same weights
    ref = jax.block_until_ready(reference_forward(params, src, trg))
    np.testing.assert_allclose(np.asarray(out), np.asarray(ref), rtol=5e-2, atol=2e-2)

    print("KERNEL_OK")
</pallas_src>

<mosaic_0001>
module attributes {stable_mosaic.version = 11 : i64} {
  func.func @kernel(%arg0: i32, %arg1: memref<2x8x32xf32, #tpu.memory_space<vmem>>, %arg2: memref<2x8x32xf32, #tpu.memory_space<vmem>>, %arg3: memref<2x6x32x32xbf16, #tpu.memory_space<vmem>>, %arg4: memref<2x15x32xf32, #tpu.memory_space<vmem>>, %arg5: memref<2x2x32x128xbf16, #tpu.memory_space<vmem>>, %arg6: memref<2x2x128xf32, #tpu.memory_space<vmem>>, %arg7: memref<2x2x128x32xbf16, #tpu.memory_space<vmem>>, %arg8: memref<32x128xbf16, #tpu.memory_space<vmem>>, %arg9: memref<1x128xf32, #tpu.memory_space<vmem>>, %arg10: memref<2x8x128xf32, #tpu.memory_space<vmem>>) attributes {dimension_semantics = [#tpu.dimension_semantics<parallel>], iteration_bounds = array<i64: 1>, scalar_prefetch = 0 : i64, scratch_operands = 0 : i64, tpu.core_type = #tpu.core_type<tc>, window_params = [{transform_indices = @transform_0, window_bounds = array<i64: 2, 8, 32>}, {transform_indices = @transform_1, window_bounds = array<i64: 2, 8, 32>}, {pipeline_mode = #tpu.pipeline_mode<synchronous>, transform_indices = @transform_2, window_bounds = array<i64: 2, 6, 32, 32>}, {pipeline_mode = #tpu.pipeline_mode<synchronous>, transform_indices = @transform_3, window_bounds = array<i64: 2, 15, 32>}, {pipeline_mode = #tpu.pipeline_mode<synchronous>, transform_indices = @transform_4, window_bounds = array<i64: 2, 2, 32, 128>}, {pipeline_mode = #tpu.pipeline_mode<synchronous>, transform_indices = @transform_5, window_bounds = array<i64: 2, 2, 128>}, {pipeline_mode = #tpu.pipeline_mode<synchronous>, transform_indices = @transform_6, window_bounds = array<i64: 2, 2, 128, 32>}, {pipeline_mode = #tpu.pipeline_mode<synchronous>, transform_indices = @transform_7, window_bounds = array<i64: 32, 128>}, {pipeline_mode = #tpu.pipeline_mode<synchronous>, transform_indices = @transform_8, window_bounds = array<i64: 1, 128>}, {transform_indices = @transform_9, window_bounds = array<i64: 2, 8, 128>}]} {
    %c0 = arith.constant 0 : index
    %c0_0 = arith.constant 0 : index
    %0 = vector.load %arg8[%c0, %c0_0] : memref<32x128xbf16, #tpu.memory_space<vmem>>, vector<32x128xbf16>
    %c0_1 = arith.constant 0 : index
    %c0_2 = arith.constant 0 : index
    %1 = vector.load %arg9[%c0_1, %c0_2] : memref<1x128xf32, #tpu.memory_space<vmem>>, vector<1x128xf32>
    %c0_3 = arith.constant 0 : index
    %c0_4 = arith.constant 0 : index
    %c0_5 = arith.constant 0 : index
    %2 = vector.load %arg1[%c0_3, %c0_4, %c0_5] : memref<2x8x32xf32, #tpu.memory_space<vmem>>, vector<1x8x32xf32>
    %3 = vector.shape_cast %2 : vector<1x8x32xf32> to vector<8x32xf32>
    %c0_6 = arith.constant 0 : index
    %c0_7 = arith.constant 0 : index
    %c0_8 = arith.constant 0 : index
    %c0_9 = arith.constant 0 : index
    %4 = vector.load %arg3[%c0_6, %c0_7, %c0_8, %c0_9] : memref<2x6x32x32xbf16, #tpu.memory_space<vmem>>, vector<1x6x32x32xbf16>
    %5 = vector.shape_cast %4 : vector<1x6x32x32xbf16> to vector<6x32x32xbf16>
    %c0_10 = arith.constant 0 : index
    %c0_11 = arith.constant 0 : index
    %c0_12 = arith.constant 0 : index
    %6 = vector.load %arg4[%c0_10, %c0_11, %c0_12] : memref<2x15x32xf32, #tpu.memory_space<vmem>>, vector<1x15x32xf32>
    %7 = vector.shape_cast %6 : vector<1x15x32xf32> to vector<15x32xf32>
    %c0_13 = arith.constant 0 : index
    %c0_14 = arith.constant 0 : index
    %c0_15 = arith.constant 0 : index
    %c0_16 = arith.constant 0 : index
    %8 = vector.load %arg5[%c0_13, %c0_14, %c0_15, %c0_16] : memref<2x2x32x128xbf16, #tpu.memory_space<vmem>>, vector<1x2x32x128xbf16>
    %9 = vector.shape_cast %8 : vector<1x2x32x128xbf16> to vector<2x32x128xbf16>
    %c0_17 = arith.constant 0 : index
    %c0_18 = arith.constant 0 : index
    %c0_19 = arith.constant 0 : index
    %10 = vector.load %arg6[%c0_17, %c0_18, %c0_19] : memref<2x2x128xf32, #tpu.memory_space<vmem>>, vector<1x2x128xf32>
    %11 = vector.shape_cast %10 : vector<1x2x128xf32> to vector<2x128xf32>
    %c0_20 = arith.constant 0 : index
    %c0_21 = arith.constant 0 : index
    %c0_22 = arith.constant 0 : index
    %c0_23 = arith.constant 0 : index
    %12 = vector.load %arg7[%c0_20, %c0_21, %c0_22, %c0_23] : memref<2x2x128x32xbf16, #tpu.memory_space<vmem>>, vector<1x2x128x32xbf16>
    %13 = vector.shape_cast %12 : vector<1x2x128x32xbf16> to vector<2x128x32xbf16>
    %cst = arith.constant dense<0.000000e+00> : vector<32xf32>
    %14 = vector.multi_reduction <add>, %3, %cst [0] : vector<8x32xf32> to vector<32xf32>
    %15 = vector.shape_cast %14 : vector<32xf32> to vector<1x32xf32>
    %16 = vector.extract_strided_slice %5 {offsets = [0, 0, 0], sizes = [1, 32, 32], strides = [1, 1, 1]} : vector<6x32x32xbf16> to vector<1x32x32xbf16>
    %17 = vector.shape_cast %16 : vector<1x32x32xbf16> to vector<32x32xbf16>
    %18 = vector.extract_strided_slice %5 {offsets = [1, 0, 0], sizes = [1, 32, 32], strides = [1, 1, 1]} : vector<6x32x32xbf16> to vector<1x32x32xbf16>
    %19 = vector.shape_cast %18 : vector<1x32x32xbf16> to vector<32x32xbf16>
    %20 = vector.extract_strided_slice %7 {offsets = [0, 0], sizes = [1, 32], strides = [1, 1]} : vector<15x32xf32> to vector<1x32xf32>
    %21 = vector.extract_strided_slice %7 {offsets = [1, 0], sizes = [1, 32], strides = [1, 1]} : vector<15x32xf32> to vector<1x32xf32>
    %22 = vector.extract_strided_slice %7 {offsets = [2, 0], sizes = [1, 32], strides = [1, 1]} : vector<15x32xf32> to vector<1x32xf32>
    %23 = vector.extract_strided_slice %7 {offsets = [3, 0], sizes = [1, 32], strides = [1, 1]} : vector<15x32xf32> to vector<1x32xf32>
    %24 = vector.extract_strided_slice %7 {offsets = [4, 0], sizes = [1, 32], strides = [1, 1]} : vector<15x32xf32> to vector<1x32xf32>
    %25 = vector.extract_strided_slice %9 {offsets = [0, 0, 0], sizes = [1, 32, 128], strides = [1, 1, 1]} : vector<2x32x128xbf16> to vector<1x32x128xbf16>
    %26 = vector.shape_cast %25 : vector<1x32x128xbf16> to vector<32x128xbf16>
    %27 = vector.extract_strided_slice %11 {offsets = [0, 0], sizes = [1, 128], strides = [1, 1]} : vector<2x128xf32> to vector<1x128xf32>
    %28 = vector.extract_strided_slice %13 {offsets = [0, 0, 0], sizes = [1, 128, 32], strides = [1, 1, 1]} : vector<2x128x32xbf16> to vector<1x128x32xbf16>
    %29 = vector.shape_cast %28 : vector<1x128x32xbf16> to vector<128x32xbf16>
    %30 = vector.extract_strided_slice %7 {offsets = [5, 0], sizes = [1, 32], strides = [1, 1]} : vector<15x32xf32> to vector<1x32xf32>
    %31 = arith.truncf %15 : vector<1x32xf32> to vector<1x32xbf16>
    %cst_24 = arith.constant dense<0.000000e+00> : vector<1x32xf32>
    %32 = tpu.matmul %31, %17, %cst_24 {dimension_numbers = #tpu.dot_dimension_numbers<[1], [0], [0], [1], [0, 0, 1, 1], [], []>} : vector<1x32xbf16>, vector<32x32xbf16>, vector<1x32xf32> -> vector<1x32xf32>
    %33 = arith.truncf %32 : vector<1x32xf32> to vector<1x32xbf16>
    %cst_25 = arith.constant dense<0.000000e+00> : vector<1x32xf32>
    %34 = tpu.matmul %33, %19, %cst_25 {dimension_numbers = #tpu.dot_dimension_numbers<[1], [0], [0], [1], [0, 0, 1, 1], [], []>} : vector<1x32xbf16>, vector<32x32xbf16>, vector<1x32xf32> -> vector<1x32xf32>
    %35 = arith.addf %34, %20 : vector<1x32xf32>
    %36 = vector.broadcast %35 : vector<1x32xf32> to vector<8x32xf32>
    %37 = arith.addf %36, %3 : vector<8x32xf32>
    %cst_26 = arith.constant dense<0.000000e+00> : vector<8xf32>
    %38 = vector.multi_reduction <add>, %37, %cst_26 [1] : vector<8x32xf32> to vector<8xf32>
    %39 = vector.shape_cast %38 : vector<8xf32> to vector<8x1xf32>
    %cst_27 = arith.constant 3.200000e+01 : f32
    %40 = vector.broadcast %cst_27 : f32 to vector<8x1xf32>
    %41 = arith.divf %39, %40 : vector<8x1xf32>
    %42 = vector.broadcast %41 : vector<8x1xf32> to vector<8x32xf32>
    %43 = arith.subf %37, %42 : vector<8x32xf32>
    %44 = arith.mulf %43, %43 : vector<8x32xf32>
    %cst_28 = arith.constant dense<0.000000e+00> : vector<8xf32>
    %45 = vector.multi_reduction <add>, %44, %cst_28 [1] : vector<8x32xf32> to vector<8xf32>
    %46 = vector.shape_cast %45 : vector<8xf32> to vector<8x1xf32>
    %cst_29 = arith.constant 3.200000e+01 : f32
    %47 = vector.broadcast %cst_29 : f32 to vector<8x1xf32>
    %48 = arith.divf %46, %47 : vector<8x1xf32>
    %cst_30 = arith.constant 9.99999974E-6 : f32
    %49 = vector.broadcast %cst_30 : f32 to vector<8x1xf32>
    %50 = arith.addf %48, %49 : vector<8x1xf32>
    %51 = math.rsqrt %50 : vector<8x1xf32>
    %52 = vector.broadcast %51 : vector<8x1xf32> to vector<8x32xf32>
    %53 = arith.mulf %43, %52 : vector<8x32xf32>
    %54 = vector.broadcast %21 : vector<1x32xf32> to vector<8x32xf32>
    %55 = arith.mulf %53, %54 : vector<8x32xf32>
    %56 = vector.broadcast %22 : vector<1x32xf32> to vector<8x32xf32>
    %57 = arith.addf %55, %56 : vector<8x32xf32>
    %58 = arith.truncf %57 : vector<8x32xf32> to vector<8x32xbf16>
    %cst_31 = arith.constant dense<0.000000e+00> : vector<8x128xf32>
    %59 = tpu.matmul %58, %26, %cst_31 {dimension_numbers = #tpu.dot_dimension_numbers<[1], [0], [0], [1], [0, 0, 1, 1], [], []>} : vector<8x32xbf16>, vector<32x128xbf16>, vector<8x128xf32> -> vector<8x128xf32>
    %60 = vector.broadcast %27 : vector<1x128xf32> to vector<8x128xf32>
    %61 = arith.addf %59, %60 : vector<8x128xf32>
    %cst_32 = arith.constant 0.000000e+00 : f32
    %62 = vector.broadcast %cst_32 : f32 to vector<8x128xf32>
    %63 = arith.maximumf %61, %62 : vector<8x128xf32>
    %64 = arith.truncf %63 : vector<8x128xf32> to vector<8x128xbf16>
    %cst_33 = arith.constant dense<0.000000e+00> : vector<8x32xf32>
    %65 = tpu.matmul %64, %29, %cst_33 {dimension_numbers = #tpu.dot_dimension_numbers<[1], [0], [0], [1], [0, 0, 1, 1], [], []>} : vector<8x128xbf16>, vector<128x32xbf16>, vector<8x32xf32> -> vector<8x32xf32>
    %66 = vector.broadcast %30 : vector<1x32xf32> to vector<8x32xf32>
    %67 = arith.addf %65, %66 : vector<8x32xf32>
    %68 = arith.addf %67, %57 : vector<8x32xf32>
    %cst_34 = arith.constant dense<0.000000e+00> : vector<8xf32>
    %69 = vector.multi_reduction <add>, %68, %cst_34 [1] : vector<8x32xf32> to vector<8xf32>
    %70 = vector.shape_cast %69 : vector<8xf32> to vector<8x1xf32>
    %cst_35 = arith.constant 3.200000e+01 : f32
    %71 = vector.broadcast %cst_35 : f32 to vector<8x1xf32>
    %72 = arith.divf %70, %71 : vector<8x1xf32>
    %73 = vector.broadcast %72 : vector<8x1xf32> to vector<8x32xf32>
    %74 = arith.subf %68, %73 : vector<8x32xf32>
    %75 = arith.mulf %74, %74 : vector<8x32xf32>
    %cst_36 = arith.constant dense<0.000000e+00> : vector<8xf32>
    %76 = vector.multi_reduction <add>, %75, %cst_36 [1] : vector<8x32xf32> to vector<8xf32>
    %77 = vector.shape_cast %76 : vector<8xf32> to vector<8x1xf32>
    %cst_37 = arith.constant 3.200000e+01 : f32
    %78 = vector.broadcast %cst_37 : f32 to vector<8x1xf32>
    %79 = arith.divf %77, %78 : vector<8x1xf32>
    %cst_38 = arith.constant 9.99999974E-6 : f32
    %80 = vector.broadcast %cst_38 : f32 to vector<8x1xf32>
    %81 = arith.addf %79, %80 : vector<8x1xf32>
    %82 = math.rsqrt %81 : vector<8x1xf32>
    %83 = vector.broadcast %82 : vector<8x1xf32> to vector<8x32xf32>
    %84 = arith.mulf %74, %83 : vector<8x32xf32>
    %85 = vector.broadcast %23 : vector<1x32xf32> to vector<8x32xf32>
    %86 = arith.mulf %84, %85 : vector<8x32xf32>
    %87 = vector.broadcast %24 : vector<1x32xf32> to vector<8x32xf32>
    %88 = arith.addf %86, %87 : vector<8x32xf32>
    %c1 = arith.constant 1 : index
    %c0_39 = arith.constant 0 : index
    %c0_40 = arith.constant 0 : index
    %c0_41 = arith.constant 0 : index
    %89 = vector.load %arg3[%c1, %c0_39, %c0_40, %c0_41] : memref<2x6x32x32xbf16, #tpu.memory_space<vmem>>, vector<1x6x32x32xbf16>
    %90 = vector.shape_cast %89 : vector<1x6x32x32xbf16> to vector<6x32x32xbf16>
    %c1_42 = arith.constant 1 : index
    %c0_43 = arith.constant 0 : index
    %c0_44 = arith.constant 0 : index
    %91 = vector.load %arg4[%c1_42, %c0_43, %c0_44] : memref<2x15x32xf32, #tpu.memory_space<vmem>>, vector<1x15x32xf32>
    %92 = vector.shape_cast %91 : vector<1x15x32xf32> to vector<15x32xf32>
    %c1_45 = arith.constant 1 : index
    %c0_46 = arith.constant 0 : index
    %c0_47 = arith.constant 0 : index
    %c0_48 = arith.constant 0 : index
    %93 = vector.load %arg5[%c1_45, %c0_46, %c0_47, %c0_48] : memref<2x2x32x128xbf16, #tpu.memory_space<vmem>>, vector<1x2x32x128xbf16>
    %94 = vector.shape_cast %93 : vector<1x2x32x128xbf16> to vector<2x32x128xbf16>
    %c1_49 = arith.constant 1 : index
    %c0_50 = arith.constant 0 : index
    %c0_51 = arith.constant 0 : index
    %95 = vector.load %arg6[%c1_49, %c0_50, %c0_51] : memref<2x2x128xf32, #tpu.memory_space<vmem>>, vector<1x2x128xf32>
    %96 = vector.shape_cast %95 : vector<1x2x128xf32> to vector<2x128xf32>
    %c1_52 = arith.constant 1 : index
    %c0_53 = arith.constant 0 : index
    %c0_54 = arith.constant 0 : index
    %c0_55 = arith.constant 0 : index
    %97 = vector.load %arg7[%c1_52, %c0_53, %c0_54, %c0_55] : memref<2x2x128x32xbf16, #tpu.memory_space<vmem>>, vector<1x2x128x32xbf16>
    %98 = vector.shape_cast %97 : vector<1x2x128x32xbf16> to vector<2x128x32xbf16>
    %cst_56 = arith.constant dense<0.000000e+00> : vector<32xf32>
    %99 = vector.multi_reduction <add>, %88, %cst_56 [0] : vector<8x32xf32> to vector<32xf32>
    %100 = vector.shape_cast %99 : vector<32xf32> to vector<1x32xf32>
    %101 = vector.extract_strided_slice %90 {offsets = [0, 0, 0], sizes = [1, 32, 32], strides = [1, 1, 1]} : vector<6x32x32xbf16> to vector<1x32x32xbf16>
    %102 = vector.shape_cast %101 : vector<1x32x32xbf16> to vector<32x32xbf16>
    %103 = vector.extract_strided_slice %90 {offsets = [1, 0, 0], sizes = [1, 32, 32], strides = [1, 1, 1]} : vector<6x32x32xbf16> to vector<1x32x32xbf16>
    %104 = vector.shape_cast %103 : vector<1x32x32xbf16> to vector<32x32xbf16>
    %105 = vector.extract_strided_slice %92 {offsets = [0, 0], sizes = [1, 32], strides = [1, 1]} : vector<15x32xf32> to vector<1x32xf32>
    %106 = vector.extract_strided_slice %92 {offsets = [1, 0], sizes = [1, 32], strides = [1, 1]} : vector<15x32xf32> to vector<1x32xf32>
    %107 = vector.extract_strided_slice %92 {offsets = [2, 0], sizes = [1, 32], strides = [1, 1]} : vector<15x32xf32> to vector<1x32xf32>
    %108 = vector.extract_strided_slice %92 {offsets = [3, 0], sizes = [1, 32], strides = [1, 1]} : vector<15x32xf32> to vector<1x32xf32>
    %109 = vector.extract_strided_slice %92 {offsets = [4, 0], sizes = [1, 32], strides = [1, 1]} : vector<15x32xf32> to vector<1x32xf32>
    %110 = vector.extract_strided_slice %94 {offsets = [0, 0, 0], sizes = [1, 32, 128], strides = [1, 1, 1]} : vector<2x32x128xbf16> to vector<1x32x128xbf16>
    %111 = vector.shape_cast %110 : vector<1x32x128xbf16> to vector<32x128xbf16>
    %112 = vector.extract_strided_slice %96 {offsets = [0, 0], sizes = [1, 128], strides = [1, 1]} : vector<2x128xf32> to vector<1x128xf32>
    %113 = vector.extract_strided_slice %98 {offsets = [0, 0, 0], sizes = [1, 128, 32], strides = [1, 1, 1]} : vector<2x128x32xbf16> to vector<1x128x32xbf16>
    %114 = vector.shape_cast %113 : vector<1x128x32xbf16> to vector<128x32xbf16>
    %115 = vector.extract_strided_slice %92 {offsets = [5, 0], sizes = [1, 32], strides = [1, 1]} : vector<15x32xf32> to vector<1x32xf32>
    %116 = arith.truncf %100 : vector<1x32xf32> to vector<1x32xbf16>
    %cst_57 = arith.constant dense<0.000000e+00> : vector<1x32xf32>
    %117 = tpu.matmul %116, %102, %cst_57 {dimension_numbers = #tpu.dot_dimension_numbers<[1], [0], [0], [1], [0, 0, 1, 1], [], []>} : vector<1x32xbf16>, vector<32x32xbf16>, vector<1x32xf32> -> vector<1x32xf32>
    %118 = arith.truncf %117 : vector<1x32xf32> to vector<1x32xbf16>
    %cst_58 = arith.constant dense<0.000000e+00> : vector<1x32xf32>
    %119 = tpu.matmul %118, %104, %cst_58 {dimension_numbers = #tpu.dot_dimension_numbers<[1], [0], [0], [1], [0, 0, 1, 1], [], []>} : vector<1x32xbf16>, vector<32x32xbf16>, vector<1x32xf32> -> vector<1x32xf32>
    %120 = arith.addf %119, %105 : vector<1x32xf32>
    %121 = vector.broadcast %120 : vector<1x32xf32> to vector<8x32xf32>
    %122 = arith.addf %121, %88 : vector<8x32xf32>
    %cst_59 = arith.constant dense<0.000000e+00> : vector<8xf32>
    %123 = vector.multi_reduction <add>, %122, %cst_59 [1] : vector<8x32xf32> to vector<8xf32>
    %124 = vector.shape_cast %123 : vector<8xf32> to vector<8x1xf32>
    %cst_60 = arith.constant 3.200000e+01 : f32
    %125 = vector.broadcast %cst_60 : f32 to vector<8x1xf32>
    %126 = arith.divf %124, %125 : vector<8x1xf32>
    %127 = vector.broadcast %126 : vector<8x1xf32> to vector<8x32xf32>
    %128 = arith.subf %122, %127 : vector<8x32xf32>
    %129 = arith.mulf %128, %128 : vector<8x32xf32>
    %cst_61 = arith.constant dense<0.000000e+00> : vector<8xf32>
    %130 = vector.multi_reduction <add>, %129, %cst_61 [1] : vector<8x32xf32> to vector<8xf32>
    %131 = vector.shape_cast %130 : vector<8xf32> to vector<8x1xf32>
    %cst_62 = arith.constant 3.200000e+01 : f32
    %132 = vector.broadcast %cst_62 : f32 to vector<8x1xf32>
    %133 = arith.divf %131, %132 : vector<8x1xf32>
    %cst_63 = arith.constant 9.99999974E-6 : f32
    %134 = vector.broadcast %cst_63 : f32 to vector<8x1xf32>
    %135 = arith.addf %133, %134 : vector<8x1xf32>
    %136 = math.rsqrt %135 : vector<8x1xf32>
    %137 = vector.broadcast %136 : vector<8x1xf32> to vector<8x32xf32>
    %138 = arith.mulf %128, %137 : vector<8x32xf32>
    %139 = vector.broadcast %106 : vector<1x32xf32> to vector<8x32xf32>
    %140 = arith.mulf %138, %139 : vector<8x32xf32>
    %141 = vector.broadcast %107 : vector<1x32xf32> to vector<8x32xf32>
    %142 = arith.addf %140, %141 : vector<8x32xf32>
    %143 = arith.truncf %142 : vector<8x32xf32> to vector<8x32xbf16>
    %cst_64 = arith.constant dense<0.000000e+00> : vector<8x128xf32>
    %144 = tpu.matmul %143, %111, %cst_64 {dimension_numbers = #tpu.dot_dimension_numbers<[1], [0], [0], [1], [0, 0, 1, 1], [], []>} : vector<8x32xbf16>, vector<32x128xbf16>, vector<8x128xf32> -> vector<8x128xf32>
    %145 = vector.broadcast %112 : vector<1x128xf32> to vector<8x128xf32>
    %146 = arith.addf %144, %145 : vector<8x128xf32>
    %cst_65 = arith.constant 0.000000e+00 : f32
    %147 = vector.broadcast %cst_65 : f32 to vector<8x128xf32>
    %148 = arith.maximumf %146, %147 : vector<8x128xf32>
    %149 = arith.truncf %148 : vector<8x128xf32> to vector<8x128xbf16>
    %cst_66 = arith.constant dense<0.000000e+00> : vector<8x32xf32>
    %150 = tpu.matmul %149, %114, %cst_66 {dimension_numbers = #tpu.dot_dimension_numbers<[1], [0], [0], [1], [0, 0, 1, 1], [], []>} : vector<8x128xbf16>, vector<128x32xbf16>, vector<8x32xf32> -> vector<8x32xf32>
    %151 = vector.broadcast %115 : vector<1x32xf32> to vector<8x32xf32>
    %152 = arith.addf %150, %151 : vector<8x32xf32>
    %153 = arith.addf %152, %142 : vector<8x32xf32>
    %cst_67 = arith.constant dense<0.000000e+00> : vector<8xf32>
    %154 = vector.multi_reduction <add>, %153, %cst_67 [1] : vector<8x32xf32> to vector<8xf32>
    %155 = vector.shape_cast %154 : vector<8xf32> to vector<8x1xf32>
    %cst_68 = arith.constant 3.200000e+01 : f32
    %156 = vector.broadcast %cst_68 : f32 to vector<8x1xf32>
    %157 = arith.divf %155, %156 : vector<8x1xf32>
    %158 = vector.broadcast %157 : vector<8x1xf32> to vector<8x32xf32>
    %159 = arith.subf %153, %158 : vector<8x32xf32>
    %160 = arith.mulf %159, %159 : vector<8x32xf32>
    %cst_69 = arith.constant dense<0.000000e+00> : vector<8xf32>
    %161 = vector.multi_reduction <add>, %160, %cst_69 [1] : vector<8x32xf32> to vector<8xf32>
    %162 = vector.shape_cast %161 : vector<8xf32> to vector<8x1xf32>
    %cst_70 = arith.constant 3.200000e+01 : f32
    %163 = vector.broadcast %cst_70 : f32 to vector<8x1xf32>
    %164 = arith.divf %162, %163 : vector<8x1xf32>
    %cst_71 = arith.constant 9.99999974E-6 : f32
    %165 = vector.broadcast %cst_71 : f32 to vector<8x1xf32>
    %166 = arith.addf %164, %165 : vector<8x1xf32>
    %167 = math.rsqrt %166 : vector<8x1xf32>
    %168 = vector.broadcast %167 : vector<8x1xf32> to vector<8x32xf32>
    %169 = arith.mulf %159, %168 : vector<8x32xf32>
    %170 = vector.broadcast %108 : vector<1x32xf32> to vector<8x32xf32>
    %171 = arith.mulf %169, %170 : vector<8x32xf32>
    %172 = vector.broadcast %109 : vector<1x32xf32> to vector<8x32xf32>
    %173 = arith.addf %171, %172 : vector<8x32xf32>
    %cst_72 = arith.constant dense<0.000000e+00> : vector<32xf32>
    %174 = vector.multi_reduction <add>, %173, %cst_72 [0] : vector<8x32xf32> to vector<32xf32>
    %175 = vector.shape_cast %174 : vector<32xf32> to vector<1x32xf32>
    %c0_73 = arith.constant 0 : index
    %c0_74 = arith.constant 0 : index
    %c0_75 = arith.constant 0 : index
    %176 = vector.load %arg2[%c0_73, %c0_74, %c0_75] : memref<2x8x32xf32, #tpu.memory_space<vmem>>, vector<1x8x32xf32>
    %177 = vector.shape_cast %176 : vector<1x8x32xf32> to vector<8x32xf32>
    %c0_76 = arith.constant 0 : index
    %c0_77 = arith.constant 0 : index
    %c0_78 = arith.constant 0 : index
    %c0_79 = arith.constant 0 : index
    %178 = vector.load %arg3[%c0_76, %c0_77, %c0_78, %c0_79] : memref<2x6x32x32xbf16, #tpu.memory_space<vmem>>, vector<1x6x32x32xbf16>
    %179 = vector.shape_cast %178 : vector<1x6x32x32xbf16> to vector<6x32x32xbf16>
    %c0_80 = arith.constant 0 : index
    %c0_81 = arith.constant 0 : index
    %c0_82 = arith.constant 0 : index
    %180 = vector.load %arg4[%c0_80, %c0_81, %c0_82] : memref<2x15x32xf32, #tpu.memory_space<vmem>>, vector<1x15x32xf32>
    %181 = vector.shape_cast %180 : vector<1x15x32xf32> to vector<15x32xf32>
    %c0_83 = arith.constant 0 : index
    %c0_84 = arith.constant 0 : index
    %c0_85 = arith.constant 0 : index
    %c0_86 = arith.constant 0 : index
    %182 = vector.load %arg5[%c0_83, %c0_84, %c0_85, %c0_86] : memref<2x2x32x128xbf16, #tpu.memory_space<vmem>>, vector<1x2x32x128xbf16>
    %183 = vector.shape_cast %182 : vector<1x2x32x128xbf16> to vector<2x32x128xbf16>
    %c0_87 = arith.constant 0 : index
    %c0_88 = arith.constant 0 : index
    %c0_89 = arith.constant 0 : index
    %184 = vector.load %arg6[%c0_87, %c0_88, %c0_89] : memref<2x2x128xf32, #tpu.memory_space<vmem>>, vector<1x2x128xf32>
    %185 = vector.shape_cast %184 : vector<1x2x128xf32> to vector<2x128xf32>
    %c0_90 = arith.constant 0 : index
    %c0_91 = arith.constant 0 : index
    %c0_92 = arith.constant 0 : index
    %c0_93 = arith.constant 0 : index
    %186 = vector.load %arg7[%c0_90, %c0_91, %c0_92, %c0_93] : memref<2x2x128x32xbf16, #tpu.memory_space<vmem>>, vector<1x2x128x32xbf16>
    %187 = vector.shape_cast %186 : vector<1x2x128x32xbf16> to vector<2x128x32xbf16>
    %cst_94 = arith.constant dense<0.000000e+00> : vector<32xf32>
    %188 = vector.multi_reduction <add>, %177, %cst_94 [0] : vector<8x32xf32> to vector<32xf32>
    %189 = vector.shape_cast %188 : vector<32xf32> to vector<1x32xf32>
    %190 = vector.extract_strided_slice %179 {offsets = [2, 0, 0], sizes = [1, 32, 32], strides = [1, 1, 1]} : vector<6x32x32xbf16> to vector<1x32x32xbf16>
    %191 = vector.shape_cast %190 : vector<1x32x32xbf16> to vector<32x32xbf16>
    %192 = vector.extract_strided_slice %179 {offsets = [3, 0, 0], sizes = [1, 32, 32], strides = [1, 1, 1]} : vector<6x32x32xbf16> to vector<1x32x32xbf16>
    %193 = vector.shape_cast %192 : vector<1x32x32xbf16> to vector<32x32xbf16>
    %194 = vector.extract_strided_slice %181 {offsets = [6, 0], sizes = [1, 32], strides = [1, 1]} : vector<15x32xf32> to vector<1x32xf32>
    %195 = arith.truncf %189 : vector<1x32xf32> to vector<1x32xbf16>
    %cst_95 = arith.constant dense<0.000000e+00> : vector<1x32xf32>
    %196 = tpu.matmul %195, %191, %cst_95 {dimension_numbers = #tpu.dot_dimension_numbers<[1], [0], [0], [1], [0, 0, 1, 1], [], []>} : vector<1x32xbf16>, vector<32x32xbf16>, vector<1x32xf32> -> vector<1x32xf32>
    %197 = arith.truncf %196 : vector<1x32xf32> to vector<1x32xbf16>
    %cst_96 = arith.constant dense<0.000000e+00> : vector<1x32xf32>
    %198 = tpu.matmul %197, %193, %cst_96 {dimension_numbers = #tpu.dot_dimension_numbers<[1], [0], [0], [1], [0, 0, 1, 1], [], []>} : vector<1x32xbf16>, vector<32x32xbf16>, vector<1x32xf32> -> vector<1x32xf32>
    %199 = arith.addf %198, %194 : vector<1x32xf32>
    %200 = vector.broadcast %199 : vector<1x32xf32> to vector<8x32xf32>
    %201 = arith.addf %200, %177 : vector<8x32xf32>
    %202 = vector.extract_strided_slice %181 {offsets = [7, 0], sizes = [1, 32], strides = [1, 1]} : vector<15x32xf32> to vector<1x32xf32>
    %203 = vector.extract_strided_slice %181 {offsets = [8, 0], sizes = [1, 32], strides = [1, 1]} : vector<15x32xf32> to vector<1x32xf32>
    %cst_97 = arith.constant dense<0.000000e+00> : vector<8xf32>
    %204 = vector.multi_reduction <add>, %201, %cst_97 [1] : vector<8x32xf32> to vector<8xf32>
    %205 = vector.shape_cast %204 : vector<8xf32> to vector<8x1xf32>
    %cst_98 = arith.constant 3.200000e+01 : f32
    %206 = vector.broadcast %cst_98 : f32 to vector<8x1xf32>
    %207 = arith.divf %205, %206 : vector<8x1xf32>
    %208 = vector.broadcast %207 : vector<8x1xf32> to vector<8x32xf32>
    %209 = arith.subf %201, %208 : vector<8x32xf32>
    %210 = arith.mulf %209, %209 : vector<8x32xf32>
    %cst_99 = arith.constant dense<0.000000e+00> : vector<8xf32>
    %211 = vector.multi_reduction <add>, %210, %cst_99 [1] : vector<8x32xf32> to vector<8xf32>
    %212 = vector.shape_cast %211 : vector<8xf32> to vector<8x1xf32>
    %cst_100 = arith.constant 3.200000e+01 : f32
    %213 = vector.broadcast %cst_100 : f32 to vector<8x1xf32>
    %214 = arith.divf %212, %213 : vector<8x1xf32>
    %cst_101 = arith.constant 9.99999974E-6 : f32
    %215 = vector.broadcast %cst_101 : f32 to vector<8x1xf32>
    %216 = arith.addf %214, %215 : vector<8x1xf32>
    %217 = math.rsqrt %216 : vector<8x1xf32>
    %218 = vector.broadcast %217 : vector<8x1xf32> to vector<8x32xf32>
    %219 = arith.mulf %209, %218 : vector<8x32xf32>
    %220 = vector.broadcast %202 : vector<1x32xf32> to vector<8x32xf32>
    %221 = arith.mulf %219, %220 : vector<8x32xf32>
    %222 = vector.broadcast %203 : vector<1x32xf32> to vector<8x32xf32>
    %223 = arith.addf %221, %222 : vector<8x32xf32>
    %224 = vector.extract_strided_slice %179 {offsets = [4, 0, 0], sizes = [1, 32, 32], strides = [1, 1, 1]} : vector<6x32x32xbf16> to vector<1x32x32xbf16>
    %225 = vector.shape_cast %224 : vector<1x32x32xbf16> to vector<32x32xbf16>
    %226 = vector.extract_strided_slice %179 {offsets = [5, 0, 0], sizes = [1, 32, 32], strides = [1, 1, 1]} : vector<6x32x32xbf16> to vector<1x32x32xbf16>
    %227 = vector.shape_cast %226 : vector<1x32x32xbf16> to vector<32x32xbf16>
    %228 = vector.extract_strided_slice %181 {offsets = [9, 0], sizes = [1, 32], strides = [1, 1]} : vector<15x32xf32> to vector<1x32xf32>
    %229 = vector.extract_strided_slice %181 {offsets = [10, 0], sizes = [1, 32], strides = [1, 1]} : vector<15x32xf32> to vector<1x32xf32>
    %230 = vector.extract_strided_slice %181 {offsets = [11, 0], sizes = [1, 32], strides = [1, 1]} : vector<15x32xf32> to vector<1x32xf32>
    %231 = vector.extract_strided_slice %181 {offsets = [12, 0], sizes = [1, 32], strides = [1, 1]} : vector<15x32xf32> to vector<1x32xf32>
    %232 = vector.extract_strided_slice %181 {offsets = [13, 0], sizes = [1, 32], strides = [1, 1]} : vector<15x32xf32> to vector<1x32xf32>
    %233 = vector.extract_strided_slice %183 {offsets = [1, 0, 0], sizes = [1, 32, 128], strides = [1, 1, 1]} : vector<2x32x128xbf16> to vector<1x32x128xbf16>
    %234 = vector.shape_cast %233 : vector<1x32x128xbf16> to vector<32x128xbf16>
    %235 = vector.extract_strided_slice %185 {offsets = [1, 0], sizes = [1, 128], strides = [1, 1]} : vector<2x128xf32> to vector<1x128xf32>
    %236 = vector.extract_strided_slice %187 {offsets = [1, 0, 0], sizes = [1, 128, 32], strides = [1, 1, 1]} : vector<2x128x32xbf16> to vector<1x128x32xbf16>
    %237 = vector.shape_cast %236 : vector<1x128x32xbf16> to vector<128x32xbf16>
    %238 = vector.extract_strided_slice %181 {offsets = [14, 0], sizes = [1, 32], strides = [1, 1]} : vector<15x32xf32> to vector<1x32xf32>
    %239 = arith.truncf %175 : vector<1x32xf32> to vector<1x32xbf16>
    %cst_102 = arith.constant dense<0.000000e+00> : vector<1x32xf32>
    %240 = tpu.matmul %239, %225, %cst_102 {dimension_numbers = #tpu.dot_dimension_numbers<[1], [0], [0], [1], [0, 0, 1, 1], [], []>} : vector<1x32xbf16>, vector<32x32xbf16>, vector<1x32xf32> -> vector<1x32xf32>
    %241 = arith.truncf %240 : vector<1x32xf32> to vector<1x32xbf16>
    %cst_103 = arith.constant dense<0.000000e+00> : vector<1x32xf32>
    %242 = tpu.matmul %241, %227, %cst_103 {dimension_numbers = #tpu.dot_dimension_numbers<[1], [0], [0], [1], [0, 0, 1, 1], [], []>} : vector<1x32xbf16>, vector<32x32xbf16>, vector<1x32xf32> -> vector<1x32xf32>
    %243 = arith.addf %242, %228 : vector<1x32xf32>
    %244 = vector.broadcast %243 : vector<1x32xf32> to vector<8x32xf32>
    %245 = arith.addf %244, %223 : vector<8x32xf32>
    %cst_104 = arith.constant dense<0.000000e+00> : vector<8xf32>
    %246 = vector.multi_reduction <add>, %245, %cst_104 [1] : vector<8x32xf32> to vector<8xf32>
    %247 = vector.shape_cast %246 : vector<8xf32> to vector<8x1xf32>
    %cst_105 = arith.constant 3.200000e+01 : f32
    %248 = vector.broadcast %cst_105 : f32 to vector<8x1xf32>
    %249 = arith.divf %247, %248 : vector<8x1xf32>
    %250 = vector.broadcast %249 : vector<8x1xf32> to vector<8x32xf32>
    %251 = arith.subf %245, %250 : vector<8x32xf32>
    %252 = arith.mulf %251, %251 : vector<8x32xf32>
    %cst_106 = arith.constant dense<0.000000e+00> : vector<8xf32>
    %253 = vector.multi_reduction <add>, %252, %cst_106 [1] : vector<8x32xf32> to vector<8xf32>
    %254 = vector.shape_cast %253 : vector<8xf32> to vector<8x1xf32>
    %cst_107 = arith.constant 3.200000e+01 : f32
    %255 = vector.broadcast %cst_107 : f32 to vector<8x1xf32>
    %256 = arith.divf %254, %255 : vector<8x1xf32>
    %cst_108 = arith.constant 9.99999974E-6 : f32
    %257 = vector.broadcast %cst_108 : f32 to vector<8x1xf32>
    %258 = arith.addf %256, %257 : vector<8x1xf32>
    %259 = math.rsqrt %258 : vector<8x1xf32>
    %260 = vector.broadcast %259 : vector<8x1xf32> to vector<8x32xf32>
    %261 = arith.mulf %251, %260 : vector<8x32xf32>
    %262 = vector.broadcast %229 : vector<1x32xf32> to vector<8x32xf32>
    %263 = arith.mulf %261, %262 : vector<8x32xf32>
    %264 = vector.broadcast %230 : vector<1x32xf32> to vector<8x32xf32>
    %265 = arith.addf %263, %264 : vector<8x32xf32>
    %266 = arith.truncf %265 : vector<8x32xf32> to vector<8x32xbf16>
    %cst_109 = arith.constant dense<0.000000e+00> : vector<8x128xf32>
    %267 = tpu.matmul %266, %234, %cst_109 {dimension_numbers = #tpu.dot_dimension_numbers<[1], [0], [0], [1], [0, 0, 1, 1], [], []>} : vector<8x32xbf16>, vector<32x128xbf16>, vector<8x128xf32> -> vector<8x128xf32>
    %268 = vector.broadcast %235 : vector<1x128xf32> to vector<8x128xf32>
    %269 = arith.addf %267, %268 : vector<8x128xf32>
    %cst_110 = arith.constant 0.000000e+00 : f32
    %270 = vector.broadcast %cst_110 : f32 to vector<8x128xf32>
    %271 = arith.maximumf %269, %270 : vector<8x128xf32>
    %272 = arith.truncf %271 : vector<8x128xf32> to vector<8x128xbf16>
    %cst_111 = arith.constant dense<0.000000e+00> : vector<8x32xf32>
    %273 = tpu.matmul %272, %237, %cst_111 {dimension_numbers = #tpu.dot_dimension_numbers<[1], [0], [0], [1], [0, 0, 1, 1], [], []>} : vector<8x128xbf16>, vector<128x32xbf16>, vector<8x32xf32> -> vector<8x32xf32>
    %274 = vector.broadcast %238 : vector<1x32xf32> to vector<8x32xf32>
    %275 = arith.addf %273, %274 : vector<8x32xf32>
    %276 = arith.addf %275, %265 : vector<8x32xf32>
    %cst_112 = arith.constant dense<0.000000e+00> : vector<8xf32>
    %277 = vector.multi_reduction <add>, %276, %cst_112 [1] : vector<8x32xf32> to vector<8xf32>
    %278 = vector.shape_cast %277 : vector<8xf32> to vector<8x1xf32>
    %cst_113 = arith.constant 3.200000e+01 : f32
    %279 = vector.broadcast %cst_113 : f32 to vector<8x1xf32>
    %280 = arith.divf %278, %279 : vector<8x1xf32>
    %281 = vector.broadcast %280 : vector<8x1xf32> to vector<8x32xf32>
    %282 = arith.subf %276, %281 : vector<8x32xf32>
    %283 = arith.mulf %282, %282 : vector<8x32xf32>
    %cst_114 = arith.constant dense<0.000000e+00> : vector<8xf32>
    %284 = vector.multi_reduction <add>, %283, %cst_114 [1] : vector<8x32xf32> to vector<8xf32>
    %285 = vector.shape_cast %284 : vector<8xf32> to vector<8x1xf32>
    %cst_115 = arith.constant 3.200000e+01 : f32
    %286 = vector.broadcast %cst_115 : f32 to vector<8x1xf32>
    %287 = arith.divf %285, %286 : vector<8x1xf32>
    %cst_116 = arith.constant 9.99999974E-6 : f32
    %288 = vector.broadcast %cst_116 : f32 to vector<8x1xf32>
    %289 = arith.addf %287, %288 : vector<8x1xf32>
    %290 = math.rsqrt %289 : vector<8x1xf32>
    %291 = vector.broadcast %290 : vector<8x1xf32> to vector<8x32xf32>
    %292 = arith.mulf %282, %291 : vector<8x32xf32>
    %293 = vector.broadcast %231 : vector<1x32xf32> to vector<8x32xf32>
    %294 = arith.mulf %292, %293 : vector<8x32xf32>
    %295 = vector.broadcast %232 : vector<1x32xf32> to vector<8x32xf32>
    %296 = arith.addf %294, %295 : vector<8x32xf32>
    %c1_117 = arith.constant 1 : index
    %c0_118 = arith.constant 0 : index
    %c0_119 = arith.constant 0 : index
    %c0_120 = arith.constant 0 : index
    %297 = vector.load %arg3[%c1_117, %c0_118, %c0_119, %c0_120] : memref<2x6x32x32xbf16, #tpu.memory_space<vmem>>, vector<1x6x32x32xbf16>
    %298 = vector.shape_cast %297 : vector<1x6x32x32xbf16> to vector<6x32x32xbf16>
    %c1_121 = arith.constant 1 : index
    %c0_122 = arith.constant 0 : index
    %c0_123 = arith.constant 0 : index
    %299 = vector.load %arg4[%c1_121, %c0_122, %c0_123] : memref<2x15x32xf32, #tpu.memory_space<vmem>>, vector<1x15x32xf32>
    %300 = vector.shape_cast %299 : vector<1x15x32xf32> to vector<15x32xf32>
    %c1_124 = arith.constant 1 : index
    %c0_125 = arith.constant 0 : index
    %c0_126 = arith.constant 0 : index
    %c0_127 = arith.constant 0 : index
    %301 = vector.load %arg5[%c1_124, %c0_125, %c0_126, %c0_127] : memref<2x2x32x128xbf16, #tpu.memory_space<vmem>>, vector<1x2x32x128xbf16>
    %302 = vector.shape_cast %301 : vector<1x2x32x128xbf16> to vector<2x32x128xbf16>
    %c1_128 = arith.constant 1 : index
    %c0_129 = arith.constant 0 : index
    %c0_130 = arith.constant 0 : index
    %303 = vector.load %arg6[%c1_128, %c0_129, %c0_130] : memref<2x2x128xf32, #tpu.memory_space<vmem>>, vector<1x2x128xf32>
    %304 = vector.shape_cast %303 : vector<1x2x128xf32> to vector<2x128xf32>
    %c1_131 = arith.constant 1 : index
    %c0_132 = arith.constant 0 : index
    %c0_133 = arith.constant 0 : index
    %c0_134 = arith.constant 0 : index
    %305 = vector.load %arg7[%c1_131, %c0_132, %c0_133, %c0_134] : memref<2x2x128x32xbf16, #tpu.memory_space<vmem>>, vector<1x2x128x32xbf16>
    %306 = vector.shape_cast %305 : vector<1x2x128x32xbf16> to vector<2x128x32xbf16>
    %cst_135 = arith.constant dense<0.000000e+00> : vector<32xf32>
    %307 = vector.multi_reduction <add>, %296, %cst_135 [0] : vector<8x32xf32> to vector<32xf32>
    %308 = vector.shape_cast %307 : vector<32xf32> to vector<1x32xf32>
    %309 = vector.extract_strided_slice %298 {offsets = [2, 0, 0], sizes = [1, 32, 32], strides = [1, 1, 1]} : vector<6x32x32xbf16> to vector<1x32x32xbf16>
    %310 = vector.shape_cast %309 : vector<1x32x32xbf16> to vector<32x32xbf16>
    %311 = vector.extract_strided_slice %298 {offsets = [3, 0, 0], sizes = [1, 32, 32], strides = [1, 1, 1]} : vector<6x32x32xbf16> to vector<1x32x32xbf16>
    %312 = vector.shape_cast %311 : vector<1x32x32xbf16> to vector<32x32xbf16>
    %313 = vector.extract_strided_slice %300 {offsets = [6, 0], sizes = [1, 32], strides = [1, 1]} : vector<15x32xf32> to vector<1x32xf32>
    %314 = arith.truncf %308 : vector<1x32xf32> to vector<1x32xbf16>
    %cst_136 = arith.constant dense<0.000000e+00> : vector<1x32xf32>
    %315 = tpu.matmul %314, %310, %cst_136 {dimension_numbers = #tpu.dot_dimension_numbers<[1], [0], [0], [1], [0, 0, 1, 1], [], []>} : vector<1x32xbf16>, vector<32x32xbf16>, vector<1x32xf32> -> vector<1x32xf32>
    %316 = arith.truncf %315 : vector<1x32xf32> to vector<1x32xbf16>
    %cst_137 = arith.constant dense<0.000000e+00> : vector<1x32xf32>
    %317 = tpu.matmul %316, %312, %cst_137 {dimension_numbers = #tpu.dot_dimension_numbers<[1], [0], [0], [1], [0, 0, 1, 1], [], []>} : vector<1x32xbf16>, vector<32x32xbf16>, vector<1x32xf32> -> vector<1x32xf32>
    %318 = arith.addf %317, %313 : vector<1x32xf32>
    %319 = vector.broadcast %318 : vector<1x32xf32> to vector<8x32xf32>
    %320 = arith.addf %319, %296 : vector<8x32xf32>
    %321 = vector.extract_strided_slice %300 {offsets = [7, 0], sizes = [1, 32], strides = [1, 1]} : vector<15x32xf32> to vector<1x32xf32>
    %322 = vector.extract_strided_slice %300 {offsets = [8, 0], sizes = [1, 32], strides = [1, 1]} : vector<15x32xf32> to vector<1x32xf32>
    %cst_138 = arith.constant dense<0.000000e+00> : vector<8xf32>
    %323 = vector.multi_reduction <add>, %320, %cst_138 [1] : vector<8x32xf32> to vector<8xf32>
    %324 = vector.shape_cast %323 : vector<8xf32> to vector<8x1xf32>
    %cst_139 = arith.constant 3.200000e+01 : f32
    %325 = vector.broadcast %cst_139 : f32 to vector<8x1xf32>
    %326 = arith.divf %324, %325 : vector<8x1xf32>
    %327 = vector.broadcast %326 : vector<8x1xf32> to vector<8x32xf32>
    %328 = arith.subf %320, %327 : vector<8x32xf32>
    %329 = arith.mulf %328, %328 : vector<8x32xf32>
    %cst_140 = arith.constant dense<0.000000e+00> : vector<8xf32>
    %330 = vector.multi_reduction <add>, %329, %cst_140 [1] : vector<8x32xf32> to vector<8xf32>
    %331 = vector.shape_cast %330 : vector<8xf32> to vector<8x1xf32>
    %cst_141 = arith.constant 3.200000e+01 : f32
    %332 = vector.broadcast %cst_141 : f32 to vector<8x1xf32>
    %333 = arith.divf %331, %332 : vector<8x1xf32>
    %cst_142 = arith.constant 9.99999974E-6 : f32
    %334 = vector.broadcast %cst_142 : f32 to vector<8x1xf32>
    %335 = arith.addf %333, %334 : vector<8x1xf32>
    %336 = math.rsqrt %335 : vector<8x1xf32>
    %337 = vector.broadcast %336 : vector<8x1xf32> to vector<8x32xf32>
    %338 = arith.mulf %328, %337 : vector<8x32xf32>
    %339 = vector.broadcast %321 : vector<1x32xf32> to vector<8x32xf32>
    %340 = arith.mulf %338, %339 : vector<8x32xf32>
    %341 = vector.broadcast %322 : vector<1x32xf32> to vector<8x32xf32>
    %342 = arith.addf %340, %341 : vector<8x32xf32>
    %343 = vector.extract_strided_slice %298 {offsets = [4, 0, 0], sizes = [1, 32, 32], strides = [1, 1, 1]} : vector<6x32x32xbf16> to vector<1x32x32xbf16>
    %344 = vector.shape_cast %343 : vector<1x32x32xbf16> to vector<32x32xbf16>
    %345 = vector.extract_strided_slice %298 {offsets = [5, 0, 0], sizes = [1, 32, 32], strides = [1, 1, 1]} : vector<6x32x32xbf16> to vector<1x32x32xbf16>
    %346 = vector.shape_cast %345 : vector<1x32x32xbf16> to vector<32x32xbf16>
    %347 = vector.extract_strided_slice %300 {offsets = [9, 0], sizes = [1, 32], strides = [1, 1]} : vector<15x32xf32> to vector<1x32xf32>
    %348 = vector.extract_strided_slice %300 {offsets = [10, 0], sizes = [1, 32], strides = [1, 1]} : vector<15x32xf32> to vector<1x32xf32>
    %349 = vector.extract_strided_slice %300 {offsets = [11, 0], sizes = [1, 32], strides = [1, 1]} : vector<15x32xf32> to vector<1x32xf32>
    %350 = vector.extract_strided_slice %300 {offsets = [12, 0], sizes = [1, 32], strides = [1, 1]} : vector<15x32xf32> to vector<1x32xf32>
    %351 = vector.extract_strided_slice %300 {offsets = [13, 0], sizes = [1, 32], strides = [1, 1]} : vector<15x32xf32> to vector<1x32xf32>
    %352 = vector.extract_strided_slice %302 {offsets = [1, 0, 0], sizes = [1, 32, 128], strides = [1, 1, 1]} : vector<2x32x128xbf16> to vector<1x32x128xbf16>
    %353 = vector.shape_cast %352 : vector<1x32x128xbf16> to vector<32x128xbf16>
    %354 = vector.extract_strided_slice %304 {offsets = [1, 0], sizes = [1, 128], strides = [1, 1]} : vector<2x128xf32> to vector<1x128xf32>
    %355 = vector.extract_strided_slice %306 {offsets = [1, 0, 0], sizes = [1, 128, 32], strides = [1, 1, 1]} : vector<2x128x32xbf16> to vector<1x128x32xbf16>
    %356 = vector.shape_cast %355 : vector<1x128x32xbf16> to vector<128x32xbf16>
    %357 = vector.extract_strided_slice %300 {offsets = [14, 0], sizes = [1, 32], strides = [1, 1]} : vector<15x32xf32> to vector<1x32xf32>
    %358 = arith.truncf %175 : vector<1x32xf32> to vector<1x32xbf16>
    %cst_143 = arith.constant dense<0.000000e+00> : vector<1x32xf32>
    %359 = tpu.matmul %358, %344, %cst_143 {dimension_numbers = #tpu.dot_dimension_numbers<[1], [0], [0], [1], [0, 0, 1, 1], [], []>} : vector<1x32xbf16>, vector<32x32xbf16>, vector<1x32xf32> -> vector<1x32xf32>
    %360 = arith.truncf %359 : vector<1x32xf32> to vector<1x32xbf16>
    %cst_144 = arith.constant dense<0.000000e+00> : vector<1x32xf32>
    %361 = tpu.matmul %360, %346, %cst_144 {dimension_numbers = #tpu.dot_dimension_numbers<[1], [0], [0], [1], [0, 0, 1, 1], [], []>} : vector<1x32xbf16>, vector<32x32xbf16>, vector<1x32xf32> -> vector<1x32xf32>
    %362 = arith.addf %361, %347 : vector<1x32xf32>
    %363 = vector.broadcast %362 : vector<1x32xf32> to vector<8x32xf32>
    %364 = arith.addf %363, %342 : vector<8x32xf32>
    %cst_145 = arith.constant dense<0.000000e+00> : vector<8xf32>
    %365 = vector.multi_reduction <add>, %364, %cst_145 [1] : vector<8x32xf32> to vector<8xf32>
    %366 = vector.shape_cast %365 : vector<8xf32> to vector<8x1xf32>
    %cst_146 = arith.constant 3.200000e+01 : f32
    %367 = vector.broadcast %cst_146 : f32 to vector<8x1xf32>
    %368 = arith.divf %366, %367 : vector<8x1xf32>
    %369 = vector.broadcast %368 : vector<8x1xf32> to vector<8x32xf32>
    %370 = arith.subf %364, %369 : vector<8x32xf32>
    %371 = arith.mulf %370, %370 : vector<8x32xf32>
    %cst_147 = arith.constant dense<0.000000e+00> : vector<8xf32>
    %372 = vector.multi_reduction <add>, %371, %cst_147 [1] : vector<8x32xf32> to vector<8xf32>
    %373 = vector.shape_cast %372 : vector<8xf32> to vector<8x1xf32>
    %cst_148 = arith.constant 3.200000e+01 : f32
    %374 = vector.broadcast %cst_148 : f32 to vector<8x1xf32>
    %375 = arith.divf %373, %374 : vector<8x1xf32>
    %cst_149 = arith.constant 9.99999974E-6 : f32
    %376 = vector.broadcast %cst_149 : f32 to vector<8x1xf32>
    %377 = arith.addf %375, %376 : vector<8x1xf32>
    %378 = math.rsqrt %377 : vector<8x1xf32>
    %379 = vector.broadcast %378 : vector<8x1xf32> to vector<8x32xf32>
    %380 = arith.mulf %370, %379 : vector<8x32xf32>
    %381 = vector.broadcast %348 : vector<1x32xf32> to vector<8x32xf32>
    %382 = arith.mulf %380, %381 : vector<8x32xf32>
    %383 = vector.broadcast %349 : vector<1x32xf32> to vector<8x32xf32>
    %384 = arith.addf %382, %383 : vector<8x32xf32>
    %385 = arith.truncf %384 : vector<8x32xf32> to vector<8x32xbf16>
    %cst_150 = arith.constant dense<0.000000e+00> : vector<8x128xf32>
    %386 = tpu.matmul %385, %353, %cst_150 {dimension_numbers = #tpu.dot_dimension_numbers<[1], [0], [0], [1], [0, 0, 1, 1], [], []>} : vector<8x32xbf16>, vector<32x128xbf16>, vector<8x128xf32> -> vector<8x128xf32>
    %387 = vector.broadcast %354 : vector<1x128xf32> to vector<8x128xf32>
    %388 = arith.addf %386, %387 : vector<8x128xf32>
    %cst_151 = arith.constant 0.000000e+00 : f32
    %389 = vector.broadcast %cst_151 : f32 to vector<8x128xf32>
    %390 = arith.maximumf %388, %389 : vector<8x128xf32>
    %391 = arith.truncf %390 : vector<8x128xf32> to vector<8x128xbf16>
    %cst_152 = arith.constant dense<0.000000e+00> : vector<8x32xf32>
    %392 = tpu.matmul %391, %356, %cst_152 {dimension_numbers = #tpu.dot_dimension_numbers<[1], [0], [0], [1], [0, 0, 1, 1], [], []>} : vector<8x128xbf16>, vector<128x32xbf16>, vector<8x32xf32> -> vector<8x32xf32>
    %393 = vector.broadcast %357 : vector<1x32xf32> to vector<8x32xf32>
    %394 = arith.addf %392, %393 : vector<8x32xf32>
    %395 = arith.addf %394, %384 : vector<8x32xf32>
    %cst_153 = arith.constant dense<0.000000e+00> : vector<8xf32>
    %396 = vector.multi_reduction <add>, %395, %cst_153 [1] : vector<8x32xf32> to vector<8xf32>
    %397 = vector.shape_cast %396 : vector<8xf32> to vector<8x1xf32>
    %cst_154 = arith.constant 3.200000e+01 : f32
    %398 = vector.broadcast %cst_154 : f32 to vector<8x1xf32>
    %399 = arith.divf %397, %398 : vector<8x1xf32>
    %400 = vector.broadcast %399 : vector<8x1xf32> to vector<8x32xf32>
    %401 = arith.subf %395, %400 : vector<8x32xf32>
    %402 = arith.mulf %401, %401 : vector<8x32xf32>
    %cst_155 = arith.constant dense<0.000000e+00> : vector<8xf32>
    %403 = vector.multi_reduction <add>, %402, %cst_155 [1] : vector<8x32xf32> to vector<8xf32>
    %404 = vector.shape_cast %403 : vector<8xf32> to vector<8x1xf32>
    %cst_156 = arith.constant 3.200000e+01 : f32
    %405 = vector.broadcast %cst_156 : f32 to vector<8x1xf32>
    %406 = arith.divf %404, %405 : vector<8x1xf32>
    %cst_157 = arith.constant 9.99999974E-6 : f32
    %407 = vector.broadcast %cst_157 : f32 to vector<8x1xf32>
    %408 = arith.addf %406, %407 : vector<8x1xf32>
    %409 = math.rsqrt %408 : vector<8x1xf32>
    %410 = vector.broadcast %409 : vector<8x1xf32> to vector<8x32xf32>
    %411 = arith.mulf %401, %410 : vector<8x32xf32>
    %412 = vector.broadcast %350 : vector<1x32xf32> to vector<8x32xf32>
    %413 = arith.mulf %411, %412 : vector<8x32xf32>
    %414 = vector.broadcast %351 : vector<1x32xf32> to vector<8x32xf32>
    %415 = arith.addf %413, %414 : vector<8x32xf32>
    %416 = arith.truncf %415 : vector<8x32xf32> to vector<8x32xbf16>
    %cst_158 = arith.constant dense<0.000000e+00> : vector<8x128xf32>
    %417 = tpu.matmul %416, %0, %cst_158 {dimension_numbers = #tpu.dot_dimension_numbers<[1], [0], [0], [1], [0, 0, 1, 1], [], []>} : vector<8x32xbf16>, vector<32x128xbf16>, vector<8x128xf32> -> vector<8x128xf32>
    %418 = vector.broadcast %1 : vector<1x128xf32> to vector<8x128xf32>
    %419 = arith.addf %417, %418 : vector<8x128xf32>
    %c0_159 = arith.constant 0 : index
    %c0_160 = arith.constant 0 : index
    %c0_161 = arith.constant 0 : index
    %420 = vector.load %arg10[%c0_159, %c0_160, %c0_161] : memref<2x8x128xf32, #tpu.memory_space<vmem>>, vector<1x8x128xf32>
    %421 = vector.shape_cast %420 : vector<1x8x128xf32> to vector<8x128xf32>
    %422 = vector.shape_cast %419 : vector<8x128xf32> to vector<1x8x128xf32>
    tpu.vector_store %arg10[%c0_159, %c0_160, %c0_161], %422 {strides = array<i32>} : memref<2x8x128xf32, #tpu.memory_space<vmem>>, vector<1x8x128xf32>,
    %c1_162 = arith.constant 1 : index
    %c0_163 = arith.constant 0 : index
    %c0_164 = arith.constant 0 : index
    %423 = vector.load %arg1[%c1_162, %c0_163, %c0_164] : memref<2x8x32xf32, #tpu.memory_space<vmem>>, vector<1x8x32xf32>
    %424 = vector.shape_cast %423 : vector<1x8x32xf32> to vector<8x32xf32>
    %c0_165 = arith.constant 0 : index
    %c0_166 = arith.constant 0 : index
    %c0_167 = arith.constant 0 : index
    %c0_168 = arith.constant 0 : index
    %425 = vector.load %arg3[%c0_165, %c0_166, %c0_167, %c0_168] : memref<2x6x32x32xbf16, #tpu.memory_space<vmem>>, vector<1x6x32x32xbf16>
    %426 = vector.shape_cast %425 : vector<1x6x32x32xbf16> to vector<6x32x32xbf16>
    %c0_169 = arith.constant 0 : index
    %c0_170 = arith.constant 0 : index
    %c0_171 = arith.constant 0 : index
    %427 = vector.load %arg4[%c0_169, %c0_170, %c0_171] : memref<2x15x32xf32, #tpu.memory_space<vmem>>, vector<1x15x32xf32>
    %428 = vector.shape_cast %427 : vector<1x15x32xf32> to vector<15x32xf32>
    %c0_172 = arith.constant 0 : index
    %c0_173 = arith.constant 0 : index
    %c0_174 = arith.constant 0 : index
    %c0_175 = arith.constant 0 : index
    %429 = vector.load %arg5[%c0_172, %c0_173, %c0_174, %c0_175] : memref<2x2x32x128xbf16, #tpu.memory_space<vmem>>, vector<1x2x32x128xbf16>
    %430 = vector.shape_cast %429 : vector<1x2x32x128xbf16> to vector<2x32x128xbf16>
    %c0_176 = arith.constant 0 : index
    %c0_177 = arith.constant 0 : index
    %c0_178 = arith.constant 0 : index
    %431 = vector.load %arg6[%c0_176, %c0_177, %c0_178] : memref<2x2x128xf32, #tpu.memory_space<vmem>>, vector<1x2x128xf32>
    %432 = vector.shape_cast %431 : vector<1x2x128xf32> to vector<2x128xf32>
    %c0_179 = arith.constant 0 : index
    %c0_180 = arith.constant 0 : index
    %c0_181 = arith.constant 0 : index
    %c0_182 = arith.constant 0 : index
    %433 = vector.load %arg7[%c0_179, %c0_180, %c0_181, %c0_182] : memref<2x2x128x32xbf16, #tpu.memory_space<vmem>>, vector<1x2x128x32xbf16>
    %434 = vector.shape_cast %433 : vector<1x2x128x32xbf16> to vector<2x128x32xbf16>
    %cst_183 = arith.constant dense<0.000000e+00> : vector<32xf32>
    %435 = vector.multi_reduction <add>, %424, %cst_183 [0] : vector<8x32xf32> to vector<32xf32>
    %436 = vector.shape_cast %435 : vector<32xf32> to vector<1x32xf32>
    %437 = vector.extract_strided_slice %426 {offsets = [0, 0, 0], sizes = [1, 32, 32], strides = [1, 1, 1]} : vector<6x32x32xbf16> to vector<1x32x32xbf16>
    %438 = vector.shape_cast %437 : vector<1x32x32xbf16> to vector<32x32xbf16>
    %439 = vector.extract_strided_slice %426 {offsets = [1, 0, 0], sizes = [1, 32, 32], strides = [1, 1, 1]} : vector<6x32x32xbf16> to vector<1x32x32xbf16>
    %440 = vector.shape_cast %439 : vector<1x32x32xbf16> to vector<32x32xbf16>
    %441 = vector.extract_strided_slice %428 {offsets = [0, 0], sizes = [1, 32], strides = [1, 1]} : vector<15x32xf32> to vector<1x32xf32>
    %442 = vector.extract_strided_slice %428 {offsets = [1, 0], sizes = [1, 32], strides = [1, 1]} : vector<15x32xf32> to vector<1x32xf32>
    %443 = vector.extract_strided_slice %428 {offsets = [2, 0], sizes = [1, 32], strides = [1, 1]} : vector<15x32xf32> to vector<1x32xf32>
    %444 = vector.extract_strided_slice %428 {offsets = [3, 0], sizes = [1, 32], strides = [1, 1]} : vector<15x32xf32> to vector<1x32xf32>
    %445 = vector.extract_strided_slice %428 {offsets = [4, 0], sizes = [1, 32], strides = [1, 1]} : vector<15x32xf32> to vector<1x32xf32>
    %446 = vector.extract_strided_slice %430 {offsets = [0, 0, 0], sizes = [1, 32, 128], strides = [1, 1, 1]} : vector<2x32x128xbf16> to vector<1x32x128xbf16>
    %447 = vector.shape_cast %446 : vector<1x32x128xbf16> to vector<32x128xbf16>
    %448 = vector.extract_strided_slice %432 {offsets = [0, 0], sizes = [1, 128], strides = [1, 1]} : vector<2x128xf32> to vector<1x128xf32>
    %449 = vector.extract_strided_slice %434 {offsets = [0, 0, 0], sizes = [1, 128, 32], strides = [1, 1, 1]} : vector<2x128x32xbf16> to vector<1x128x32xbf16>
    %450 = vector.shape_cast %449 : vector<1x128x32xbf16> to vector<128x32xbf16>
    %451 = vector.extract_strided_slice %428 {offsets = [5, 0], sizes = [1, 32], strides = [1, 1]} : vector<15x32xf32> to vector<1x32xf32>
    %452 = arith.truncf %436 : vector<1x32xf32> to vector<1x32xbf16>
    %cst_184 = arith.constant dense<0.000000e+00> : vector<1x32xf32>
    %453 = tpu.matmul %452, %438, %cst_184 {dimension_numbers = #tpu.dot_dimension_numbers<[1], [0], [0], [1], [0, 0, 1, 1], [], []>} : vector<1x32xbf16>, vector<32x32xbf16>, vector<1x32xf32> -> vector<1x32xf32>
    %454 = arith.truncf %453 : vector<1x32xf32> to vector<1x32xbf16>
    %cst_185 = arith.constant dense<0.000000e+00> : vector<1x32xf32>
    %455 = tpu.matmul %454, %440, %cst_185 {dimension_numbers = #tpu.dot_dimension_numbers<[1], [0], [0], [1], [0, 0, 1, 1], [], []>} : vector<1x32xbf16>, vector<32x32xbf16>, vector<1x32xf32> -> vector<1x32xf32>
    %456 = arith.addf %455, %441 : vector<1x32xf32>
    %457 = vector.broadcast %456 : vector<1x32xf32> to vector<8x32xf32>
    %458 = arith.addf %457, %424 : vector<8x32xf32>
    %cst_186 = arith.constant dense<0.000000e+00> : vector<8xf32>
    %459 = vector.multi_reduction <add>, %458, %cst_186 [1] : vector<8x32xf32> to vector<8xf32>
    %460 = vector.shape_cast %459 : vector<8xf32> to vector<8x1xf32>
    %cst_187 = arith.constant 3.200000e+01 : f32
    %461 = vector.broadcast %cst_187 : f32 to vector<8x1xf32>
    %462 = arith.divf %460, %461 : vector<8x1xf32>
    %463 = vector.broadcast %462 : vector<8x1xf32> to vector<8x32xf32>
    %464 = arith.subf %458, %463 : vector<8x32xf32>
    %465 = arith.mulf %464, %464 : vector<8x32xf32>
    %cst_188 = arith.constant dense<0.000000e+00> : vector<8xf32>
    %466 = vector.multi_reduction <add>, %465, %cst_188 [1] : vector<8x32xf32> to vector<8xf32>
    %467 = vector.shape_cast %466 : vector<8xf32> to vector<8x1xf32>
    %cst_189 = arith.constant 3.200000e+01 : f32
    %468 = vector.broadcast %cst_189 : f32 to vector<8x1xf32>
    %469 = arith.divf %467, %468 : vector<8x1xf32>
    %cst_190 = arith.constant 9.99999974E-6 : f32
    %470 = vector.broadcast %cst_190 : f32 to vector<8x1xf32>
    %471 = arith.addf %469, %470 : vector<8x1xf32>
    %472 = math.rsqrt %471 : vector<8x1xf32>
    %473 = vector.broadcast %472 : vector<8x1xf32> to vector<8x32xf32>
    %474 = arith.mulf %464, %473 : vector<8x32xf32>
    %475 = vector.broadcast %442 : vector<1x32xf32> to vector<8x32xf32>
    %476 = arith.mulf %474, %475 : vector<8x32xf32>
    %477 = vector.broadcast %443 : vector<1x32xf32> to vector<8x32xf32>
    %478 = arith.addf %476, %477 : vector<8x32xf32>
    %479 = arith.truncf %478 : vector<8x32xf32> to vector<8x32xbf16>
    %cst_191 = arith.constant dense<0.000000e+00> : vector<8x128xf32>
    %480 = tpu.matmul %479, %447, %cst_191 {dimension_numbers = #tpu.dot_dimension_numbers<[1], [0], [0], [1], [0, 0, 1, 1], [], []>} : vector<8x32xbf16>, vector<32x128xbf16>, vector<8x128xf32> -> vector<8x128xf32>
    %481 = vector.broadcast %448 : vector<1x128xf32> to vector<8x128xf32>
    %482 = arith.addf %480, %481 : vector<8x128xf32>
    %cst_192 = arith.constant 0.000000e+00 : f32
    %483 = vector.broadcast %cst_192 : f32 to vector<8x128xf32>
    %484 = arith.maximumf %482, %483 : vector<8x128xf32>
    %485 = arith.truncf %484 : vector<8x128xf32> to vector<8x128xbf16>
    %cst_193 = arith.constant dense<0.000000e+00> : vector<8x32xf32>
    %486 = tpu.matmul %485, %450, %cst_193 {dimension_numbers = #tpu.dot_dimension_numbers<[1], [0], [0], [1], [0, 0, 1, 1], [], []>} : vector<8x128xbf16>, vector<128x32xbf16>, vector<8x32xf32> -> vector<8x32xf32>
    %487 = vector.broadcast %451 : vector<1x32xf32> to vector<8x32xf32>
    %488 = arith.addf %486, %487 : vector<8x32xf32>
    %489 = arith.addf %488, %478 : vector<8x32xf32>
    %cst_194 = arith.constant dense<0.000000e+00> : vector<8xf32>
    %490 = vector.multi_reduction <add>, %489, %cst_194 [1] : vector<8x32xf32> to vector<8xf32>
    %491 = vector.shape_cast %490 : vector<8xf32> to vector<8x1xf32>
    %cst_195 = arith.constant 3.200000e+01 : f32
    %492 = vector.broadcast %cst_195 : f32 to vector<8x1xf32>
    %493 = arith.divf %491, %492 : vector<8x1xf32>
    %494 = vector.broadcast %493 : vector<8x1xf32> to vector<8x32xf32>
    %495 = arith.subf %489, %494 : vector<8x32xf32>
    %496 = arith.mulf %495, %495 : vector<8x32xf32>
    %cst_196 = arith.constant dense<0.000000e+00> : vector<8xf32>
    %497 = vector.multi_reduction <add>, %496, %cst_196 [1] : vector<8x32xf32> to vector<8xf32>
    %498 = vector.shape_cast %497 : vector<8xf32> to vector<8x1xf32>
    %cst_197 = arith.constant 3.200000e+01 : f32
    %499 = vector.broadcast %cst_197 : f32 to vector<8x1xf32>
    %500 = arith.divf %498, %499 : vector<8x1xf32>
    %cst_198 = arith.constant 9.99999974E-6 : f32
    %501 = vector.broadcast %cst_198 : f32 to vector<8x1xf32>
    %502 = arith.addf %500, %501 : vector<8x1xf32>
    %503 = math.rsqrt %502 : vector<8x1xf32>
    %504 = vector.broadcast %503 : vector<8x1xf32> to vector<8x32xf32>
    %505 = arith.mulf %495, %504 : vector<8x32xf32>
    %506 = vector.broadcast %444 : vector<1x32xf32> to vector<8x32xf32>
    %507 = arith.mulf %505, %506 : vector<8x32xf32>
    %508 = vector.broadcast %445 : vector<1x32xf32> to vector<8x32xf32>
    %509 = arith.addf %507, %508 : vector<8x32xf32>
    %c1_199 = arith.constant 1 : index
    %c0_200 = arith.constant 0 : index
    %c0_201 = arith.constant 0 : index
    %c0_202 = arith.constant 0 : index
    %510 = vector.load %arg3[%c1_199, %c0_200, %c0_201, %c0_202] : memref<2x6x32x32xbf16, #tpu.memory_space<vmem>>, vector<1x6x32x32xbf16>
    %511 = vector.shape_cast %510 : vector<1x6x32x32xbf16> to vector<6x32x32xbf16>
    %c1_203 = arith.constant 1 : index
    %c0_204 = arith.constant 0 : index
    %c0_205 = arith.constant 0 : index
    %512 = vector.load %arg4[%c1_203, %c0_204, %c0_205] : memref<2x15x32xf32, #tpu.memory_space<vmem>>, vector<1x15x32xf32>
    %513 = vector.shape_cast %512 : vector<1x15x32xf32> to vector<15x32xf32>
    %c1_206 = arith.constant 1 : index
    %c0_207 = arith.constant 0 : index
    %c0_208 = arith.constant 0 : index
    %c0_209 = arith.constant 0 : index
    %514 = vector.load %arg5[%c1_206, %c0_207, %c0_208, %c0_209] : memref<2x2x32x128xbf16, #tpu.memory_space<vmem>>, vector<1x2x32x128xbf16>
    %515 = vector.shape_cast %514 : vector<1x2x32x128xbf16> to vector<2x32x128xbf16>
    %c1_210 = arith.constant 1 : index
    %c0_211 = arith.constant 0 : index
    %c0_212 = arith.constant 0 : index
    %516 = vector.load %arg6[%c1_210, %c0_211, %c0_212] : memref<2x2x128xf32, #tpu.memory_space<vmem>>, vector<1x2x128xf32>
    %517 = vector.shape_cast %516 : vector<1x2x128xf32> to vector<2x128xf32>
    %c1_213 = arith.constant 1 : index
    %c0_214 = arith.constant 0 : index
    %c0_215 = arith.constant 0 : index
    %c0_216 = arith.constant 0 : index
    %518 = vector.load %arg7[%c1_213, %c0_214, %c0_215, %c0_216] : memref<2x2x128x32xbf16, #tpu.memory_space<vmem>>, vector<1x2x128x32xbf16>
    %519 = vector.shape_cast %518 : vector<1x2x128x32xbf16> to vector<2x128x32xbf16>
    %cst_217 = arith.constant dense<0.000000e+00> : vector<32xf32>
    %520 = vector.multi_reduction <add>, %509, %cst_217 [0] : vector<8x32xf32> to vector<32xf32>
    %521 = vector.shape_cast %520 : vector<32xf32> to vector<1x32xf32>
    %522 = vector.extract_strided_slice %511 {offsets = [0, 0, 0], sizes = [1, 32, 32], strides = [1, 1, 1]} : vector<6x32x32xbf16> to vector<1x32x32xbf16>
    %523 = vector.shape_cast %522 : vector<1x32x32xbf16> to vector<32x32xbf16>
    %524 = vector.extract_strided_slice %511 {offsets = [1, 0, 0], sizes = [1, 32, 32], strides = [1, 1, 1]} : vector<6x32x32xbf16> to vector<1x32x32xbf16>
    %525 = vector.shape_cast %524 : vector<1x32x32xbf16> to vector<32x32xbf16>
    %526 = vector.extract_strided_slice %513 {offsets = [0, 0], sizes = [1, 32], strides = [1, 1]} : vector<15x32xf32> to vector<1x32xf32>
    %527 = vector.extract_strided_slice %513 {offsets = [1, 0], sizes = [1, 32], strides = [1, 1]} : vector<15x32xf32> to vector<1x32xf32>
    %528 = vector.extract_strided_slice %513 {offsets = [2, 0], sizes = [1, 32], strides = [1, 1]} : vector<15x32xf32> to vector<1x32xf32>
    %529 = vector.extract_strided_slice %513 {offsets = [3, 0], sizes = [1, 32], strides = [1, 1]} : vector<15x32xf32> to vector<1x32xf32>
    %530 = vector.extract_strided_slice %513 {offsets = [4, 0], sizes = [1, 32], strides = [1, 1]} : vector<15x32xf32> to vector<1x32xf32>
    %531 = vector.extract_strided_slice %515 {offsets = [0, 0, 0], sizes = [1, 32, 128], strides = [1, 1, 1]} : vector<2x32x128xbf16> to vector<1x32x128xbf16>
    %532 = vector.shape_cast %531 : vector<1x32x128xbf16> to vector<32x128xbf16>
    %533 = vector.extract_strided_slice %517 {offsets = [0, 0], sizes = [1, 128], strides = [1, 1]} : vector<2x128xf32> to vector<1x128xf32>
    %534 = vector.extract_strided_slice %519 {offsets = [0, 0, 0], sizes = [1, 128, 32], strides = [1, 1, 1]} : vector<2x128x32xbf16> to vector<1x128x32xbf16>
    %535 = vector.shape_cast %534 : vector<1x128x32xbf16> to vector<128x32xbf16>
    %536 = vector.extract_strided_slice %513 {offsets = [5, 0], sizes = [1, 32], strides = [1, 1]} : vector<15x32xf32> to vector<1x32xf32>
    %537 = arith.truncf %521 : vector<1x32xf32> to vector<1x32xbf16>
    %cst_218 = arith.constant dense<0.000000e+00> : vector<1x32xf32>
    %538 = tpu.matmul %537, %523, %cst_218 {dimension_numbers = #tpu.dot_dimension_numbers<[1], [0], [0], [1], [0, 0, 1, 1], [], []>} : vector<1x32xbf16>, vector<32x32xbf16>, vector<1x32xf32> -> vector<1x32xf32>
    %539 = arith.truncf %538 : vector<1x32xf32> to vector<1x32xbf16>
    %cst_219 = arith.constant dense<0.000000e+00> : vector<1x32xf32>
    %540 = tpu.matmul %539, %525, %cst_219 {dimension_numbers = #tpu.dot_dimension_numbers<[1], [0], [0], [1], [0, 0, 1, 1], [], []>} : vector<1x32xbf16>, vector<32x32xbf16>, vector<1x32xf32> -> vector<1x32xf32>
    %541 = arith.addf %540, %526 : vector<1x32xf32>
    %542 = vector.broadcast %541 : vector<1x32xf32> to vector<8x32xf32>
    %543 = arith.addf %542, %509 : vector<8x32xf32>
    %cst_220 = arith.constant dense<0.000000e+00> : vector<8xf32>
    %544 = vector.multi_reduction <add>, %543, %cst_220 [1] : vector<8x32xf32> to vector<8xf32>
    %545 = vector.shape_cast %544 : vector<8xf32> to vector<8x1xf32>
    %cst_221 = arith.constant 3.200000e+01 : f32
    %546 = vector.broadcast %cst_221 : f32 to vector<8x1xf32>
    %547 = arith.divf %545, %546 : vector<8x1xf32>
    %548 = vector.broadcast %547 : vector<8x1xf32> to vector<8x32xf32>
    %549 = arith.subf %543, %548 : vector<8x32xf32>
    %550 = arith.mulf %549, %549 : vector<8x32xf32>
    %cst_222 = arith.constant dense<0.000000e+00> : vector<8xf32>
    %551 = vector.multi_reduction <add>, %550, %cst_222 [1] : vector<8x32xf32> to vector<8xf32>
    %552 = vector.shape_cast %551 : vector<8xf32> to vector<8x1xf32>
    %cst_223 = arith.constant 3.200000e+01 : f32
    %553 = vector.broadcast %cst_223 : f32 to vector<8x1xf32>
    %554 = arith.divf %552, %553 : vector<8x1xf32>
    %cst_224 = arith.constant 9.99999974E-6 : f32
    %555 = vector.broadcast %cst_224 : f32 to vector<8x1xf32>
    %556 = arith.addf %554, %555 : vector<8x1xf32>
    %557 = math.rsqrt %556 : vector<8x1xf32>
    %558 = vector.broadcast %557 : vector<8x1xf32> to vector<8x32xf32>
    %559 = arith.mulf %549, %558 : vector<8x32xf32>
    %560 = vector.broadcast %527 : vector<1x32xf32> to vector<8x32xf32>
    %561 = arith.mulf %559, %560 : vector<8x32xf32>
    %562 = vector.broadcast %528 : vector<1x32xf32> to vector<8x32xf32>
    %563 = arith.addf %561, %562 : vector<8x32xf32>
    %564 = arith.truncf %563 : vector<8x32xf32> to vector<8x32xbf16>
    %cst_225 = arith.constant dense<0.000000e+00> : vector<8x128xf32>
    %565 = tpu.matmul %564, %532, %cst_225 {dimension_numbers = #tpu.dot_dimension_numbers<[1], [0], [0], [1], [0, 0, 1, 1], [], []>} : vector<8x32xbf16>, vector<32x128xbf16>, vector<8x128xf32> -> vector<8x128xf32>
    %566 = vector.broadcast %533 : vector<1x128xf32> to vector<8x128xf32>
    %567 = arith.addf %565, %566 : vector<8x128xf32>
    %cst_226 = arith.constant 0.000000e+00 : f32
    %568 = vector.broadcast %cst_226 : f32 to vector<8x128xf32>
    %569 = arith.maximumf %567, %568 : vector<8x128xf32>
    %570 = arith.truncf %569 : vector<8x128xf32> to vector<8x128xbf16>
    %cst_227 = arith.constant dense<0.000000e+00> : vector<8x32xf32>
    %571 = tpu.matmul %570, %535, %cst_227 {dimension_numbers = #tpu.dot_dimension_numbers<[1], [0], [0], [1], [0, 0, 1, 1], [], []>} : vector<8x128xbf16>, vector<128x32xbf16>, vector<8x32xf32> -> vector<8x32xf32>
    %572 = vector.broadcast %536 : vector<1x32xf32> to vector<8x32xf32>
    %573 = arith.addf %571, %572 : vector<8x32xf32>
    %574 = arith.addf %573, %563 : vector<8x32xf32>
    %cst_228 = arith.constant dense<0.000000e+00> : vector<8xf32>
    %575 = vector.multi_reduction <add>, %574, %cst_228 [1] : vector<8x32xf32> to vector<8xf32>
    %576 = vector.shape_cast %575 : vector<8xf32> to vector<8x1xf32>
    %cst_229 = arith.constant 3.200000e+01 : f32
    %577 = vector.broadcast %cst_229 : f32 to vector<8x1xf32>
    %578 = arith.divf %576, %577 : vector<8x1xf32>
    %579 = vector.broadcast %578 : vector<8x1xf32> to vector<8x32xf32>
    %580 = arith.subf %574, %579 : vector<8x32xf32>
    %581 = arith.mulf %580, %580 : vector<8x32xf32>
    %cst_230 = arith.constant dense<0.000000e+00> : vector<8xf32>
    %582 = vector.multi_reduction <add>, %581, %cst_230 [1] : vector<8x32xf32> to vector<8xf32>
    %583 = vector.shape_cast %582 : vector<8xf32> to vector<8x1xf32>
    %cst_231 = arith.constant 3.200000e+01 : f32
    %584 = vector.broadcast %cst_231 : f32 to vector<8x1xf32>
    %585 = arith.divf %583, %584 : vector<8x1xf32>
    %cst_232 = arith.constant 9.99999974E-6 : f32
    %586 = vector.broadcast %cst_232 : f32 to vector<8x1xf32>
    %587 = arith.addf %585, %586 : vector<8x1xf32>
    %588 = math.rsqrt %587 : vector<8x1xf32>
    %589 = vector.broadcast %588 : vector<8x1xf32> to vector<8x32xf32>
    %590 = arith.mulf %580, %589 : vector<8x32xf32>
    %591 = vector.broadcast %529 : vector<1x32xf32> to vector<8x32xf32>
    %592 = arith.mulf %590, %591 : vector<8x32xf32>
    %593 = vector.broadcast %530 : vector<1x32xf32> to vector<8x32xf32>
    %594 = arith.addf %592, %593 : vector<8x32xf32>
    %cst_233 = arith.constant dense<0.000000e+00> : vector<32xf32>
    %595 = vector.multi_reduction <add>, %594, %cst_233 [0] : vector<8x32xf32> to vector<32xf32>
    %596 = vector.shape_cast %595 : vector<32xf32> to vector<1x32xf32>
    %c1_234 = arith.constant 1 : index
    %c0_235 = arith.constant 0 : index
    %c0_236 = arith.constant 0 : index
    %597 = vector.load %arg2[%c1_234, %c0_235, %c0_236] : memref<2x8x32xf32, #tpu.memory_space<vmem>>, vector<1x8x32xf32>
    %598 = vector.shape_cast %597 : vector<1x8x32xf32> to vector<8x32xf32>
    %c0_237 = arith.constant 0 : index
    %c0_238 = arith.constant 0 : index
    %c0_239 = arith.constant 0 : index
    %c0_240 = arith.constant 0 : index
    %599 = vector.load %arg3[%c0_237, %c0_238, %c0_239, %c0_240] : memref<2x6x32x32xbf16, #tpu.memory_space<vmem>>, vector<1x6x32x32xbf16>
    %600 = vector.shape_cast %599 : vector<1x6x32x32xbf16> to vector<6x32x32xbf16>
    %c0_241 = arith.constant 0 : index
    %c0_242 = arith.constant 0 : index
    %c0_243 = arith.constant 0 : index
    %601 = vector.load %arg4[%c0_241, %c0_242, %c0_243] : memref<2x15x32xf32, #tpu.memory_space<vmem>>, vector<1x15x32xf32>
    %602 = vector.shape_cast %601 : vector<1x15x32xf32> to vector<15x32xf32>
    %c0_244 = arith.constant 0 : index
    %c0_245 = arith.constant 0 : index
    %c0_246 = arith.constant 0 : index
    %c0_247 = arith.constant 0 : index
    %603 = vector.load %arg5[%c0_244, %c0_245, %c0_246, %c0_247] : memref<2x2x32x128xbf16, #tpu.memory_space<vmem>>, vector<1x2x32x128xbf16>
    %604 = vector.shape_cast %603 : vector<1x2x32x128xbf16> to vector<2x32x128xbf16>
    %c0_248 = arith.constant 0 : index
    %c0_249 = arith.constant 0 : index
    %c0_250 = arith.constant 0 : index
    %605 = vector.load %arg6[%c0_248, %c0_249, %c0_250] : memref<2x2x128xf32, #tpu.memory_space<vmem>>, vector<1x2x128xf32>
    %606 = vector.shape_cast %605 : vector<1x2x128xf32> to vector<2x128xf32>
    %c0_251 = arith.constant 0 : index
    %c0_252 = arith.constant 0 : index
    %c0_253 = arith.constant 0 : index
    %c0_254 = arith.constant 0 : index
    %607 = vector.load %arg7[%c0_251, %c0_252, %c0_253, %c0_254] : memref<2x2x128x32xbf16, #tpu.memory_space<vmem>>, vector<1x2x128x32xbf16>
    %608 = vector.shape_cast %607 : vector<1x2x128x32xbf16> to vector<2x128x32xbf16>
    %cst_255 = arith.constant dense<0.000000e+00> : vector<32xf32>
    %609 = vector.multi_reduction <add>, %598, %cst_255 [0] : vector<8x32xf32> to vector<32xf32>
    %610 = vector.shape_cast %609 : vector<32xf32> to vector<1x32xf32>
    %611 = vector.extract_strided_slice %600 {offsets = [2, 0, 0], sizes = [1, 32, 32], strides = [1, 1, 1]} : vector<6x32x32xbf16> to vector<1x32x32xbf16>
    %612 = vector.shape_cast %611 : vector<1x32x32xbf16> to vector<32x32xbf16>
    %613 = vector.extract_strided_slice %600 {offsets = [3, 0, 0], sizes = [1, 32, 32], strides = [1, 1, 1]} : vector<6x32x32xbf16> to vector<1x32x32xbf16>
    %614 = vector.shape_cast %613 : vector<1x32x32xbf16> to vector<32x32xbf16>
    %615 = vector.extract_strided_slice %602 {offsets = [6, 0], sizes = [1, 32], strides = [1, 1]} : vector<15x32xf32> to vector<1x32xf32>
    %616 = arith.truncf %610 : vector<1x32xf32> to vector<1x32xbf16>
    %cst_256 = arith.constant dense<0.000000e+00> : vector<1x32xf32>
    %617 = tpu.matmul %616, %612, %cst_256 {dimension_numbers = #tpu.dot_dimension_numbers<[1], [0], [0], [1], [0, 0, 1, 1], [], []>} : vector<1x32xbf16>, vector<32x32xbf16>, vector<1x32xf32> -> vector<1x32xf32>
    %618 = arith.truncf %617 : vector<1x32xf32> to vector<1x32xbf16>
    %cst_257 = arith.constant dense<0.000000e+00> : vector<1x32xf32>
    %619 = tpu.matmul %618, %614, %cst_257 {dimension_numbers = #tpu.dot_dimension_numbers<[1], [0], [0], [1], [0, 0, 1, 1], [], []>} : vector<1x32xbf16>, vector<32x32xbf16>, vector<1x32xf32> -> vector<1x32xf32>
    %620 = arith.addf %619, %615 : vector<1x32xf32>
    %621 = vector.broadcast %620 : vector<1x32xf32> to vector<8x32xf32>
    %622 = arith.addf %621, %598 : vector<8x32xf32>
    %623 = vector.extract_strided_slice %602 {offsets = [7, 0], sizes = [1, 32], strides = [1, 1]} : vector<15x32xf32> to vector<1x32xf32>
    %624 = vector.extract_strided_slice %602 {offsets = [8, 0], sizes = [1, 32], strides = [1, 1]} : vector<15x32xf32> to vector<1x32xf32>
    %cst_258 = arith.constant dense<0.000000e+00> : vector<8xf32>
    %625 = vector.multi_reduction <add>, %622, %cst_258 [1] : vector<8x32xf32> to vector<8xf32>
    %626 = vector.shape_cast %625 : vector<8xf32> to vector<8x1xf32>
    %cst_259 = arith.constant 3.200000e+01 : f32
    %627 = vector.broadcast %cst_259 : f32 to vector<8x1xf32>
    %628 = arith.divf %626, %627 : vector<8x1xf32>
    %629 = vector.broadcast %628 : vector<8x1xf32> to vector<8x32xf32>
    %630 = arith.subf %622, %629 : vector<8x32xf32>
    %631 = arith.mulf %630, %630 : vector<8x32xf32>
    %cst_260 = arith.constant dense<0.000000e+00> : vector<8xf32>
    %632 = vector.multi_reduction <add>, %631, %cst_260 [1] : vector<8x32xf32> to vector<8xf32>
    %633 = vector.shape_cast %632 : vector<8xf32> to vector<8x1xf32>
    %cst_261 = arith.constant 3.200000e+01 : f32
    %634 = vector.broadcast %cst_261 : f32 to vector<8x1xf32>
    %635 = arith.divf %633, %634 : vector<8x1xf32>
    %cst_262 = arith.constant 9.99999974E-6 : f32
    %636 = vector.broadcast %cst_262 : f32 to vector<8x1xf32>
    %637 = arith.addf %635, %636 : vector<8x1xf32>
    %638 = math.rsqrt %637 : vector<8x1xf32>
    %639 = vector.broadcast %638 : vector<8x1xf32> to vector<8x32xf32>
    %640 = arith.mulf %630, %639 : vector<8x32xf32>
    %641 = vector.broadcast %623 : vector<1x32xf32> to vector<8x32xf32>
    %642 = arith.mulf %640, %641 : vector<8x32xf32>
    %643 = vector.broadcast %624 : vector<1x32xf32> to vector<8x32xf32>
    %644 = arith.addf %642, %643 : vector<8x32xf32>
    %645 = vector.extract_strided_slice %600 {offsets = [4, 0, 0], sizes = [1, 32, 32], strides = [1, 1, 1]} : vector<6x32x32xbf16> to vector<1x32x32xbf16>
    %646 = vector.shape_cast %645 : vector<1x32x32xbf16> to vector<32x32xbf16>
    %647 = vector.extract_strided_slice %600 {offsets = [5, 0, 0], sizes = [1, 32, 32], strides = [1, 1, 1]} : vector<6x32x32xbf16> to vector<1x32x32xbf16>
    %648 = vector.shape_cast %647 : vector<1x32x32xbf16> to vector<32x32xbf16>
    %649 = vector.extract_strided_slice %602 {offsets = [9, 0], sizes = [1, 32], strides = [1, 1]} : vector<15x32xf32> to vector<1x32xf32>
    %650 = vector.extract_strided_slice %602 {offsets = [10, 0], sizes = [1, 32], strides = [1, 1]} : vector<15x32xf32> to vector<1x32xf32>
    %651 = vector.extract_strided_slice %602 {offsets = [11, 0], sizes = [1, 32], strides = [1, 1]} : vector<15x32xf32> to vector<1x32xf32>
    %652 = vector.extract_strided_slice %602 {offsets = [12, 0], sizes = [1, 32], strides = [1, 1]} : vector<15x32xf32> to vector<1x32xf32>
    %653 = vector.extract_strided_slice %602 {offsets = [13, 0], sizes = [1, 32], strides = [1, 1]} : vector<15x32xf32> to vector<1x32xf32>
    %654 = vector.extract_strided_slice %604 {offsets = [1, 0, 0], sizes = [1, 32, 128], strides = [1, 1, 1]} : vector<2x32x128xbf16> to vector<1x32x128xbf16>
    %655 = vector.shape_cast %654 : vector<1x32x128xbf16> to vector<32x128xbf16>
    %656 = vector.extract_strided_slice %606 {offsets = [1, 0], sizes = [1, 128], strides = [1, 1]} : vector<2x128xf32> to vector<1x128xf32>
    %657 = vector.extract_strided_slice %608 {offsets = [1, 0, 0], sizes = [1, 128, 32], strides = [1, 1, 1]} : vector<2x128x32xbf16> to vector<1x128x32xbf16>
    %658 = vector.shape_cast %657 : vector<1x128x32xbf16> to vector<128x32xbf16>
    %659 = vector.extract_strided_slice %602 {offsets = [14, 0], sizes = [1, 32], strides = [1, 1]} : vector<15x32xf32> to vector<1x32xf32>
    %660 = arith.truncf %596 : vector<1x32xf32> to vector<1x32xbf16>
    %cst_263 = arith.constant dense<0.000000e+00> : vector<1x32xf32>
    %661 = tpu.matmul %660, %646, %cst_263 {dimension_numbers = #tpu.dot_dimension_numbers<[1], [0], [0], [1], [0, 0, 1, 1], [], []>} : vector<1x32xbf16>, vector<32x32xbf16>, vector<1x32xf32> -> vector<1x32xf32>
    %662 = arith.truncf %661 : vector<1x32xf32> to vector<1x32xbf16>
    %cst_264 = arith.constant dense<0.000000e+00> : vector<1x32xf32>
    %663 = tpu.matmul %662, %648, %cst_264 {dimension_numbers = #tpu.dot_dimension_numbers<[1], [0], [0], [1], [0, 0, 1, 1], [], []>} : vector<1x32xbf16>, vector<32x32xbf16>, vector<1x32xf32> -> vector<1x32xf32>
    %664 = arith.addf %663, %649 : vector<1x32xf32>
    %665 = vector.broadcast %664 : vector<1x32xf32> to vector<8x32xf32>
    %666 = arith.addf %665, %644 : vector<8x32xf32>
    %cst_265 = arith.constant dense<0.000000e+00> : vector<8xf32>
    %667 = vector.multi_reduction <add>, %666, %cst_265 [1] : vector<8x32xf32> to vector<8xf32>
    %668 = vector.shape_cast %667 : vector<8xf32> to vector<8x1xf32>
    %cst_266 = arith.constant 3.200000e+01 : f32
    %669 = vector.broadcast %cst_266 : f32 to vector<8x1xf32>
    %670 = arith.divf %668, %669 : vector<8x1xf32>
    %671 = vector.broadcast %670 : vector<8x1xf32> to vector<8x32xf32>
    %672 = arith.subf %666, %671 : vector<8x32xf32>
    %673 = arith.mulf %672, %672 : vector<8x32xf32>
    %cst_267 = arith.constant dense<0.000000e+00> : vector<8xf32>
    %674 = vector.multi_reduction <add>, %673, %cst_267 [1] : vector<8x32xf32> to vector<8xf32>
    %675 = vector.shape_cast %674 : vector<8xf32> to vector<8x1xf32>
    %cst_268 = arith.constant 3.200000e+01 : f32
    %676 = vector.broadcast %cst_268 : f32 to vector<8x1xf32>
    %677 = arith.divf %675, %676 : vector<8x1xf32>
    %cst_269 = arith.constant 9.99999974E-6 : f32
    %678 = vector.broadcast %cst_269 : f32 to vector<8x1xf32>
    %679 = arith.addf %677, %678 : vector<8x1xf32>
    %680 = math.rsqrt %679 : vector<8x1xf32>
    %681 = vector.broadcast %680 : vector<8x1xf32> to vector<8x32xf32>
    %682 = arith.mulf %672, %681 : vector<8x32xf32>
    %683 = vector.broadcast %650 : vector<1x32xf32> to vector<8x32xf32>
    %684 = arith.mulf %682, %683 : vector<8x32xf32>
    %685 = vector.broadcast %651 : vector<1x32xf32> to vector<8x32xf32>
    %686 = arith.addf %684, %685 : vector<8x32xf32>
    %687 = arith.truncf %686 : vector<8x32xf32> to vector<8x32xbf16>
    %cst_270 = arith.constant dense<0.000000e+00> : vector<8x128xf32>
    %688 = tpu.matmul %687, %655, %cst_270 {dimension_numbers = #tpu.dot_dimension_numbers<[1], [0], [0], [1], [0, 0, 1, 1], [], []>} : vector<8x32xbf16>, vector<32x128xbf16>, vector<8x128xf32> -> vector<8x128xf32>
    %689 = vector.broadcast %656 : vector<1x128xf32> to vector<8x128xf32>
    %690 = arith.addf %688, %689 : vector<8x128xf32>
    %cst_271 = arith.constant 0.000000e+00 : f32
    %691 = vector.broadcast %cst_271 : f32 to vector<8x128xf32>
    %692 = arith.maximumf %690, %691 : vector<8x128xf32>
    %693 = arith.truncf %692 : vector<8x128xf32> to vector<8x128xbf16>
    %cst_272 = arith.constant dense<0.000000e+00> : vector<8x32xf32>
    %694 = tpu.matmul %693, %658, %cst_272 {dimension_numbers = #tpu.dot_dimension_numbers<[1], [0], [0], [1], [0, 0, 1, 1], [], []>} : vector<8x128xbf16>, vector<128x32xbf16>, vector<8x32xf32> -> vector<8x32xf32>
    %695 = vector.broadcast %659 : vector<1x32xf32> to vector<8x32xf32>
    %696 = arith.addf %694, %695 : vector<8x32xf32>
    %697 = arith.addf %696, %686 : vector<8x32xf32>
    %cst_273 = arith.constant dense<0.000000e+00> : vector<8xf32>
    %698 = vector.multi_reduction <add>, %697, %cst_273 [1] : vector<8x32xf32> to vector<8xf32>
    %699 = vector.shape_cast %698 : vector<8xf32> to vector<8x1xf32>
    %cst_274 = arith.constant 3.200000e+01 : f32
    %700 = vector.broadcast %cst_274 : f32 to vector<8x1xf32>
    %701 = arith.divf %699, %700 : vector<8x1xf32>
    %702 = vector.broadcast %701 : vector<8x1xf32> to vector<8x32xf32>
    %703 = arith.subf %697, %702 : vector<8x32xf32>
    %704 = arith.mulf %703, %703 : vector<8x32xf32>
    %cst_275 = arith.constant dense<0.000000e+00> : vector<8xf32>
    %705 = vector.multi_reduction <add>, %704, %cst_275 [1] : vector<8x32xf32> to vector<8xf32>
    %706 = vector.shape_cast %705 : vector<8xf32> to vector<8x1xf32>
    %cst_276 = arith.constant 3.200000e+01 : f32
    %707 = vector.broadcast %cst_276 : f32 to vector<8x1xf32>
    %708 = arith.divf %706, %707 : vector<8x1xf32>
    %cst_277 = arith.constant 9.99999974E-6 : f32
    %709 = vector.broadcast %cst_277 : f32 to vector<8x1xf32>
    %710 = arith.addf %708, %709 : vector<8x1xf32>
    %711 = math.rsqrt %710 : vector<8x1xf32>
    %712 = vector.broadcast %711 : vector<8x1xf32> to vector<8x32xf32>
    %713 = arith.mulf %703, %712 : vector<8x32xf32>
    %714 = vector.broadcast %652 : vector<1x32xf32> to vector<8x32xf32>
    %715 = arith.mulf %713, %714 : vector<8x32xf32>
    %716 = vector.broadcast %653 : vector<1x32xf32> to vector<8x32xf32>
    %717 = arith.addf %715, %716 : vector<8x32xf32>
    %c1_278 = arith.constant 1 : index
    %c0_279 = arith.constant 0 : index
    %c0_280 = arith.constant 0 : index
    %c0_281 = arith.constant 0 : index
    %718 = vector.load %arg3[%c1_278, %c0_279, %c0_280, %c0_281] : memref<2x6x32x32xbf16, #tpu.memory_space<vmem>>, vector<1x6x32x32xbf16>
    %719 = vector.shape_cast %718 : vector<1x6x32x32xbf16> to vector<6x32x32xbf16>
    %c1_282 = arith.constant 1 : index
    %c0_283 = arith.constant 0 : index
    %c0_284 = arith.constant 0 : index
    %720 = vector.load %arg4[%c1_282, %c0_283, %c0_284] : memref<2x15x32xf32, #tpu.memory_space<vmem>>, vector<1x15x32xf32>
    %721 = vector.shape_cast %720 : vector<1x15x32xf32> to vector<15x32xf32>
    %c1_285 = arith.constant 1 : index
    %c0_286 = arith.constant 0 : index
    %c0_287 = arith.constant 0 : index
    %c0_288 = arith.constant 0 : index
    %722 = vector.load %arg5[%c1_285, %c0_286, %c0_287, %c0_288] : memref<2x2x32x128xbf16, #tpu.memory_space<vmem>>, vector<1x2x32x128xbf16>
    %723 = vector.shape_cast %722 : vector<1x2x32x128xbf16> to vector<2x32x128xbf16>
    %c1_289 = arith.constant 1 : index
    %c0_290 = arith.constant 0 : index
    %c0_291 = arith.constant 0 : index
    %724 = vector.load %arg6[%c1_289, %c0_290, %c0_291] : memref<2x2x128xf32, #tpu.memory_space<vmem>>, vector<1x2x128xf32>
    %725 = vector.shape_cast %724 : vector<1x2x128xf32> to vector<2x128xf32>
    %c1_292 = arith.constant 1 : index
    %c0_293 = arith.constant 0 : index
    %c0_294 = arith.constant 0 : index
    %c0_295 = arith.constant 0 : index
    %726 = vector.load %arg7[%c1_292, %c0_293, %c0_294, %c0_295] : memref<2x2x128x32xbf16, #tpu.memory_space<vmem>>, vector<1x2x128x32xbf16>
    %727 = vector.shape_cast %726 : vector<1x2x128x32xbf16> to vector<2x128x32xbf16>
    %cst_296 = arith.constant dense<0.000000e+00> : vector<32xf32>
    %728 = vector.multi_reduction <add>, %717, %cst_296 [0] : vector<8x32xf32> to vector<32xf32>
    %729 = vector.shape_cast %728 : vector<32xf32> to vector<1x32xf32>
    %730 = vector.extract_strided_slice %719 {offsets = [2, 0, 0], sizes = [1, 32, 32], strides = [1, 1, 1]} : vector<6x32x32xbf16> to vector<1x32x32xbf16>
    %731 = vector.shape_cast %730 : vector<1x32x32xbf16> to vector<32x32xbf16>
    %732 = vector.extract_strided_slice %719 {offsets = [3, 0, 0], sizes = [1, 32, 32], strides = [1, 1, 1]} : vector<6x32x32xbf16> to vector<1x32x32xbf16>
    %733 = vector.shape_cast %732 : vector<1x32x32xbf16> to vector<32x32xbf16>
    %734 = vector.extract_strided_slice %721 {offsets = [6, 0], sizes = [1, 32], strides = [1, 1]} : vector<15x32xf32> to vector<1x32xf32>
    %735 = arith.truncf %729 : vector<1x32xf32> to vector<1x32xbf16>
    %cst_297 = arith.constant dense<0.000000e+00> : vector<1x32xf32>
    %736 = tpu.matmul %735, %731, %cst_297 {dimension_numbers = #tpu.dot_dimension_numbers<[1], [0], [0], [1], [0, 0, 1, 1], [], []>} : vector<1x32xbf16>, vector<32x32xbf16>, vector<1x32xf32> -> vector<1x32xf32>
    %737 = arith.truncf %736 : vector<1x32xf32> to vector<1x32xbf16>
    %cst_298 = arith.constant dense<0.000000e+00> : vector<1x32xf32>
    %738 = tpu.matmul %737, %733, %cst_298 {dimension_numbers = #tpu.dot_dimension_numbers<[1], [0], [0], [1], [0, 0, 1, 1], [], []>} : vector<1x32xbf16>, vector<32x32xbf16>, vector<1x32xf32> -> vector<1x32xf32>
    %739 = arith.addf %738, %734 : vector<1x32xf32>
    %740 = vector.broadcast %739 : vector<1x32xf32> to vector<8x32xf32>
    %741 = arith.addf %740, %717 : vector<8x32xf32>
    %742 = vector.extract_strided_slice %721 {offsets = [7, 0], sizes = [1, 32], strides = [1, 1]} : vector<15x32xf32> to vector<1x32xf32>
    %743 = vector.extract_strided_slice %721 {offsets = [8, 0], sizes = [1, 32], strides = [1, 1]} : vector<15x32xf32> to vector<1x32xf32>
    %cst_299 = arith.constant dense<0.000000e+00> : vector<8xf32>
    %744 = vector.multi_reduction <add>, %741, %cst_299 [1] : vector<8x32xf32> to vector<8xf32>
    %745 = vector.shape_cast %744 : vector<8xf32> to vector<8x1xf32>
    %cst_300 = arith.constant 3.200000e+01 : f32
    %746 = vector.broadcast %cst_300 : f32 to vector<8x1xf32>
    %747 = arith.divf %745, %746 : vector<8x1xf32>
    %748 = vector.broadcast %747 : vector<8x1xf32> to vector<8x32xf32>
    %749 = arith.subf %741, %748 : vector<8x32xf32>
    %750 = arith.mulf %749, %749 : vector<8x32xf32>
    %cst_301 = arith.constant dense<0.000000e+00> : vector<8xf32>
    %751 = vector.multi_reduction <add>, %750, %cst_301 [1] : vector<8x32xf32> to vector<8xf32>
    %752 = vector.shape_cast %751 : vector<8xf32> to vector<8x1xf32>
    %cst_302 = arith.constant 3.200000e+01 : f32
    %753 = vector.broadcast %cst_302 : f32 to vector<8x1xf32>
    %754 = arith.divf %752, %753 : vector<8x1xf32>
    %cst_303 = arith.constant 9.99999974E-6 : f32
    %755 = vector.broadcast %cst_303 : f32 to vector<8x1xf32>
    %756 = arith.addf %754, %755 : vector<8x1xf32>
    %757 = math.rsqrt %756 : vector<8x1xf32>
    %758 = vector.broadcast %757 : vector<8x1xf32> to vector<8x32xf32>
    %759 = arith.mulf %749, %758 : vector<8x32xf32>
    %760 = vector.broadcast %742 : vector<1x32xf32> to vector<8x32xf32>
    %761 = arith.mulf %759, %760 : vector<8x32xf32>
    %762 = vector.broadcast %743 : vector<1x32xf32> to vector<8x32xf32>
    %763 = arith.addf %761, %762 : vector<8x32xf32>
    %764 = vector.extract_strided_slice %719 {offsets = [4, 0, 0], sizes = [1, 32, 32], strides = [1, 1, 1]} : vector<6x32x32xbf16> to vector<1x32x32xbf16>
    %765 = vector.shape_cast %764 : vector<1x32x32xbf16> to vector<32x32xbf16>
    %766 = vector.extract_strided_slice %719 {offsets = [5, 0, 0], sizes = [1, 32, 32], strides = [1, 1, 1]} : vector<6x32x32xbf16> to vector<1x32x32xbf16>
    %767 = vector.shape_cast %766 : vector<1x32x32xbf16> to vector<32x32xbf16>
    %768 = vector.extract_strided_slice %721 {offsets = [9, 0], sizes = [1, 32], strides = [1, 1]} : vector<15x32xf32> to vector<1x32xf32>
    %769 = vector.extract_strided_slice %721 {offsets = [10, 0], sizes = [1, 32], strides = [1, 1]} : vector<15x32xf32> to vector<1x32xf32>
    %770 = vector.extract_strided_slice %721 {offsets = [11, 0], sizes = [1, 32], strides = [1, 1]} : vector<15x32xf32> to vector<1x32xf32>
    %771 = vector.extract_strided_slice %721 {offsets = [12, 0], sizes = [1, 32], strides = [1, 1]} : vector<15x32xf32> to vector<1x32xf32>
    %772 = vector.extract_strided_slice %721 {offsets = [13, 0], sizes = [1, 32], strides = [1, 1]} : vector<15x32xf32> to vector<1x32xf32>
    %773 = vector.extract_strided_slice %723 {offsets = [1, 0, 0], sizes = [1, 32, 128], strides = [1, 1, 1]} : vector<2x32x128xbf16> to vector<1x32x128xbf16>
    %774 = vector.shape_cast %773 : vector<1x32x128xbf16> to vector<32x128xbf16>
    %775 = vector.extract_strided_slice %725 {offsets = [1, 0], sizes = [1, 128], strides = [1, 1]} : vector<2x128xf32> to vector<1x128xf32>
    %776 = vector.extract_strided_slice %727 {offsets = [1, 0, 0], sizes = [1, 128, 32], strides = [1, 1, 1]} : vector<2x128x32xbf16> to vector<1x128x32xbf16>
    %777 = vector.shape_cast %776 : vector<1x128x32xbf16> to vector<128x32xbf16>
    %778 = vector.extract_strided_slice %721 {offsets = [14, 0], sizes = [1, 32], strides = [1, 1]} : vector<15x32xf32> to vector<1x32xf32>
    %779 = arith.truncf %596 : vector<1x32xf32> to vector<1x32xbf16>
    %cst_304 = arith.constant dense<0.000000e+00> : vector<1x32xf32>
    %780 = tpu.matmul %779, %765, %cst_304 {dimension_numbers = #tpu.dot_dimension_numbers<[1], [0], [0], [1], [0, 0, 1, 1], [], []>} : vector<1x32xbf16>, vector<32x32xbf16>, vector<1x32xf32> -> vector<1x32xf32>
    %781 = arith.truncf %780 : vector<1x32xf32> to vector<1x32xbf16>
    %cst_305 = arith.constant dense<0.000000e+00> : vector<1x32xf32>
    %782 = tpu.matmul %781, %767, %cst_305 {dimension_numbers = #tpu.dot_dimension_numbers<[1], [0], [0], [1], [0, 0, 1, 1], [], []>} : vector<1x32xbf16>, vector<32x32xbf16>, vector<1x32xf32> -> vector<1x32xf32>
    %783 = arith.addf %782, %768 : vector<1x32xf32>
    %784 = vector.broadcast %783 : vector<1x32xf32> to vector<8x32xf32>
    %785 = arith.addf %784, %763 : vector<8x32xf32>
    %cst_306 = arith.constant dense<0.000000e+00> : vector<8xf32>
    %786 = vector.multi_reduction <add>, %785, %cst_306 [1] : vector<8x32xf32> to vector<8xf32>
    %787 = vector.shape_cast %786 : vector<8xf32> to vector<8x1xf32>
    %cst_307 = arith.constant 3.200000e+01 : f32
    %788 = vector.broadcast %cst_307 : f32 to vector<8x1xf32>
    %789 = arith.divf %787, %788 : vector<8x1xf32>
    %790 = vector.broadcast %789 : vector<8x1xf32> to vector<8x32xf32>
    %791 = arith.subf %785, %790 : vector<8x32xf32>
    %792 = arith.mulf %791, %791 : vector<8x32xf32>
    %cst_308 = arith.constant dense<0.000000e+00> : vector<8xf32>
    %793 = vector.multi_reduction <add>, %792, %cst_308 [1] : vector<8x32xf32> to vector<8xf32>
    %794 = vector.shape_cast %793 : vector<8xf32> to vector<8x1xf32>
    %cst_309 = arith.constant 3.200000e+01 : f32
    %795 = vector.broadcast %cst_309 : f32 to vector<8x1xf32>
    %796 = arith.divf %794, %795 : vector<8x1xf32>
    %cst_310 = arith.constant 9.99999974E-6 : f32
    %797 = vector.broadcast %cst_310 : f32 to vector<8x1xf32>
    %798 = arith.addf %796, %797 : vector<8x1xf32>
    %799 = math.rsqrt %798 : vector<8x1xf32>
    %800 = vector.broadcast %799 : vector<8x1xf32> to vector<8x32xf32>
    %801 = arith.mulf %791, %800 : vector<8x32xf32>
    %802 = vector.broadcast %769 : vector<1x32xf32> to vector<8x32xf32>
    %803 = arith.mulf %801, %802 : vector<8x32xf32>
    %804 = vector.broadcast %770 : vector<1x32xf32> to vector<8x32xf32>
    %805 = arith.addf %803, %804 : vector<8x32xf32>
    %806 = arith.truncf %805 : vector<8x32xf32> to vector<8x32xbf16>
    %cst_311 = arith.constant dense<0.000000e+00> : vector<8x128xf32>
    %807 = tpu.matmul %806, %774, %cst_311 {dimension_numbers = #tpu.dot_dimension_numbers<[1], [0], [0], [1], [0, 0, 1, 1], [], []>} : vector<8x32xbf16>, vector<32x128xbf16>, vector<8x128xf32> -> vector<8x128xf32>
    %808 = vector.broadcast %775 : vector<1x128xf32> to vector<8x128xf32>
    %809 = arith.addf %807, %808 : vector<8x128xf32>
    %cst_312 = arith.constant 0.000000e+00 : f32
    %810 = vector.broadcast %cst_312 : f32 to vector<8x128xf32>
    %811 = arith.maximumf %809, %810 : vector<8x128xf32>
    %812 = arith.truncf %811 : vector<8x128xf32> to vector<8x128xbf16>
    %cst_313 = arith.constant dense<0.000000e+00> : vector<8x32xf32>
    %813 = tpu.matmul %812, %777, %cst_313 {dimension_numbers = #tpu.dot_dimension_numbers<[1], [0], [0], [1], [0, 0, 1, 1], [], []>} : vector<8x128xbf16>, vector<128x32xbf16>, vector<8x32xf32> -> vector<8x32xf32>
    %814 = vector.broadcast %778 : vector<1x32xf32> to vector<8x32xf32>
    %815 = arith.addf %813, %814 : vector<8x32xf32>
    %816 = arith.addf %815, %805 : vector<8x32xf32>
    %cst_314 = arith.constant dense<0.000000e+00> : vector<8xf32>
    %817 = vector.multi_reduction <add>, %816, %cst_314 [1] : vector<8x32xf32> to vector<8xf32>
    %818 = vector.shape_cast %817 : vector<8xf32> to vector<8x1xf32>
    %cst_315 = arith.constant 3.200000e+01 : f32
    %819 = vector.broadcast %cst_315 : f32 to vector<8x1xf32>
    %820 = arith.divf %818, %819 : vector<8x1xf32>
    %821 = vector.broadcast %820 : vector<8x1xf32> to vector<8x32xf32>
    %822 = arith.subf %816, %821 : vector<8x32xf32>
    %823 = arith.mulf %822, %822 : vector<8x32xf32>
    %cst_316 = arith.constant dense<0.000000e+00> : vector<8xf32>
    %824 = vector.multi_reduction <add>, %823, %cst_316 [1] : vector<8x32xf32> to vector<8xf32>
    %825 = vector.shape_cast %824 : vector<8xf32> to vector<8x1xf32>
    %cst_317 = arith.constant 3.200000e+01 : f32
    %826 = vector.broadcast %cst_317 : f32 to vector<8x1xf32>
    %827 = arith.divf %825, %826 : vector<8x1xf32>
    %cst_318 = arith.constant 9.99999974E-6 : f32
    %828 = vector.broadcast %cst_318 : f32 to vector<8x1xf32>
    %829 = arith.addf %827, %828 : vector<8x1xf32>
    %830 = math.rsqrt %829 : vector<8x1xf32>
    %831 = vector.broadcast %830 : vector<8x1xf32> to vector<8x32xf32>
    %832 = arith.mulf %822, %831 : vector<8x32xf32>
    %833 = vector.broadcast %771 : vector<1x32xf32> to vector<8x32xf32>
    %834 = arith.mulf %832, %833 : vector<8x32xf32>
    %835 = vector.broadcast %772 : vector<1x32xf32> to vector<8x32xf32>
    %836 = arith.addf %834, %835 : vector<8x32xf32>
    %837 = arith.truncf %836 : vector<8x32xf32> to vector<8x32xbf16>
    %cst_319 = arith.constant dense<0.000000e+00> : vector<8x128xf32>
    %838 = tpu.matmul %837, %0, %cst_319 {dimension_numbers = #tpu.dot_dimension_numbers<[1], [0], [0], [1], [0, 0, 1, 1], [], []>} : vector<8x32xbf16>, vector<32x128xbf16>, vector<8x128xf32> -> vector<8x128xf32>
    %839 = vector.broadcast %1 : vector<1x128xf32> to vector<8x128xf32>
    %840 = arith.addf %838, %839 : vector<8x128xf32>
    %c1_320 = arith.constant 1 : index
    %c0_321 = arith.constant 0 : index
    %c0_322 = arith.constant 0 : index
    %841 = vector.load %arg10[%c1_320, %c0_321, %c0_322] : memref<2x8x128xf32, #tpu.memory_space<vmem>>, vector<1x8x128xf32>
    %842 = vector.shape_cast %841 : vector<1x8x128xf32> to vector<8x128xf32>
    %843 = vector.shape_cast %840 : vector<8x128xf32> to vector<1x8x128xf32>
    tpu.vector_store %arg10[%c1_320, %c0_321, %c0_322], %843 {strides = array<i32>} : memref<2x8x128xf32, #tpu.memory_space<vmem>>, vector<1x8x128xf32>,
    return
  }
  func.func @transform_0(%arg0: i32) -> (i32, i32, i32) {
    %c0_i32 = arith.constant 0 : i32
    %c0_i32_0 = arith.constant 0 : i32
    %c0_i32_1 = arith.constant 0 : i32
    return %arg0, %c0_i32, %c0_i32_0 : i32, i32, i32
  }
  func.func @transform_1(%arg0: i32) -> (i32, i32, i32) {
    %c0_i32 = arith.constant 0 : i32
    %c0_i32_0 = arith.constant 0 : i32
    %c0_i32_1 = arith.constant 0 : i32
    return %arg0, %c0_i32, %c0_i32_0 : i32, i32, i32
  }
  func.func @transform_2(%arg0: i32) -> (i32, i32, i32, i32) {
    %c0_i32 = arith.constant 0 : i32
    %c0_i32_0 = arith.constant 0 : i32
    %c0_i32_1 = arith.constant 0 : i32
    %c0_i32_2 = arith.constant 0 : i32
    %c0_i32_3 = arith.constant 0 : i32
    return %c0_i32, %c0_i32_0, %c0_i32_1, %c0_i32_2 : i32, i32, i32, i32
  }
  func.func @transform_3(%arg0: i32) -> (i32, i32, i32) {
    %c0_i32 = arith.constant 0 : i32
    %c0_i32_0 = arith.constant 0 : i32
    %c0_i32_1 = arith.constant 0 : i32
    %c0_i32_2 = arith.constant 0 : i32
    return %c0_i32, %c0_i32_0, %c0_i32_1 : i32, i32, i32
  }
  func.func @transform_4(%arg0: i32) -> (i32, i32, i32, i32) {
    %c0_i32 = arith.constant 0 : i32
    %c0_i32_0 = arith.constant 0 : i32
    %c0_i32_1 = arith.constant 0 : i32
    %c0_i32_2 = arith.constant 0 : i32
    %c0_i32_3 = arith.constant 0 : i32
    return %c0_i32, %c0_i32_0, %c0_i32_1, %c0_i32_2 : i32, i32, i32, i32
  }
  func.func @transform_5(%arg0: i32) -> (i32, i32, i32) {
    %c0_i32 = arith.constant 0 : i32
    %c0_i32_0 = arith.constant 0 : i32
    %c0_i32_1 = arith.constant 0 : i32
    %c0_i32_2 = arith.constant 0 : i32
    return %c0_i32, %c0_i32_0, %c0_i32_1 : i32, i32, i32
  }
  func.func @transform_6(%arg0: i32) -> (i32, i32, i32, i32) {
    %c0_i32 = arith.constant 0 : i32
    %c0_i32_0 = arith.constant 0 : i32
    %c0_i32_1 = arith.constant 0 : i32
    %c0_i32_2 = arith.constant 0 : i32
    %c0_i32_3 = arith.constant 0 : i32
    return %c0_i32, %c0_i32_0, %c0_i32_1, %c0_i32_2 : i32, i32, i32, i32
  }
  func.func @transform_7(%arg0: i32) -> (i32, i32) {
    %c0_i32 = arith.constant 0 : i32
    %c0_i32_0 = arith.constant 0 : i32
    %c0_i32_1 = arith.constant 0 : i32
    return %c0_i32, %c0_i32_0 : i32, i32
  }
  func.func @transform_8(%arg0: i32) -> (i32, i32) {
    %c0_i32 = arith.constant 0 : i32
    %c0_i32_0 = arith.constant 0 : i32
    %c0_i32_1 = arith.constant 0 : i32
    return %c0_i32, %c0_i32_0 : i32, i32
  }
  func.func @transform_9(%arg0: i32) -> (i32, i32, i32) {
    %c0_i32 = arith.constant 0 : i32
    %c0_i32_0 = arith.constant 0 : i32
    %c0_i32_1 = arith.constant 0 : i32
    return %arg0, %c0_i32, %c0_i32_0 : i32, i32, i32
  }
}

</mosaic_0001>

<bundles_post_ra>
// kernel: transformer_forward.1
= control target key start
LH: loop header
LB: loop body
LE: loop exit
PB: predicated region body
PF: predicated region fallthrough
CT: control target
= control target key end

     0   :  { %v4742_v1 = vmov 0.0   ;;  %vm4743_vm0 = vmmov 0   ;;  %vm107_vm1 = vcmask 261120   ;;  %s5762_s0 = inlined_call_operand.vmem [shape: f32[2,8,32], index: 0, kind: input, shape index: {}]   ;;  %s5763_s1 = inlined_call_operand.vmem [shape: f32[2,8,32], index: 1, kind: input, shape index: {}]   ;;  %s5764_s2 = inlined_call_operand.vmem [shape: bf16[2,6,32,32], index: 2, kind: input, shape index: {}]   ;;  %s5765_s3 = inlined_call_operand.vmem [shape: f32[2,15,32], index: 3, kind: input, shape index: {}]   ;;  %s5766_s4 = inlined_call_operand.vmem [shape: bf16[2,2,32,128], index: 4, kind: input, shape index: {}]   ;;  %s5767_s5 = inlined_call_operand.vmem [shape: f32[2,2,128], index: 5, kind: input, shape index: {}]   ;;  %s5768_s6 = inlined_call_operand.vmem [shape: bf16[2,2,128,32], index: 6, kind: input, shape index: {}]   ;;  %s5769_s7 = inlined_call_operand.vmem [shape: bf16[32,128], index: 7, kind: input, shape index: {}]   ;;  %s5770_s8 = inlined_call_operand.vmem [shape: f32[1,128], index: 8, kind: input, shape index: {}]   ;;  %s5771_s9 = inlined_call_operand.hbm [shape: f32[2,8,128], index: 9, kind: output, shape index: {}]  }
   0x1   :  { %v4547_v0 = vld [vmem:[%s5764_s2 + $0x8] sm:$0xff]   ;;  %4110 = vmatprep.subr.bf16.mxu0 %v4742_v1  ;;  %v4548_v2 = vld [vmem:[%s5764_s2] sm:$0xff]   ;;  %4134 = vmatprep.subr.bf16.mxu1 %v4742_v1  ;;  %v4549_v10 = vld [vmem:[%s5764_s2 + $0x18] sm:$0xff]  }
   0x2   :  { %4111 = vmatpush3.bf16.msra.mxu0 %v4547_v0  ;;  %4114 = vmatprep.mubr.msk.bf16.mxu0 %vm4743_vm0, %v4742_v1  ;;  %v39_v3 = vld [vmem:[%s5762_s0] sm:$0xff]  ;;  %v4550_v13 = vld [vmem:[%s5764_s2 + $0x10] sm:$0xff]  }
   0x3   :  { %4112 = vmatprep.subr.bf16.mxu0 %v4742_v1  ;;  %v108_v4 = vsel %vm107_vm1, %v39_v3, 0.0  ;;  %4150 = vmatprep.mubr.msk.bf16.mxu1 %vm4743_vm0, %v4742_v1 }
   0x4   :  { %v109_v5 = vrot.slane %v108_v4, 4 }
   0x6   :  { %4113 = vmatpush3.bf16.msra.mxu0 %v4548_v2  ;;  %v110_v6 = vadd.f32 %v109_v5, %v108_v4 }
   0x7   :  { %4118 = vmatprep.subr.bf16.mxu0 %v4742_v1 }
   0x8   :  { %v111_v7 = vrot.slane %v110_v6, 2 }
   0xa   :  { %v112_v8 = vadd.f32 %v111_v7, %v110_v6 }
   0xc   :  { %v113_v9 = vrot.slane %v112_v8, 1 }
   0xe   :  { %v114_v11 = vadd.f32 %v113_v9, %v112_v8 }
  0x10   :  { %v115_v12 = vpack.c.bf16 %v114_v11, %v114_v11 }
  0x12   :  { %4115 = vmatmul.mubr.msk.bf16.vlgmr.msra.gmra.mxu0 %vm107_vm1, %v115_v12 }
  0x13   :  { %4119 = vmatpush3.bf16.msra.mxu0 %v4549_v10  ;;  %4122 = vmatprep.mubr.msk.bf16.mxu0 %vm4743_vm0, %v4742_v1 }
  0x14   :  { %4120 = vmatprep.subr.bf16.mxu0 %v4742_v1 }
  0x17   :  { %4121 = vmatpush3.bf16.msra.mxu0 %v4550_v13 }
  0x18   :  { %4126 = vmatprep.subr.bf16.mxu0 %v4742_v1 }
  0x19   :  { %14 = vsyncpa [#allocation3], 0  ;;  %v227_v19 = vlaneseq  ;;  %v4834_v21 = vld [vmem:[%s5765_s3] sm:$0xff]  ;;  %v4551_v36 = vld [vmem:[%s5766_s4 + $0x8] sm:$0xff]  }
  0x1a   :  { %v4552_v37 = vld [vmem:[%s5766_s4] sm:$0xff]   ;;  %v4553_v38 = vld [vmem:[%s5768_s6 + $0x38] sm:$0xff]   ;;  %v4554_v39 = vld [vmem:[%s5768_s6 + $0x30] sm:$0xff]  }
  0x1b   :  { %v4829_v20 = vshrl.u32 %v227_v19, 7  ;;  %4135 = vmatpush3.bf16.msra.mxu1 %v4553_v38  ;;  %v4555_v40 = vld [vmem:[%s5768_s6 + $0x28] sm:$0xff]   ;;  %v4556_v41 = vld [vmem:[%s5768_s6 + $0x20] sm:$0xff]   ;;  %v4557_v42 = vld [vmem:[%s5768_s6 + $0x18] sm:$0xff]  }
  0x1c   :  { %4136 = vmatprep.subr.bf16.mxu1 %v4742_v1  ;;  %v4558_v43 = vld [vmem:[%s5768_s6 + $0x10] sm:$0xff]   ;;  %v4559_v56 = vld [vmem:[%s5768_s6 + $0x8] sm:$0xff]   ;;  %v4560_v57 = vld [vmem:[%s5768_s6] sm:$0xff]  }
  0x1d   :  { %v4837_v22 = vsub.s32 0, %v4829_v20  ;;  %v4876_v47 = vsub.s32 1, %v4829_v20  ;;  %v4879_v48 = vsub.s32 2, %v4829_v20  ;;  %v4899_v58 = vld [vmem:[%s5767_s5] sm:$0x3]  ;;  %v4906_v4 = vsub.s32 5, %v4829_v20 }
  0x1e   :  { %v4562_v19 = vld [vmem:[%s5764_s2 + $0x60] sm:$0xff]  }
  0x1f   :  { %4137 = vmatpush3.bf16.msra.mxu1 %v4554_v39  ;;  %v249_v49 = vrot.slane %v4834_v21, %v4876_v47  ;;  %v254_v52 = vrot.slane %v4834_v21, %v4879_v48  ;;  %v260_v59 = vrot.slane %v4899_v58, %v4837_v22  ;;  %v321_v5 = vrot.slane %v4834_v21, %v4906_v4 }
  0x20   :  { %4138 = vmatprep.subr.bf16.mxu1 %v4742_v1 }
  0x23   :  { %4139 = vmatpush3.bf16.msra.mxu1 %v4555_v40 }
  0x24   :  { %4140 = vmatprep.subr.bf16.mxu1 %v4742_v1 }
  0x27   :  { %4141 = vmatpush3.bf16.msra.mxu1 %v4556_v41  ;;  %v4563_v41 = vld [vmem:[%s5764_s2 + $0x78] sm:$0xff]  }
  0x28   :  { %4142 = vmatprep.subr.bf16.mxu1 %v4742_v1 }
  0x2b   :  { %4143 = vmatpush3.bf16.msra.mxu1 %v4557_v42 }
  0x2c   :  { %4144 = vmatprep.subr.bf16.mxu1 %v4742_v1 }
  0x2f   :  { %4145 = vmatpush3.bf16.msra.mxu1 %v4558_v43  ;;  %v4564_v43 = vld [vmem:[%s5764_s2 + $0x70] sm:$0xff]  }
  0x30   :  { %4146 = vmatprep.subr.bf16.mxu1 %v4742_v1 }
  0x33   :  { %4147 = vmatpush3.bf16.msra.mxu1 %v4559_v56 }
  0x34   :  { %4148 = vmatprep.subr.bf16.mxu1 %v4742_v1 }
  0x37   :  { %4149 = vmatpush3.bf16.msra.mxu1 %v4560_v57 }
  0x38   :  { %4198 = vmatprep.subr.bf16.mxu1 %v4742_v1 }
  0xd2   :  { %v165_v14 = vpop.f32.mrf.mxu0 }
  0xd3   :  { %v171_v15 = vpack.c.bf16 %v165_v14, %v165_v14 }
  0xd4   :  { %v4116_v16 = vpop.f32.mrf.mxu0 }
  0xd5   :  { %4123 = vmatmul.mubr.msk.bf16.vlgmr.msra.gmra.mxu0 %vm107_vm1, %v171_v15 }
  0xd6   :  { %v168_v17 = vpop.f32.mrf.mxu0  ;;  %4130 = vmatprep.mubr.msk.bf16.mxu0 %vm4743_vm0, %v4742_v1  ;;  %4127 = vmatpush3.bf16.msra.mxu0 %v4551_v36 }
  0xd7   :  { %4128 = vmatprep.subr.bf16.mxu0 %v4742_v1 }
  0xd8   :  { %v4117_v18 = vpop.f32.mrf.mxu0 }
  0xd9   :  { %v4561_v18 = vld [vmem:[%s5764_s2 + $0x68] sm:$0xff]  }
  0xda   :  { %4129 = vmatpush3.bf16.msra.mxu0 %v4552_v37 }
  0xdb   :  { %4154 = vmatprep.subr.bf16.mxu0 %v4742_v1 }
 0x195   :  { %v221_v23 = vpop.f32.mrf.mxu0 }
 0x196   :  { %v222_v24 = vadd.f32 %v221_v23, %v4834_v21 }
 0x197   :  { %v4124_v25 = vpop.f32.mrf.mxu0 }
 0x198   :  { %v230_v26 = vrot.slane %v222_v24, %v4837_v22 }
 0x199   :  { %v224_v27 = vpop.f32.mrf.mxu0 }
 0x19a   :  { %v231_v28 = vadd.f32 %v230_v26, %v39_v3  ;;  %v4921_v26 = vsub.s32 3, %v4829_v20  ;;  %v4924_v27 = vsub.s32 4, %v4829_v20 }
 0x19b   :  { %v4125_v29 = vpop.f32.mrf.mxu0 }
 0x19c   :  { %v232_v30 = vsel %vm107_vm1, %v231_v28, 0.0 }
 0x19d   :  { %233 = vadd.xlane.f32.xlu0 %v232_v30 }
 0x226   :  { %v234_v31 = vpop.xlane.xlu0 %233 }
 0x227   :  { %v236_v32 = vmul.f32 0.03125, %v234_v31  ;;  %v432_v31 = vrot.slane %v4834_v21, %v4924_v27 }
 0x229   :  { %v237_v33 = vsub.f32 %v231_v28, %v236_v32  ;;  %v427_v28 = vrot.slane %v4834_v21, %v4921_v26 }
 0x22b   :  { %v238_v34 = vmul.f32 %v237_v33, %v237_v33 }
 0x22d   :  { %v239_v35 = vsel %vm107_vm1, %v238_v34, 0.0 }
 0x22e   :  { %240 = vadd.xlane.f32.xlu0 %v239_v35 }
 0x2b7   :  { %v241_v44 = vpop.xlane.xlu0 %240 }
 0x2b8   :  { %v242_v45 = vmul.f32 0.03125, %v241_v44 }
 0x2ba   :  { %v243_v46 = vadd.f32 1e-05, %v242_v45 }
 0x2bc   :  { %4677 = vrsqrt.f32 %v243_v46 }
 0x2c9   :  { %v4678_v50 = vpop.eup %4677 }
 0x2ca   :  { %v245_v51 = vmul.f32 %v4678_v50, %v237_v33 }
 0x2cc   :  { %v250_v53 = vmul.f32 %v249_v49, %v245_v51  ;;  %v4948_v51 = vld [vmem:[%s5765_s3 + $0x10] sm:$0xff] }
 0x2ce   :  { %v255_v54 = vadd.f32 %v254_v52, %v250_v53 }
 0x2d0   :  { %v256_v55 = vpack.c.bf16 %v255_v54, %v255_v54 }
 0x2d2   :  { %4131 = vmatmul.mubr.msk.bf16.vlgmr.msra.gmra.mxu0 %vm107_vm1, %v256_v55 }
 0x2d3   :  { %4158 = vmatprep.mubr.msk.bf16.mxu0 %vm4743_vm0, %v4742_v1  ;;  %4155 = vmatpush3.bf16.msra.mxu0 %v4561_v18 }
 0x2d4   :  { %4156 = vmatprep.subr.bf16.mxu0 %v4742_v1 }
 0x2d7   :  { %4157 = vmatpush3.bf16.msra.mxu0 %v4562_v19 }
 0x2d8   :  { %4162 = vmatprep.subr.bf16.mxu0 %v4742_v1 }
 0x392   :  { %v310_v60 = vpop.f32.mrf.mxu0 }
 0x393   :  { %v311_v61 = vadd.f32 %v310_v60, %v260_v59 }
 0x394   :  { %v4132_v62 = vpop.f32.mrf.mxu0 }
 0x395   :  { %v316_v63 = vmax.f32 %v311_v61, 0.0 }
 0x396   :  { %v313_v0 = vpop.f32.mrf.mxu0 }
 0x397   :  { %v317_v2 = vpack.c.bf16 %v316_v63, %v316_v63 }
 0x398   :  { %v4133_v3 = vpop.f32.mrf.mxu0 }
 0x399   :  { %4151 = vmatmul.mubr.bf16.vlgmr.msra.gmra.mxu1 %v317_v2  ;;  %v4565_v3 = vld [vmem:[%s5766_s4 + $0x28] sm:$0xff]  }
 0x39a   :  { %4202 = vmatprep.mubr.msk.bf16.mxu1 %vm4743_vm0, %v4742_v1 }
 0x459   :  { %v404_v6 = vpop.f32.mrf.mxu1 }
 0x45a   :  { %v405_v7 = vadd.f32 %v404_v6, %v321_v5  ;;  %v4566_v5 = vld [vmem:[%s5766_s4 + $0x20] sm:$0xff]   ;;  %v4567_v6 = vld [vmem:[%s5764_s2 + $0x28] sm:$0xff]  }
 0x45b   :  { %v4152_v8 = vpop.f32.mrf.mxu1  ;;  %4199 = vmatpush3.bf16.msra.mxu1 %v4567_v6 }
 0x45c   :  { %v410_v9 = vadd.f32 %v405_v7, %v255_v54  ;;  %v4968_v7 = vld [vmem:[%s5763_s1] sm:$0xff]  ;;  %4200 = vmatprep.subr.bf16.mxu1 %v4742_v1 }
 0x45d   :  { %v407_v10 = vpop.f32.mrf.mxu1  ;;  %v839_v8 = vsel %vm107_vm1, %v4968_v7, 0.0 }
 0x45e   :  { %v411_v11 = vsel %vm107_vm1, %v410_v9, 0.0  ;;  %v840_v10 = vrot.slane %v839_v8, 4 }
 0x45f   :  { %412 = vadd.xlane.f32.xlu1 %v411_v11  ;;  %v4153_v12 = vpop.f32.mrf.mxu1 }
 0x460   :  { %v841_v11 = vadd.f32 %v840_v10, %v839_v8 }
 0x462   :  { %v842_v12 = vrot.slane %v841_v11, 2 }
 0x4e8   :  { %v413_v13 = vpop.xlane.xlu1 %412 }
 0x4e9   :  { %v414_v14 = vmul.f32 0.03125, %v413_v13  ;;  %v843_v13 = vadd.f32 %v842_v12, %v841_v11 }
 0x4eb   :  { %v415_v15 = vsub.f32 %v410_v9, %v414_v14  ;;  %v4568_v9 = vld [vmem:[%s5764_s2 + $0x20] sm:$0xff]   ;;  %v844_v14 = vrot.slane %v843_v13, 1 }
 0x4ec   :  { %4201 = vmatpush3.bf16.msra.mxu1 %v4568_v9 }
 0x4ed   :  { %v416_v16 = vmul.f32 %v415_v15, %v415_v15  ;;  %4206 = vmatprep.subr.bf16.mxu1 %v4742_v1 }
 0x4ef   :  { %v417_v17 = vsel %vm107_vm1, %v416_v16, 0.0 }
 0x4f0   :  { %418 = vadd.xlane.f32.xlu1 %v417_v17 }
 0x579   :  { %v419_v23 = vpop.xlane.xlu1 %418 }
 0x57a   :  { %v420_v24 = vmul.f32 0.03125, %v419_v23  ;;  %v646_v23 = vrot.slane %v4948_v51, %v4876_v47 }
 0x57c   :  { %v421_v25 = vadd.f32 1e-05, %v420_v24 }
 0x57e   :  { %4679 = vrsqrt.f32 %v421_v25 }
 0x58b   :  { %v4680_v29 = vpop.eup %4679 }
 0x58c   :  { %v423_v30 = vmul.f32 %v4680_v29, %v415_v15  ;;  %v845_v15 = vadd.f32 %v844_v14, %v843_v13 }
 0x58e   :  { %v428_v32 = vmul.f32 %v427_v28, %v423_v30  ;;  %v846_v16 = vpack.c.bf16 %v845_v15, %v845_v15  ;;  %v651_v28 = vrot.slane %v4948_v51, %v4879_v48 }
 0x590   :  { %v433_v33 = vadd.f32 %v432_v31, %v428_v32  ;;  %4203 = vmatmul.mubr.msk.bf16.vlgmr.msra.gmra.mxu1 %vm107_vm1, %v846_v16  ;;  %v4569_v31 = vld [vmem:[%s5768_s6 + $0xb8] sm:$0xff]  }
 0x591   :  { %4210 = vmatprep.mubr.msk.bf16.mxu1 %vm4743_vm0, %v4742_v1 }
 0x592   :  { %v506_v34 = vsel %vm107_vm1, %v433_v33, 0.0 }
 0x593   :  { %v507_v35 = vrot.slane %v506_v34, 4 }
 0x595   :  { %v508_v36 = vadd.f32 %v507_v35, %v506_v34  ;;  %v4571_v34 = vld [vmem:[%s5768_s6 + $0xa8] sm:$0xff]   ;;  %v4572_v35 = vld [vmem:[%s5768_s6 + $0xa0] sm:$0xff]  }
 0x597   :  { %v509_v37 = vrot.slane %v508_v36, 2 }
 0x599   :  { %v510_v38 = vadd.f32 %v509_v37, %v508_v36  ;;  %v4573_v36 = vld [vmem:[%s5768_s6 + $0x98] sm:$0xff]   ;;  %v4574_v37 = vld [vmem:[%s5768_s6 + $0x90] sm:$0xff]  }
 0x59b   :  { %v511_v39 = vrot.slane %v510_v38, 1 }
 0x59d   :  { %v512_v40 = vadd.f32 %v511_v39, %v510_v38  ;;  %v4575_v38 = vld [vmem:[%s5768_s6 + $0x88] sm:$0xff]   ;;  %v4576_v39 = vld [vmem:[%s5768_s6 + $0x80] sm:$0xff]  }
 0x59f   :  { %v513_v42 = vpack.c.bf16 %v512_v40, %v512_v40  ;;  %v4577_v40 = vld [vmem:[%s5764_s2 + $0x38] sm:$0xff]  }
 0x5a0   :  { %4207 = vmatpush3.bf16.msra.mxu1 %v4577_v40 }
 0x5a1   :  { %4159 = vmatmul.mubr.msk.bf16.vlgmr.msra.gmra.mxu0 %vm107_vm1, %v513_v42  ;;  %4208 = vmatprep.subr.bf16.mxu1 %v4742_v1 }
 0x5a2   :  { %4163 = vmatpush3.bf16.msra.mxu0 %v4563_v41  ;;  %4166 = vmatprep.mubr.msk.bf16.mxu0 %vm4743_vm0, %v4742_v1  ;;  %v4578_v41 = vld [vmem:[%s5764_s2 + $0x30] sm:$0xff]  }
 0x5a3   :  { %4164 = vmatprep.subr.bf16.mxu0 %v4742_v1 }
 0x5a4   :  { %4209 = vmatpush3.bf16.msra.mxu1 %v4578_v41 }
 0x5a5   :  { %4214 = vmatprep.subr.bf16.mxu1 %v4742_v1 }
 0x5a6   :  { %4165 = vmatpush3.bf16.msra.mxu0 %v4564_v43 }
 0x5a7   :  { %4170 = vmatprep.subr.bf16.mxu0 %v4742_v1 }
 0x650   :  { %v896_v42 = vpop.f32.mrf.mxu1 }
 0x651   :  { %v902_v43 = vpack.c.bf16 %v896_v42, %v896_v42 }
 0x653   :  { %4211 = vmatmul.mubr.msk.bf16.vlgmr.msra.gmra.mxu1 %vm107_vm1, %v902_v43 }
 0x654   :  { %4218 = vmatprep.mubr.msk.bf16.mxu1 %vm4743_vm0, %v4742_v1 }
 0x661   :  { %v563_v44 = vpop.f32.mrf.mxu0 }
 0x662   :  { %v569_v45 = vpack.c.bf16 %v563_v44, %v563_v44  ;;  %v4204_v44 = vpop.f32.mrf.mxu1 }
 0x663   :  { %v4160_v46 = vpop.f32.mrf.mxu0 }
 0x664   :  { %4167 = vmatmul.mubr.msk.bf16.vlgmr.msra.gmra.mxu0 %vm107_vm1, %v569_v45  ;;  %v899_v45 = vpop.f32.mrf.mxu1 }
 0x665   :  { %v566_v49 = vpop.f32.mrf.mxu0  ;;  %4174 = vmatprep.mubr.msk.bf16.mxu0 %vm4743_vm0, %v4742_v1  ;;  %4171 = vmatpush3.bf16.msra.mxu0 %v4565_v3  ;;  %v718_v3 = vrot.slane %v4948_v51, %v4906_v4 }
 0x666   :  { %4172 = vmatprep.subr.bf16.mxu0 %v4742_v1  ;;  %v4205_v46 = vpop.f32.mrf.mxu1  ;;  %v5037_v49 = vld [vmem:[%s5767_s5 + $0x2] sm:$0x3] }
 0x667   :  { %v4161_v50 = vpop.f32.mrf.mxu0 }
 0x668   :  { %v657_v50 = vrot.slane %v5037_v49, %v4837_v22 }
 0x669   :  { %4173 = vmatpush3.bf16.msra.mxu0 %v4566_v5 }
 0x66a   :  { %4178 = vmatprep.subr.bf16.mxu0 %v4742_v1 }
 0x724   :  { %v619_v52 = vpop.f32.mrf.mxu0 }
 0x725   :  { %v620_v53 = vadd.f32 %v4948_v51, %v619_v52 }
 0x726   :  { %v4168_v54 = vpop.f32.mrf.mxu0 }
 0x727   :  { %v628_v55 = vrot.slane %v620_v53, %v4837_v22 }
 0x728   :  { %v622_v56 = vpop.f32.mrf.mxu0 }
 0x729   :  { %v629_v57 = vadd.f32 %v628_v55, %v433_v33  ;;  %v4570_v33 = vld [vmem:[%s5768_s6 + $0xb0] sm:$0xff]  }
 0x72a   :  { %v4169_v59 = vpop.f32.mrf.mxu0 }
 0x72b   :  { %v630_v60 = vsel %vm107_vm1, %v629_v57, 0.0 }
 0x72c   :  { %631 = vadd.xlane.f32.xlu0 %v630_v60  ;;  %v955_v60 = vpop.f32.mrf.mxu1 }
 0x7b5   :  { %v632_v61 = vpop.xlane.xlu0 %631 }
 0x7b6   :  { %v633_v62 = vmul.f32 0.03125, %v632_v61  ;;  %v4212_v61 = vpop.f32.mrf.mxu1 }
 0x7b8   :  { %v634_v63 = vsub.f32 %v629_v57, %v633_v62  ;;  %v958_v62 = vpop.f32.mrf.mxu1 }
 0x7ba   :  { %v635_v0 = vmul.f32 %v634_v63, %v634_v63 }
 0x7bc   :  { %v636_v2 = vsel %vm107_vm1, %v635_v0, 0.0  ;;  %v916_v0 = vrot.slane %v4834_v21, 6 }
 0x7bd   :  { %637 = vadd.xlane.f32.xlu1 %v636_v2 }
 0x7be   :  { %v956_v2 = vadd.f32 %v955_v60, %v916_v0  ;;  %v5084_v0 = vsub.s32 7, %v4829_v20 }
 0x7c0   :  { %v964_v5 = vrot.slane %v956_v2, %v4837_v22 }
 0x7c2   :  { %v965_v11 = vadd.f32 %v964_v5, %v4968_v7  ;;  %v982_v5 = vrot.slane %v4834_v21, %v5084_v0 }
 0x7c4   :  { %v966_v15 = vsel %vm107_vm1, %v965_v11, 0.0 }
 0x846   :  { %v638_v17 = vpop.xlane.xlu1 %637 }
 0x847   :  { %v639_v18 = vmul.f32 0.03125, %v638_v17 }
 0x849   :  { %v640_v19 = vadd.f32 1e-05, %v639_v18 }
 0x84b   :  { %4681 = vrsqrt.f32 %v640_v19 }
 0x858   :  { %v4682_v24 = vpop.eup %4681 }
 0x859   :  { %v642_v25 = vmul.f32 %v4682_v24, %v634_v63  ;;  %v4213_v63 = vpop.f32.mrf.mxu1 }
 0x85b   :  { %v647_v29 = vmul.f32 %v646_v23, %v642_v25 }
 0x85d   :  { %v4984_v30 = vadd.f32 %v651_v28, %v647_v29 }
 0x85f   :  { %v653_v32 = vpack.c.bf16 %v4984_v30, %v4984_v30 }
 0x861   :  { %4175 = vmatmul.mubr.msk.bf16.vlgmr.msra.gmra.mxu0 %vm107_vm1, %v653_v32 }
 0x862   :  { %4179 = vmatpush3.bf16.msra.mxu0 %v4569_v31  ;;  %4194 = vmatprep.mubr.msk.bf16.mxu0 %vm4743_vm0, %v4742_v1  ;;  %v4580_v31 = vld [vmem:[%s5764_s2 + $0x40] sm:$0xff]  }
 0x863   :  { %4180 = vmatprep.subr.bf16.mxu0 %v4742_v1 }
 0x866   :  { %4181 = vmatpush3.bf16.msra.mxu0 %v4570_v33 }
 0x867   :  { %4182 = vmatprep.subr.bf16.mxu0 %v4742_v1 }
 0x86a   :  { %4183 = vmatpush3.bf16.msra.mxu0 %v4571_v34 }
 0x86b   :  { %4184 = vmatprep.subr.bf16.mxu0 %v4742_v1 }
 0x86e   :  { %4185 = vmatpush3.bf16.msra.mxu0 %v4572_v35  ;;  %v824_v35 = vrot.slane %v4948_v51, %v4921_v26 }
 0x86f   :  { %4186 = vmatprep.subr.bf16.mxu0 %v4742_v1 }
 0x872   :  { %4187 = vmatpush3.bf16.msra.mxu0 %v4573_v36 }
 0x873   :  { %4188 = vmatprep.subr.bf16.mxu0 %v4742_v1 }
 0x876   :  { %4189 = vmatpush3.bf16.msra.mxu0 %v4574_v37 }
 0x877   :  { %4190 = vmatprep.subr.bf16.mxu0 %v4742_v1 }
 0x87a   :  { %4191 = vmatpush3.bf16.msra.mxu0 %v4575_v38  ;;  %v829_v38 = vrot.slane %v4948_v51, %v4924_v27 }
 0x87b   :  { %4192 = vmatprep.subr.bf16.mxu0 %v4742_v1 }
 0x87e   :  { %4193 = vmatpush3.bf16.msra.mxu0 %v4576_v39 }
 0x87f   :  { %4230 = vmatprep.subr.bf16.mxu0 %v4742_v1 }
 0x921   :  { %v707_v52 = vpop.f32.mrf.mxu0 }
 0x922   :  { %v708_v53 = vadd.f32 %v707_v52, %v657_v50  ;;  %v4581_v52 = vld [vmem:[%s5764_s2 + $0x58] sm:$0xff]  }
 0x923   :  { %v4176_v54 = vpop.f32.mrf.mxu0 }
 0x924   :  { %v713_v55 = vmax.f32 %v708_v53, 0.0  ;;  %v4582_v54 = vld [vmem:[%s5764_s2 + $0x50] sm:$0xff]  }
 0x925   :  { %v710_v56 = vpop.f32.mrf.mxu0 }
 0x926   :  { %v714_v57 = vpack.c.bf16 %v713_v55, %v713_v55 }
 0x927   :  { %v4177_v59 = vpop.f32.mrf.mxu0 }
 0x928   :  { %4195 = vmatmul.mubr.bf16.vlgmr.msra.gmra.mxu0 %v714_v57 }
 0x929   :  { %4234 = vmatprep.mubr.msk.bf16.mxu0 %vm4743_vm0, %v4742_v1 }
 0x9e8   :  { %v801_v6 = vpop.f32.mrf.mxu0 }
 0x9e9   :  { %v802_v8 = vadd.f32 %v801_v6, %v718_v3  ;;  %v5091_v6 = vld [vmem:[%s5765_s3 + $0x8] sm:$0x7f] }
 0x9ea   :  { %v4196_v9 = vpop.f32.mrf.mxu0 }
 0x9eb   :  { %v807_v10 = vadd.f32 %v802_v8, %v4984_v30  ;;  %v4579_v30 = vld [vmem:[%s5764_s2 + $0x48] sm:$0xff]   ;;  %v1059_v8 = vrot.slane %v5091_v6, 1 }
 0x9ec   :  { %v804_v12 = vpop.f32.mrf.mxu0  ;;  %4215 = vmatpush3.bf16.msra.mxu1 %v4579_v30  ;;  %v4585_v30 = vld [vmem:[%s5768_s6 + $0x78] sm:$0xff]  }
 0x9ed   :  { %v808_v13 = vsel %vm107_vm1, %v807_v10, 0.0  ;;  %4216 = vmatprep.subr.bf16.mxu1 %v4742_v1 }
 0x9ee   :  { %809 = vadd.xlane.f32.xlu0 %v808_v13  ;;  %v4197_v14 = vpop.f32.mrf.mxu0 }
 0x9f0   :  { %4217 = vmatpush3.bf16.msra.mxu1 %v4580_v31  ;;  %v4586_v31 = vld [vmem:[%s5768_s6 + $0x70] sm:$0xff]  }
 0x9f1   :  { %4222 = vmatprep.subr.bf16.mxu1 %v4742_v1 }
 0x9f2   :  { %967 = vadd.xlane.f32.xlu0 %v966_v15 }
 0xa77   :  { %v810_v16 = vpop.xlane.xlu0 %809 }
 0xa78   :  { %v811_v17 = vmul.f32 0.03125, %v810_v16 }
 0xa7a   :  { %v812_v18 = vsub.f32 %v807_v10, %v811_v17  ;;  %v987_v10 = vrot.slane %v5091_v6, %v4837_v22 }
 0xa7b   :  { %v968_v19 = vpop.xlane.xlu0 %967 }
 0xa7c   :  { %v813_v23 = vmul.f32 %v812_v18, %v812_v18  ;;  %v969_v24 = vmul.f32 0.03125, %v968_v19 }
 0xa7e   :  { %v814_v25 = vsel %vm107_vm1, %v813_v23, 0.0  ;;  %v970_v28 = vsub.f32 %v965_v11, %v969_v24 }
 0xa7f   :  { %815 = vadd.xlane.f32.xlu1 %v814_v25 }
 0xa80   :  { %v971_v29 = vmul.f32 %v970_v28, %v970_v28 }
 0xa82   :  { %v972_v7 = vsel %vm107_vm1, %v971_v29, 0.0  ;;  %v4583_v29 = vld [vmem:[%s5766_s4 + $0x18] sm:$0xff]  }
 0xa83   :  { %973 = vadd.xlane.f32.xlu1 %v972_v7  ;;  %4231 = vmatpush3.bf16.msra.mxu0 %v4583_v29  ;;  %v4584_v7 = vld [vmem:[%s5766_s4 + $0x10] sm:$0xff]  }
 0xa84   :  { %4232 = vmatprep.subr.bf16.mxu0 %v4742_v1 }
 0xa87   :  { %4233 = vmatpush3.bf16.msra.mxu0 %v4584_v7 }
 0xa88   :  { %4258 = vmatprep.subr.bf16.mxu0 %v4742_v1 }
 0xb08   :  { %v816_v32 = vpop.xlane.xlu1 %815 }
 0xb09   :  { %v817_v33 = vmul.f32 0.03125, %v816_v32  ;;  %v4587_v32 = vld [vmem:[%s5768_s6 + $0x68] sm:$0xff]  }
 0xb0b   :  { %v818_v34 = vadd.f32 1e-05, %v817_v33  ;;  %v4588_v33 = vld [vmem:[%s5768_s6 + $0x60] sm:$0xff]  }
 0xb0c   :  { %v974_v61 = vpop.xlane.xlu1 %973 }
 0xb0d   :  { %4683 = vrsqrt.f32 %v818_v34  ;;  %v975_v62 = vmul.f32 0.03125, %v974_v61  ;;  %v4589_v34 = vld [vmem:[%s5768_s6 + $0x58] sm:$0xff]  }
 0xb0f   :  { %v976_v63 = vadd.f32 1e-05, %v975_v62  ;;  %v5151_v62 = vsub.s32 6, %v4829_v20  ;;  %v4593_v20 = vld [vmem:[%s5764_s2 + $0x88] sm:$0xff]  }
 0xb11   :  { %4685 = vrsqrt.f32 %v976_v63  ;;  %v1197_v63 = vrot.slane %v5091_v6, %v5151_v62 }
 0xb1a   :  { %v4684_v36 = vpop.eup %4683 }
 0xb1b   :  { %v820_v37 = vmul.f32 %v4684_v36, %v812_v18 }
 0xb1d   :  { %v825_v39 = vmul.f32 %v824_v35, %v820_v37  ;;  %v4590_v35 = vld [vmem:[%s5768_s6 + $0x50] sm:$0xff]  }
 0xb1e   :  { %v4686_v2 = vpop.eup %4685 }
 0xb1f   :  { %v830_v40 = vadd.f32 %v829_v38, %v825_v39  ;;  %v978_v3 = vmul.f32 %v4686_v2, %v970_v28  ;;  %v1125_v39 = vrot.slane %v5091_v6, %v4879_v48 }
 0xb21   :  { %v831_v41 = vsel %vm107_vm1, %v830_v40, 0.0  ;;  %v983_v9 = vmul.f32 %v982_v5, %v978_v3 }
 0xb22   :  { %v832_v42 = vrot.slane %v831_v41, 4 }
 0xb23   :  { %v988_v15 = vadd.f32 %v987_v10, %v983_v9 }
 0xb24   :  { %v833_v43 = vadd.f32 %v832_v42, %v831_v41  ;;  %v1130_v42 = vrot.slane %v5091_v6, %v4921_v26 }
 0xb26   :  { %v834_v44 = vrot.slane %v833_v43, 2 }
 0xb28   :  { %v835_v45 = vadd.f32 %v834_v44, %v833_v43 }
 0xb2a   :  { %v836_v46 = vrot.slane %v835_v45, 1 }
 0xb2c   :  { %v837_v50 = vadd.f32 %v836_v46, %v835_v45  ;;  %v4591_v46 = vld [vmem:[%s5768_s6 + $0x48] sm:$0xff]  }
 0xb2e   :  { %v5069_v53 = vpack.c.bf16 %v837_v50, %v837_v50  ;;  %v4592_v50 = vld [vmem:[%s5768_s6 + $0x40] sm:$0xff]  }
 0xb30   :  { %4219 = vmatmul.mubr.msk.bf16.vlgmr.msra.gmra.mxu1 %vm107_vm1, %v5069_v53 }
 0xb31   :  { %4223 = vmatpush3.bf16.msra.mxu1 %v4581_v52  ;;  %4226 = vmatprep.mubr.msk.bf16.mxu1 %vm4743_vm0, %v4742_v1  ;;  %v1136_v52 = vrot.slane %v4899_v58, %v4876_v47 }
 0xb32   :  { %4224 = vmatprep.subr.bf16.mxu1 %v4742_v1 }
 0xb35   :  { %4225 = vmatpush3.bf16.msra.mxu1 %v4582_v54 }
 0xb36   :  { %4238 = vmatprep.subr.bf16.mxu1 %v4742_v1 }
 0xbf0   :  { %v1039_v55 = vpop.f32.mrf.mxu1 }
 0xbf1   :  { %v1045_v56 = vpack.c.bf16 %v1039_v55, %v1039_v55 }
 0xbf2   :  { %v4220_v57 = vpop.f32.mrf.mxu1 }
 0xbf3   :  { %4227 = vmatmul.mubr.msk.bf16.vlgmr.msra.gmra.mxu1 %vm107_vm1, %v1045_v56 }
 0xbf4   :  { %v1042_v59 = vpop.f32.mrf.mxu1  ;;  %4254 = vmatprep.mubr.msk.bf16.mxu1 %vm4743_vm0, %v4742_v1  ;;  %4239 = vmatpush3.bf16.msra.mxu1 %v4585_v30 }
 0xbf5   :  { %4240 = vmatprep.subr.bf16.mxu1 %v4742_v1 }
 0xbf6   :  { %v4221_v60 = vpop.f32.mrf.mxu1 }
 0xbf8   :  { %4241 = vmatpush3.bf16.msra.mxu1 %v4586_v31 }
 0xbf9   :  { %4242 = vmatprep.subr.bf16.mxu1 %v4742_v1 }
 0xbfc   :  { %4243 = vmatpush3.bf16.msra.mxu1 %v4587_v32 }
 0xbfd   :  { %4244 = vmatprep.subr.bf16.mxu1 %v4742_v1 }
 0xc00   :  { %4245 = vmatpush3.bf16.msra.mxu1 %v4588_v33 }
 0xc01   :  { %4246 = vmatprep.subr.bf16.mxu1 %v4742_v1 }
 0xc04   :  { %4247 = vmatpush3.bf16.msra.mxu1 %v4589_v34 }
 0xc05   :  { %4248 = vmatprep.subr.bf16.mxu1 %v4742_v1 }
 0xc08   :  { %4249 = vmatpush3.bf16.msra.mxu1 %v4590_v35 }
 0xc09   :  { %4250 = vmatprep.subr.bf16.mxu1 %v4742_v1 }
 0xc0c   :  { %4251 = vmatpush3.bf16.msra.mxu1 %v4591_v46  ;;  %v4600_v46 = vld [vmem:[%s5764_s2 + $0xb0] sm:$0xff]  }
 0xc0d   :  { %4252 = vmatprep.subr.bf16.mxu1 %v4742_v1 }
 0xc10   :  { %4253 = vmatpush3.bf16.msra.mxu1 %v4592_v50  ;;  %v1387_v50 = vrot.slane %v4948_v51, 6 }
 0xc11   :  { %4290 = vmatprep.subr.bf16.mxu1 %v4742_v1 }
 0xcb3   :  { %v1098_v11 = vpop.f32.mrf.mxu1 }
 0xcb4   :  { %v1099_v12 = vadd.f32 %v1098_v11, %v1059_v8 }
 0xcb5   :  { %v4228_v13 = vpop.f32.mrf.mxu1 }
 0xcb6   :  { %v1107_v14 = vrot.slane %v1099_v12, %v4837_v22 }
 0xcb7   :  { %v1101_v16 = vpop.f32.mrf.mxu1 }
 0xcb8   :  { %v1108_v17 = vadd.f32 %v1107_v14, %v988_v15  ;;  %v4594_v16 = vld [vmem:[%s5764_s2 + $0x80] sm:$0xff]  }
 0xcb9   :  { %v4229_v21 = vpop.f32.mrf.mxu1 }
 0xcba   :  { %v1109_v18 = vsel %vm107_vm1, %v1108_v17, 0.0 }
 0xcbb   :  { %1110 = vadd.xlane.f32.xlu0 %v1109_v18 }
 0xd44   :  { %v1111_v19 = vpop.xlane.xlu0 %1110 }
 0xd45   :  { %v1112_v23 = vmul.f32 0.03125, %v1111_v19  ;;  %v1303_v19 = vrot.slane %v5091_v6, %v4924_v27 }
 0xd47   :  { %v1113_v24 = vsub.f32 %v1108_v17, %v1112_v23 }
 0xd49   :  { %v1114_v25 = vmul.f32 %v1113_v24, %v1113_v24 }
 0xd4b   :  { %v1115_v28 = vsel %vm107_vm1, %v1114_v25, 0.0  ;;  %v1308_v25 = vrot.slane %v5091_v6, %v4906_v4  ;;  %v4596_v6 = vld [vmem:[%s5764_s2 + $0x90] sm:$0xff]  }
 0xd4c   :  { %1116 = vadd.xlane.f32.xlu1 %v1115_v28 }
 0xdd5   :  { %v1117_v36 = vpop.xlane.xlu1 %1116 }
 0xdd6   :  { %v1118_v37 = vmul.f32 0.03125, %v1117_v36  ;;  %v4595_v36 = vld [vmem:[%s5764_s2 + $0x98] sm:$0xff]  }
 0xdd8   :  { %v1119_v38 = vadd.f32 1e-05, %v1118_v37 }
 0xdda   :  { %4687 = vrsqrt.f32 %v1119_v38 }
 0xde7   :  { %v4688_v40 = vpop.eup %4687 }
 0xde8   :  { %v1121_v41 = vmul.f32 %v4688_v40, %v1113_v24 }
 0xdea   :  { %v1126_v43 = vmul.f32 %v1125_v39, %v1121_v41  ;;  %v4597_v39 = vld [vmem:[%s5764_s2 + $0xa8] sm:$0xff]  }
 0xdec   :  { %v1131_v44 = vadd.f32 %v1130_v42, %v1126_v43  ;;  %v4598_v43 = vld [vmem:[%s5764_s2 + $0xa0] sm:$0xff]  }
 0xdee   :  { %v1132_v45 = vpack.c.bf16 %v1131_v44, %v1131_v44 }
 0xdf0   :  { %4235 = vmatmul.mubr.msk.bf16.vlgmr.msra.gmra.mxu0 %vm107_vm1, %v1132_v45  ;;  %v4599_v45 = vld [vmem:[%s5764_s2 + $0xb8] sm:$0xff]  }
 0xdf1   :  { %4262 = vmatprep.mubr.msk.bf16.mxu0 %vm4743_vm0, %v4742_v1  ;;  %4259 = vmatpush3.bf16.msra.mxu0 %v4593_v20 }
 0xdf2   :  { %4260 = vmatprep.subr.bf16.mxu0 %v4742_v1 }
 0xdf5   :  { %4261 = vmatpush3.bf16.msra.mxu0 %v4594_v16 }
 0xdf6   :  { %4266 = vmatprep.subr.bf16.mxu0 %v4742_v1 }
 0xeb0   :  { %v1186_v54 = vpop.f32.mrf.mxu0 }
 0xeb1   :  { %v1187_v55 = vadd.f32 %v1186_v54, %v1136_v52 }
 0xeb2   :  { %v4236_v56 = vpop.f32.mrf.mxu0 }
 0xeb3   :  { %v1192_v57 = vmax.f32 %v1187_v55, 0.0 }
 0xeb4   :  { %v1189_v59 = vpop.f32.mrf.mxu0 }
 0xeb5   :  { %v1193_v60 = vpack.c.bf16 %v1192_v57, %v1192_v57 }
 0xeb6   :  { %v4237_v61 = vpop.f32.mrf.mxu0 }
 0xeb7   :  { %4255 = vmatmul.mubr.bf16.vlgmr.msra.gmra.mxu1 %v1193_v60 }
 0xeb8   :  { %4294 = vmatprep.mubr.msk.bf16.mxu1 %vm4743_vm0, %v4742_v1 }
 0xf77   :  { %v1280_v2 = vpop.f32.mrf.mxu1 }
 0xf78   :  { %v1281_v3 = vadd.f32 %v1280_v2, %v1197_v63 }
 0xf79   :  { %v4256_v58 = vpop.f32.mrf.mxu1 }
 0xf7a   :  { %v1286_v5 = vadd.f32 %v1281_v3, %v1131_v44 }
 0xf7b   :  { %v1283_v8 = vpop.f32.mrf.mxu1 }
 0xf7c   :  { %v1287_v9 = vsel %vm107_vm1, %v1286_v5, 0.0 }
 0xf7d   :  { %1288 = vadd.xlane.f32.xlu0 %v1287_v9  ;;  %v4257_v10 = vpop.f32.mrf.mxu1 }
0x1006   :  { %v1289_v11 = vpop.xlane.xlu0 %1288 }
0x1007   :  { %v1290_v12 = vmul.f32 0.03125, %v1289_v11 }
0x1009   :  { %v1291_v13 = vsub.f32 %v1286_v5, %v1290_v12 }
0x100b   :  { %v1292_v14 = vmul.f32 %v1291_v13, %v1291_v13 }
0x100d   :  { %v1293_v15 = vsel %vm107_vm1, %v1292_v14, 0.0 }
0x100e   :  { %1294 = vadd.xlane.f32.xlu1 %v1293_v15 }
0x1097   :  { %v1295_v17 = vpop.xlane.xlu1 %1294 }
0x1098   :  { %v1296_v21 = vmul.f32 0.03125, %v1295_v17 }
0x109a   :  { %v1297_v18 = vadd.f32 1e-05, %v1296_v21  ;;  %v5214_v21 = vld [vmem:[%s5765_s3 + $0x18] sm:$0x7f] }
0x109c   :  { %4689 = vrsqrt.f32 %v1297_v18  ;;  %v1526_v18 = vrot.slane %v5214_v21, 1 }
0x10a9   :  { %v4690_v23 = vpop.eup %4689 }
0x10aa   :  { %v1299_v24 = vmul.f32 %v4690_v23, %v1291_v13 }
0x10ac   :  { %v1304_v28 = vmul.f32 %v1303_v19, %v1299_v24  ;;  %v1453_v19 = vrot.slane %v4948_v51, %v5084_v0 }
0x10ae   :  { %v1309_v29 = vadd.f32 %v1308_v25, %v1304_v28  ;;  %v1458_v28 = vrot.slane %v5214_v21, %v4837_v22 }
0x10b0   :  { %v1310_v7 = vsel %vm107_vm1, %v1309_v29, 0.0 }
0x10b1   :  { %v1311_v30 = vrot.slane %v1310_v7, 4 }
0x10b3   :  { %v1312_v31 = vadd.f32 %v1311_v30, %v1310_v7 }
0x10b5   :  { %v1313_v32 = vrot.slane %v1312_v31, 2 }
0x10b7   :  { %v1314_v33 = vadd.f32 %v1313_v32, %v1312_v31 }
0x10b9   :  { %v1315_v34 = vrot.slane %v1314_v33, 1 }
0x10bb   :  { %v1316_v35 = vadd.f32 %v1315_v34, %v1314_v33 }
0x10bd   :  { %v1317_v37 = vpack.c.bf16 %v1316_v35, %v1316_v35 }
0x10bf   :  { %4263 = vmatmul.mubr.msk.bf16.vlgmr.msra.gmra.mxu0 %vm107_vm1, %v1317_v37  ;;  %v4601_v37 = vld [vmem:[%s5766_s4 + $0x38] sm:$0xff]  }
0x10c0   :  { %4267 = vmatpush3.bf16.msra.mxu0 %v4595_v36  ;;  %4270 = vmatprep.mubr.msk.bf16.mxu0 %vm4743_vm0, %v4742_v1 }
0x10c1   :  { %4268 = vmatprep.subr.bf16.mxu0 %v4742_v1  ;;  %4291 = vmatpush3.bf16.msra.mxu1 %v4601_v37  ;;  %v1775_v37 = vrot.slane %v5214_v21, %v4906_v4 }
0x10c2   :  { %4292 = vmatprep.subr.bf16.mxu1 %v4742_v1 }
0x10c4   :  { %4269 = vmatpush3.bf16.msra.mxu0 %v4596_v6  ;;  %v4602_v6 = vld [vmem:[%s5766_s4 + $0x30] sm:$0xff]  }
0x10c5   :  { %4274 = vmatprep.subr.bf16.mxu0 %v4742_v1  ;;  %4293 = vmatpush3.bf16.msra.mxu1 %v4602_v6 }
0x10c6   :  { %4318 = vmatprep.subr.bf16.mxu1 %v4742_v1 }
0x117f   :  { %v1367_v38 = vpop.f32.mrf.mxu0 }
0x1180   :  { %v1373_v40 = vpack.c.bf16 %v1367_v38, %v1367_v38  ;;  %v4603_v38 = vld [vmem:[%s5768_s6 + $0xf8] sm:$0xff]  }
0x1181   :  { %v4264_v41 = vpop.f32.mrf.mxu0 }
0x1182   :  { %4271 = vmatmul.mubr.msk.bf16.vlgmr.msra.gmra.mxu0 %vm107_vm1, %v1373_v40  ;;  %v4605_v40 = vld [vmem:[%s5768_s6 + $0xe8] sm:$0xff]   ;;  %v4606_v41 = vld [vmem:[%s5768_s6 + $0xe0] sm:$0xff]  }
0x1183   :  { %v1370_v42 = vpop.f32.mrf.mxu0  ;;  %4275 = vmatpush3.bf16.msra.mxu0 %v4597_v39  ;;  %4278 = vmatprep.mubr.msk.bf16.mxu0 %vm4743_vm0, %v4742_v1  ;;  %v4604_v39 = vld [vmem:[%s5768_s6 + $0xf0] sm:$0xff]  }
0x1184   :  { %4276 = vmatprep.subr.bf16.mxu0 %v4742_v1  ;;  %v4607_v42 = vld [vmem:[%s5768_s6 + $0xd8] sm:$0xff]  }
0x1185   :  { %v4265_v44 = vpop.f32.mrf.mxu0 }
0x1187   :  { %4277 = vmatpush3.bf16.msra.mxu0 %v4598_v43  ;;  %v4608_v43 = vld [vmem:[%s5768_s6 + $0xd0] sm:$0xff]  }
0x1188   :  { %4282 = vmatprep.subr.bf16.mxu0 %v4742_v1 }
0x118a   :  { %4279 = vmatmul.mubr.msk.bf16.vlgmr.msra.gmra.mxu0 %vm107_vm1, %v5069_v53 }
0x118b   :  { %4286 = vmatprep.mubr.msk.bf16.mxu0 %vm4743_vm0, %v4742_v1  ;;  %4283 = vmatpush3.bf16.msra.mxu0 %v4599_v45 }
0x118c   :  { %4284 = vmatprep.subr.bf16.mxu0 %v4742_v1 }
0x118f   :  { %4285 = vmatpush3.bf16.msra.mxu0 %v4600_v46 }
0x1190   :  { %4298 = vmatprep.subr.bf16.mxu0 %v4742_v1 }
0x1242   :  { %v1426_v53 = vpop.f32.mrf.mxu0 }
0x1243   :  { %v1427_v52 = vadd.f32 %v1426_v53, %v1387_v50  ;;  %v1592_v50 = vrot.slane %v5214_v21, %v4879_v48 }
0x1244   :  { %v4272_v54 = vpop.f32.mrf.mxu0 }
0x1245   :  { %v1435_v55 = vrot.slane %v1427_v52, %v4837_v22  ;;  %v1597_v54 = vrot.slane %v5214_v21, %v4921_v26 }
0x1246   :  { %v1429_v56 = vpop.f32.mrf.mxu0 }
0x1247   :  { %v1436_v57 = vadd.f32 %v1435_v55, %v1309_v29 }
0x1248   :  { %v4273_v59 = vpop.f32.mrf.mxu0 }
0x1249   :  { %v1437_v60 = vsel %vm107_vm1, %v1436_v57, 0.0  ;;  %v4609_v59 = vld [vmem:[%s5768_s6 + $0xc8] sm:$0xff]  }
0x124a   :  { %1438 = vadd.xlane.f32.xlu0 %v1437_v60  ;;  %v1506_v61 = vpop.f32.mrf.mxu0  ;;  %v4610_v60 = vld [vmem:[%s5768_s6 + $0xc0] sm:$0xff]  }
0x124b   :  { %v1512_v63 = vpack.c.bf16 %v1506_v61, %v1506_v61  ;;  %v1603_v61 = vrot.slane %v5037_v49, %v4876_v47 }
0x124c   :  { %v4280_v2 = vpop.f32.mrf.mxu0 }
0x124d   :  { %4287 = vmatmul.mubr.msk.bf16.vlgmr.msra.gmra.mxu0 %vm107_vm1, %v1512_v63 }
0x124e   :  { %v1509_v3 = vpop.f32.mrf.mxu0  ;;  %4314 = vmatprep.mubr.msk.bf16.mxu0 %vm4743_vm0, %v4742_v1  ;;  %4299 = vmatpush3.bf16.msra.mxu0 %v4603_v38 }
0x124f   :  { %4300 = vmatprep.subr.bf16.mxu0 %v4742_v1 }
0x1250   :  { %v4281_v58 = vpop.f32.mrf.mxu0 }
0x1252   :  { %4301 = vmatpush3.bf16.msra.mxu0 %v4604_v39 }
0x1253   :  { %4302 = vmatprep.subr.bf16.mxu0 %v4742_v1 }
0x1256   :  { %4303 = vmatpush3.bf16.msra.mxu0 %v4605_v40 }
0x1257   :  { %4304 = vmatprep.subr.bf16.mxu0 %v4742_v1 }
0x125a   :  { %4305 = vmatpush3.bf16.msra.mxu0 %v4606_v41  ;;  %v4613_v41 = vld [vmem:[%s5764_s2 + $0x8] sm:$0xff]  }
0x125b   :  { %4306 = vmatprep.subr.bf16.mxu0 %v4742_v1 }
0x125e   :  { %4307 = vmatpush3.bf16.msra.mxu0 %v4607_v42 }
0x125f   :  { %4308 = vmatprep.subr.bf16.mxu0 %v4742_v1 }
0x1262   :  { %4309 = vmatpush3.bf16.msra.mxu0 %v4608_v43 }
0x1263   :  { %4310 = vmatprep.subr.bf16.mxu0 %v4742_v1 }
0x1266   :  { %4311 = vmatpush3.bf16.msra.mxu0 %v4609_v59 }
0x1267   :  { %4312 = vmatprep.subr.bf16.mxu0 %v4742_v1 }
0x126a   :  { %4313 = vmatpush3.bf16.msra.mxu0 %v4610_v60 }
0x126b   :  { %4350 = vmatprep.subr.bf16.mxu0 %v4742_v1 }
0x12d3   :  { %v1439_v5 = vpop.xlane.xlu0 %1438 }
0x12d4   :  { %v1440_v8 = vmul.f32 0.03125, %v1439_v5 }
0x12d6   :  { %v1441_v9 = vsub.f32 %v1436_v57, %v1440_v8 }
0x12d8   :  { %v1442_v10 = vmul.f32 %v1441_v9, %v1441_v9 }
0x12da   :  { %v1443_v11 = vsel %vm107_vm1, %v1442_v10, 0.0  ;;  %v1664_v10 = vrot.slane %v5214_v21, %v5151_v62 }
0x12db   :  { %1444 = vadd.xlane.f32.xlu1 %v1443_v11 }
0x130d   :  { %v1565_v12 = vpop.f32.mrf.mxu0 }
0x130e   :  { %v1566_v24 = vadd.f32 %v1565_v12, %v1526_v18 }
0x130f   :  { %v4288_v13 = vpop.f32.mrf.mxu0 }
0x1310   :  { %v1574_v7 = vrot.slane %v1566_v24, %v4837_v22  ;;  %v4611_v24 = vld [vmem:[%s5769_s7 + $0x8] sm:$0xff]  }
0x1311   :  { %v1568_v14 = vpop.f32.mrf.mxu0 }
0x1313   :  { %v4289_v15 = vpop.f32.mrf.mxu0 }
0x1364   :  { %v1445_v20 = vpop.xlane.xlu1 %1444 }
0x1365   :  { %v1446_v16 = vmul.f32 0.03125, %v1445_v20 }
0x1367   :  { %v1447_v17 = vadd.f32 1e-05, %v1446_v16 }
0x1369   :  { %4691 = vrsqrt.f32 %v1447_v17 }
0x1376   :  { %v4692_v23 = vpop.eup %4691 }
0x1377   :  { %v1449_v25 = vmul.f32 %v4692_v23, %v1441_v9 }
0x1379   :  { %v1454_v29 = vmul.f32 %v1453_v19, %v1449_v25  ;;  %v4612_v25 = vld [vmem:[%s5769_s7] sm:$0xff]  }
0x137b   :  { %v1459_v30 = vadd.f32 %v1458_v28, %v1454_v29 }
0x137d   :  { %v1575_v31 = vadd.f32 %v1574_v7, %v1459_v30  ;;  %v3786_v7 = vld [vmem:[%s5762_s0 + $0x8] sm:$0xff] }
0x137f   :  { %v1576_v32 = vsel %vm107_vm1, %v1575_v31, 0.0 }
0x1380   :  { %1577 = vadd.xlane.f32.xlu0 %v1576_v32 }
0x1409   :  { %v1578_v33 = vpop.xlane.xlu0 %1577 }
0x140a   :  { %v1579_v34 = vmul.f32 0.03125, %v1578_v33 }
0x140c   :  { %v1580_v35 = vsub.f32 %v1575_v31, %v1579_v34  ;;  %v1909_v31 = vsel %vm107_vm1, %v3786_v7, 0.0 }
0x140d   :  { %v1910_v32 = vrot.slane %v1909_v31, 4 }
0x140e   :  { %v1581_v36 = vmul.f32 %v1580_v35, %v1580_v35 }
0x140f   :  { %v1911_v33 = vadd.f32 %v1910_v32, %v1909_v31 }
0x1410   :  { %v1582_v51 = vsel %vm107_vm1, %v1581_v36, 0.0 }
0x1411   :  { %1583 = vadd.xlane.f32.xlu1 %v1582_v51  ;;  %v1912_v34 = vrot.slane %v1911_v33, 2 }
0x1413   :  { %v1913_v6 = vadd.f32 %v1912_v34, %v1911_v33 }
0x1415   :  { %v1914_v40 = vrot.slane %v1913_v6, 1 }
0x1417   :  { %v1915_v43 = vadd.f32 %v1914_v40, %v1913_v6  ;;  %v4626_v6 = vld [vmem:[%s5768_s6] sm:$0xff]  }
0x149a   :  { %v1584_v44 = vpop.xlane.xlu1 %1583 }
0x149b   :  { %v1585_v45 = vmul.f32 0.03125, %v1584_v44  ;;  %v4614_v44 = vld [vmem:[%s5764_s2] sm:$0xff]  }
0x149d   :  { %v1586_v46 = vadd.f32 1e-05, %v1585_v45  ;;  %v4615_v45 = vld [vmem:[%s5764_s2 + $0x18] sm:$0xff]  }
0x149f   :  { %4693 = vrsqrt.f32 %v1586_v46  ;;  %v4616_v46 = vld [vmem:[%s5764_s2 + $0x10] sm:$0xff]  }
0x14ac   :  { %v4694_v53 = vpop.eup %4693 }
0x14ad   :  { %v1588_v52 = vmul.f32 %v4694_v53, %v1580_v35  ;;  %v1770_v35 = vrot.slane %v5214_v21, %v4924_v27  ;;  %v1916_v21 = vpack.c.bf16 %v1915_v43, %v1915_v43 }
0x14af   :  { %v1593_v55 = vmul.f32 %v1592_v50, %v1588_v52  ;;  %v3782_v50 = vld [vmem:[%s5770_s8] ss:$0 sm:$0xff] }
0x14b1   :  { %v1598_v56 = vadd.f32 %v1597_v54, %v1593_v55 }
0x14b3   :  { %v1599_v57 = vpack.c.bf16 %v1598_v56, %v1598_v56 }
0x14b5   :  { %4295 = vmatmul.mubr.msk.bf16.vlgmr.msra.gmra.mxu1 %vm107_vm1, %v1599_v57 }
0x14b6   :  { %4322 = vmatprep.mubr.msk.bf16.mxu1 %vm4743_vm0, %v4742_v1  ;;  %4319 = vmatpush3.bf16.msra.mxu1 %v4611_v24  ;;  %v4622_v24 = vld [vmem:[%s5768_s6 + $0x20] sm:$0xff]  }
0x14b7   :  { %4320 = vmatprep.subr.bf16.mxu1 %v4742_v1 }
0x14ba   :  { %4321 = vmatpush3.bf16.msra.mxu1 %v4612_v25  ;;  %v4623_v25 = vld [vmem:[%s5768_s6 + $0x18] sm:$0xff]  }
0x14bb   :  { %4326 = vmatprep.subr.bf16.mxu1 %v4742_v1 }
0x1575   :  { %v1653_v63 = vpop.f32.mrf.mxu1 }
0x1576   :  { %v1654_v2 = vadd.f32 %v1653_v63, %v1603_v61 }
0x1577   :  { %v4296_v3 = vpop.f32.mrf.mxu1 }
0x1578   :  { %v1659_v58 = vmax.f32 %v1654_v2, 0.0  ;;  %v5326_v2 = vld [vmem:[%s5765_s3] sm:$0xff] }
0x1579   :  { %v1656_v5 = vpop.f32.mrf.mxu1  ;;  %v2049_v31 = vrot.slane %v5326_v2, %v4876_v47  ;;  %v2054_v34 = vrot.slane %v5326_v2, %v4879_v48 }
0x157a   :  { %v1660_v8 = vpack.c.bf16 %v1659_v58, %v1659_v58 }
0x157b   :  { %v4297_v9 = vpop.f32.mrf.mxu1 }
0x157c   :  { %4315 = vmatmul.mubr.bf16.vlgmr.msra.gmra.mxu0 %v1660_v8 }
0x157d   :  { %4366 = vmatprep.mubr.msk.bf16.mxu0 %vm4743_vm0, %v4742_v1 }
0x163c   :  { %v1747_v11 = vpop.f32.mrf.mxu0 }
0x163d   :  { %v1748_v12 = vadd.f32 %v1747_v11, %v1664_v10 }
0x163e   :  { %v4316_v13 = vpop.f32.mrf.mxu0 }
0x163f   :  { %v1753_v14 = vadd.f32 %v1748_v12, %v1598_v56 }
0x1640   :  { %v1750_v15 = vpop.f32.mrf.mxu0 }
0x1641   :  { %v1754_v49 = vsel %vm107_vm1, %v1753_v14, 0.0 }
0x1642   :  { %1755 = vadd.xlane.f32.xlu0 %v1754_v49  ;;  %v4317_v20 = vpop.f32.mrf.mxu0 }
0x16cb   :  { %v1756_v16 = vpop.xlane.xlu0 %1755 }
0x16cc   :  { %v1757_v17 = vmul.f32 0.03125, %v1756_v16  ;;  %v4617_v16 = vld [vmem:[%s5766_s4 + $0x8] sm:$0xff]  }
0x16ce   :  { %v1758_v18 = vsub.f32 %v1753_v14, %v1757_v17  ;;  %v4618_v17 = vld [vmem:[%s5766_s4] sm:$0xff]  }
0x16d0   :  { %v1759_v19 = vmul.f32 %v1758_v18, %v1758_v18 }
0x16d2   :  { %v1760_v23 = vsel %vm107_vm1, %v1759_v19, 0.0  ;;  %v4620_v19 = vld [vmem:[%s5768_s6 + $0x30] sm:$0xff]  }
0x16d3   :  { %1761 = vadd.xlane.f32.xlu1 %v1760_v23  ;;  %v4621_v23 = vld [vmem:[%s5768_s6 + $0x28] sm:$0xff]  }
0x175c   :  { %v1762_v28 = vpop.xlane.xlu1 %1761 }
0x175d   :  { %v1763_v29 = vmul.f32 0.03125, %v1762_v28  ;;  %v4624_v28 = vld [vmem:[%s5768_s6 + $0x10] sm:$0xff]  }
0x175f   :  { %v1764_v30 = vadd.f32 1e-05, %v1763_v29 }
0x1761   :  { %4695 = vrsqrt.f32 %v1764_v30 }
0x176e   :  { %v4696_v36 = vpop.eup %4695 }
0x176f   :  { %v1766_v51 = vmul.f32 %v4696_v36, %v1758_v18  ;;  %v4619_v18 = vld [vmem:[%s5768_s6 + $0x38] sm:$0xff]  }
0x1770   :  { %4351 = vmatpush3.bf16.msra.mxu0 %v4619_v18 }
0x1771   :  { %v1771_v38 = vmul.f32 %v1770_v35, %v1766_v51  ;;  %4352 = vmatprep.subr.bf16.mxu0 %v4742_v1 }
0x1773   :  { %v1776_v39 = vadd.f32 %v1775_v37, %v1771_v38  ;;  %v4625_v37 = vld [vmem:[%s5768_s6 + $0x8] sm:$0xff]   ;;  %v5382_v38 = vld [vmem:[%s5767_s5] sm:$0x3] }
0x1774   :  { %4353 = vmatpush3.bf16.msra.mxu0 %v4620_v19 }
0x1775   :  { %v1777_v42 = vpack.c.bf16 %v1776_v39, %v1776_v39  ;;  %4354 = vmatprep.subr.bf16.mxu0 %v4742_v1  ;;  %v2060_v39 = vrot.slane %v5382_v38, %v4837_v22 }
0x1777   :  { %4323 = vmatmul.mubr.msk.bf16.vlgmr.msra.gmra.mxu1 %vm107_vm1, %v1777_v42 }
0x1778   :  { %4327 = vmatpush3.bf16.msra.mxu1 %v4613_v41  ;;  %4330 = vmatprep.mubr.msk.bf16.mxu1 %vm4743_vm0, %v4742_v1 }
0x1779   :  { %4328 = vmatprep.subr.bf16.mxu1 %v4742_v1  ;;  %4355 = vmatpush3.bf16.msra.mxu0 %v4621_v23 }
0x177a   :  { %4356 = vmatprep.subr.bf16.mxu0 %v4742_v1 }
0x177c   :  { %4329 = vmatpush3.bf16.msra.mxu1 %v4614_v44 }
0x177d   :  { %4334 = vmatprep.subr.bf16.mxu1 %v4742_v1  ;;  %4357 = vmatpush3.bf16.msra.mxu0 %v4622_v24 }
0x177e   :  { %4358 = vmatprep.subr.bf16.mxu0 %v4742_v1 }
0x177f   :  { %4331 = vmatmul.mubr.msk.bf16.vlgmr.msra.gmra.mxu1 %vm107_vm1, %v1916_v21 }
0x1780   :  { %4338 = vmatprep.mubr.msk.bf16.mxu1 %vm4743_vm0, %v4742_v1  ;;  %4335 = vmatpush3.bf16.msra.mxu1 %v4615_v45 }
0x1781   :  { %4336 = vmatprep.subr.bf16.mxu1 %v4742_v1  ;;  %4359 = vmatpush3.bf16.msra.mxu0 %v4623_v25  ;;  %v4629_v25 = vld [vmem:[%s5764_s2 + $0x78] sm:$0xff]  }
0x1782   :  { %4360 = vmatprep.subr.bf16.mxu0 %v4742_v1 }
0x1784   :  { %4337 = vmatpush3.bf16.msra.mxu1 %v4616_v46  ;;  %v2121_v46 = vrot.slane %v5326_v2, %v4906_v4 }
0x1785   :  { %4342 = vmatprep.subr.bf16.mxu1 %v4742_v1  ;;  %4361 = vmatpush3.bf16.msra.mxu0 %v4624_v28 }
0x1786   :  { %4362 = vmatprep.subr.bf16.mxu0 %v4742_v1 }
0x1789   :  { %4363 = vmatpush3.bf16.msra.mxu0 %v4625_v37 }
0x178a   :  { %4364 = vmatprep.subr.bf16.mxu0 %v4742_v1 }
0x178d   :  { %4365 = vmatpush3.bf16.msra.mxu0 %v4626_v6 }
0x178e   :  { %4414 = vmatprep.subr.bf16.mxu0 %v4742_v1 }
0x1837   :  { %v1833_v53 = vpop.f32.mrf.mxu1 }
0x1838   :  { %v1834_v52 = vadd.f32 %v3782_v50, %v1833_v53 }
0x1839   :  { %v4324_v54 = vpop.f32.mrf.mxu1 }
0x183a   :  { %1839 = vst [vmem:[#allocation2] sm:$0xff] %v1834_v52 }
0x183b   :  { %v1836_v55 = vpop.f32.mrf.mxu1 }
0x183d   :  { %v4325_v56 = vpop.f32.mrf.mxu1 }
0x183f   :  { %v1966_v57 = vpop.f32.mrf.mxu1 }
0x1840   :  { %v1972_v59 = vpack.c.bf16 %v1966_v57, %v1966_v57 }
0x1841   :  { %v4332_v60 = vpop.f32.mrf.mxu1 }
0x1842   :  { %4339 = vmatmul.mubr.msk.bf16.vlgmr.msra.gmra.mxu1 %vm107_vm1, %v1972_v59 }
0x1843   :  { %v1969_v61 = vpop.f32.mrf.mxu1  ;;  %4346 = vmatprep.mubr.msk.bf16.mxu1 %vm4743_vm0, %v4742_v1  ;;  %4343 = vmatpush3.bf16.msra.mxu1 %v4617_v16 }
0x1844   :  { %4344 = vmatprep.subr.bf16.mxu1 %v4742_v1 }
0x1845   :  { %v4333_v63 = vpop.f32.mrf.mxu1 }
0x1847   :  { %4345 = vmatpush3.bf16.msra.mxu1 %v4618_v17 }
0x1848   :  { %4370 = vmatprep.subr.bf16.mxu1 %v4742_v1 }
0x1902   :  { %v2022_v3 = vpop.f32.mrf.mxu1 }
0x1903   :  { %v2023_v58 = vadd.f32 %v2022_v3, %v5326_v2 }
0x1904   :  { %v4340_v5 = vpop.f32.mrf.mxu1 }
0x1905   :  { %v2031_v8 = vrot.slane %v2023_v58, %v4837_v22  ;;  %v4627_v58 = vld [vmem:[%s5764_s2 + $0x68] sm:$0xff]   ;;  %v4628_v5 = vld [vmem:[%s5764_s2 + $0x60] sm:$0xff]  }
0x1906   :  { %v2025_v9 = vpop.f32.mrf.mxu1 }
0x1907   :  { %v2032_v10 = vadd.f32 %v3786_v7, %v2031_v8 }
0x1908   :  { %v4341_v11 = vpop.f32.mrf.mxu1 }
0x1909   :  { %v2033_v12 = vsel %vm107_vm1, %v2032_v10, 0.0  ;;  %v2227_v11 = vrot.slane %v5326_v2, %v4921_v26 }
0x190a   :  { %2034 = vadd.xlane.f32.xlu0 %v2033_v12 }
0x1993   :  { %v2035_v13 = vpop.xlane.xlu0 %2034 }
0x1994   :  { %v2036_v14 = vmul.f32 0.03125, %v2035_v13 }
0x1996   :  { %v2037_v15 = vsub.f32 %v2032_v10, %v2036_v14  ;;  %v2232_v14 = vrot.slane %v5326_v2, %v4924_v27 }
0x1998   :  { %v2038_v49 = vmul.f32 %v2037_v15, %v2037_v15 }
0x199a   :  { %v2039_v20 = vsel %vm107_vm1, %v2038_v49, 0.0 }
0x199b   :  { %2040 = vadd.xlane.f32.xlu1 %v2039_v20 }
0x1a24   :  { %v2041_v29 = vpop.xlane.xlu1 %2040 }
0x1a25   :  { %v2042_v7 = vmul.f32 0.03125, %v2041_v29  ;;  %v4630_v29 = vld [vmem:[%s5764_s2 + $0x70] sm:$0xff]  }
0x1a27   :  { %v2043_v30 = vadd.f32 1e-05, %v2042_v7 }
0x1a29   :  { %4697 = vrsqrt.f32 %v2043_v30 }
0x1a36   :  { %v4698_v32 = vpop.eup %4697 }
0x1a37   :  { %v2045_v33 = vmul.f32 %v4698_v32, %v2037_v15 }
0x1a39   :  { %v2050_v35 = vmul.f32 %v2049_v31, %v2045_v33 }
0x1a3b   :  { %v2055_v36 = vadd.f32 %v2054_v34, %v2050_v35  ;;  %v5422_v34 = vld [vmem:[%s5765_s3 + $0x10] sm:$0xff] }
0x1a3d   :  { %v2056_v51 = vpack.c.bf16 %v2055_v36, %v2055_v36 }
0x1a3f   :  { %4347 = vmatmul.mubr.msk.bf16.vlgmr.msra.gmra.mxu1 %vm107_vm1, %v2056_v51 }
0x1a40   :  { %4374 = vmatprep.mubr.msk.bf16.mxu1 %vm4743_vm0, %v4742_v1  ;;  %4371 = vmatpush3.bf16.msra.mxu1 %v4627_v58 }
0x1a41   :  { %4372 = vmatprep.subr.bf16.mxu1 %v4742_v1 }
0x1a44   :  { %4373 = vmatpush3.bf16.msra.mxu1 %v4628_v5 }
0x1a45   :  { %4378 = vmatprep.subr.bf16.mxu1 %v4742_v1 }
0x1aff   :  { %v2110_v40 = vpop.f32.mrf.mxu1 }
0x1b00   :  { %v2111_v41 = vadd.f32 %v2110_v40, %v2060_v39 }
0x1b01   :  { %v4348_v42 = vpop.f32.mrf.mxu1 }
0x1b02   :  { %v2116_v43 = vmax.f32 %v2111_v41, 0.0 }
0x1b03   :  { %v2113_v44 = vpop.f32.mrf.mxu1 }
0x1b04   :  { %v2117_v21 = vpack.c.bf16 %v2116_v43, %v2116_v43 }
0x1b05   :  { %v4349_v45 = vpop.f32.mrf.mxu1 }
0x1b06   :  { %4367 = vmatmul.mubr.bf16.vlgmr.msra.gmra.mxu0 %v2117_v21 }
0x1b07   :  { %4418 = vmatprep.mubr.msk.bf16.mxu0 %vm4743_vm0, %v4742_v1 }
0x1bc6   :  { %v2204_v50 = vpop.f32.mrf.mxu0 }
0x1bc7   :  { %v2205_v53 = vadd.f32 %v2204_v50, %v2121_v46  ;;  %v4631_v46 = vld [vmem:[%s5766_s4 + $0x28] sm:$0xff]   ;;  %v4632_v50 = vld [vmem:[%s5766_s4 + $0x20] sm:$0xff]  }
0x1bc8   :  { %v4368_v52 = vpop.f32.mrf.mxu0 }
0x1bc9   :  { %v2210_v54 = vadd.f32 %v2205_v53, %v2055_v36  ;;  %v4633_v53 = vld [vmem:[%s5764_s2 + $0x28] sm:$0xff]  }
0x1bca   :  { %v2207_v55 = vpop.f32.mrf.mxu0  ;;  %v5442_v52 = vld [vmem:[%s5763_s1 + $0x8] sm:$0xff]  ;;  %4415 = vmatpush3.bf16.msra.mxu0 %v4633_v53 }
0x1bcb   :  { %v2211_v56 = vsel %vm107_vm1, %v2210_v54, 0.0  ;;  %v4634_v55 = vld [vmem:[%s5764_s2 + $0x20] sm:$0xff]   ;;  %4416 = vmatprep.subr.bf16.mxu0 %v4742_v1 }
0x1bcc   :  { %2212 = vadd.xlane.f32.xlu0 %v2211_v56  ;;  %v4369_v57 = vpop.f32.mrf.mxu0 }
0x1bce   :  { %4417 = vmatpush3.bf16.msra.mxu0 %v4634_v55 }
0x1bcf   :  { %4422 = vmatprep.subr.bf16.mxu0 %v4742_v1 }
0x1c55   :  { %v2213_v59 = vpop.xlane.xlu0 %2212 }
0x1c56   :  { %v2214_v60 = vmul.f32 0.03125, %v2213_v59 }
0x1c58   :  { %v2215_v61 = vsub.f32 %v2210_v54, %v2214_v60  ;;  %v2635_v54 = vsel %vm107_vm1, %v5442_v52, 0.0 }
0x1c59   :  { %v2636_v56 = vrot.slane %v2635_v54, 4 }
0x1c5a   :  { %v2216_v63 = vmul.f32 %v2215_v61, %v2215_v61 }
0x1c5b   :  { %v2637_v57 = vadd.f32 %v2636_v56, %v2635_v54 }
0x1c5c   :  { %v2217_v3 = vsel %vm107_vm1, %v2216_v63, 0.0 }
0x1c5d   :  { %2218 = vadd.xlane.f32.xlu1 %v2217_v3  ;;  %v2638_v59 = vrot.slane %v2637_v57, 2 }
0x1c5f   :  { %v2639_v60 = vadd.f32 %v2638_v59, %v2637_v57 }
0x1ce6   :  { %v2219_v8 = vpop.xlane.xlu1 %2218 }
0x1ce7   :  { %v2220_v9 = vmul.f32 0.03125, %v2219_v8 }
0x1ce9   :  { %v2221_v10 = vadd.f32 1e-05, %v2220_v9  ;;  %v2441_v9 = vrot.slane %v5422_v34, %v4876_v47 }
0x1ceb   :  { %4699 = vrsqrt.f32 %v2221_v10 }
0x1cf8   :  { %v4700_v12 = vpop.eup %4699 }
0x1cf9   :  { %v2223_v13 = vmul.f32 %v4700_v12, %v2215_v61  ;;  %v2640_v61 = vrot.slane %v2639_v60, 1  ;;  %v2446_v12 = vrot.slane %v5422_v34, %v4879_v48 }
0x1cfb   :  { %v2228_v15 = vmul.f32 %v2227_v11, %v2223_v13  ;;  %v2641_v63 = vadd.f32 %v2640_v61, %v2639_v60 }
0x1cfd   :  { %v2233_v49 = vadd.f32 %v2232_v14, %v2228_v15  ;;  %v2642_v3 = vpack.c.bf16 %v2641_v63, %v2641_v63  ;;  %v4635_v15 = vld [vmem:[%s5768_s6 + $0xb8] sm:$0xff]  }
0x1cff   :  { %v2301_v20 = vsel %vm107_vm1, %v2233_v49, 0.0  ;;  %4419 = vmatmul.mubr.msk.bf16.vlgmr.msra.gmra.mxu0 %vm107_vm1, %v2642_v3 }
0x1d00   :  { %v2302_v16 = vrot.slane %v2301_v20, 4  ;;  %4426 = vmatprep.mubr.msk.bf16.mxu0 %vm4743_vm0, %v4742_v1 }
0x1d02   :  { %v2303_v17 = vadd.f32 %v2302_v16, %v2301_v20  ;;  %v4636_v20 = vld [vmem:[%s5768_s6 + $0xb0] sm:$0xff]   ;;  %v4637_v16 = vld [vmem:[%s5768_s6 + $0xa8] sm:$0xff]  }
0x1d04   :  { %v2304_v18 = vrot.slane %v2303_v17, 2 }
0x1d06   :  { %v2305_v19 = vadd.f32 %v2304_v18, %v2303_v17  ;;  %v4638_v17 = vld [vmem:[%s5768_s6 + $0xa0] sm:$0xff]   ;;  %v4639_v18 = vld [vmem:[%s5768_s6 + $0x98] sm:$0xff]  }
0x1d08   :  { %v2306_v23 = vrot.slane %v2305_v19, 1 }
0x1d0a   :  { %v2307_v24 = vadd.f32 %v2306_v23, %v2305_v19  ;;  %v4640_v19 = vld [vmem:[%s5768_s6 + $0x90] sm:$0xff]   ;;  %v4641_v23 = vld [vmem:[%s5768_s6 + $0x88] sm:$0xff]  }
0x1d0c   :  { %v2308_v28 = vpack.c.bf16 %v2307_v24, %v2307_v24  ;;  %v4642_v24 = vld [vmem:[%s5768_s6 + $0x80] sm:$0xff]  }
0x1d0e   :  { %4375 = vmatmul.mubr.msk.bf16.vlgmr.msra.gmra.mxu1 %vm107_vm1, %v2308_v28  ;;  %v4644_v28 = vld [vmem:[%s5764_s2 + $0x30] sm:$0xff]  }
0x1d0f   :  { %4379 = vmatpush3.bf16.msra.mxu1 %v4629_v25  ;;  %4382 = vmatprep.mubr.msk.bf16.mxu1 %vm4743_vm0, %v4742_v1  ;;  %v4643_v25 = vld [vmem:[%s5764_s2 + $0x38] sm:$0xff]  }
0x1d10   :  { %4380 = vmatprep.subr.bf16.mxu1 %v4742_v1  ;;  %4423 = vmatpush3.bf16.msra.mxu0 %v4643_v25 }
0x1d11   :  { %4424 = vmatprep.subr.bf16.mxu0 %v4742_v1 }
0x1d13   :  { %4381 = vmatpush3.bf16.msra.mxu1 %v4630_v29 }
0x1d14   :  { %4386 = vmatprep.subr.bf16.mxu1 %v4742_v1  ;;  %4425 = vmatpush3.bf16.msra.mxu0 %v4644_v28 }
0x1d15   :  { %4430 = vmatprep.subr.bf16.mxu0 %v4742_v1 }
0x1dbf   :  { %v2692_v29 = vpop.f32.mrf.mxu0 }
0x1dce   :  { %v2358_v7 = vpop.f32.mrf.mxu1 }
0x1dcf   :  { %v2364_v30 = vpack.c.bf16 %v2358_v7, %v2358_v7  ;;  %v2698_v7 = vpack.c.bf16 %v2692_v29, %v2692_v29 }
0x1dd0   :  { %v4376_v31 = vpop.f32.mrf.mxu1 }
0x1dd1   :  { %4383 = vmatmul.mubr.msk.bf16.vlgmr.msra.gmra.mxu1 %vm107_vm1, %v2364_v30  ;;  %v4420_v30 = vpop.f32.mrf.mxu0  ;;  %4427 = vmatmul.mubr.msk.bf16.vlgmr.msra.gmra.mxu0 %vm107_vm1, %v2698_v7 }
0x1dd2   :  { %v2361_v32 = vpop.f32.mrf.mxu1  ;;  %4390 = vmatprep.mubr.msk.bf16.mxu1 %vm4743_vm0, %v4742_v1  ;;  %4387 = vmatpush3.bf16.msra.mxu1 %v4631_v46 }
0x1dd3   :  { %4388 = vmatprep.subr.bf16.mxu1 %v4742_v1  ;;  %v2695_v31 = vpop.f32.mrf.mxu0  ;;  %4434 = vmatprep.mubr.msk.bf16.mxu0 %vm4743_vm0, %v4742_v1 }
0x1dd4   :  { %v4377_v33 = vpop.f32.mrf.mxu1 }
0x1dd5   :  { %v4421_v32 = vpop.f32.mrf.mxu0  ;;  %v5511_v33 = vld [vmem:[%s5767_s5 + $0x2] sm:$0x3] }
0x1dd6   :  { %4389 = vmatpush3.bf16.msra.mxu1 %v4632_v50  ;;  %v2513_v50 = vrot.slane %v5422_v34, %v4906_v4 }
0x1dd7   :  { %4394 = vmatprep.subr.bf16.mxu1 %v4742_v1 }
0x1e91   :  { %v2414_v35 = vpop.f32.mrf.mxu1 }
0x1e92   :  { %v2415_v36 = vadd.f32 %v5422_v34, %v2414_v35  ;;  %v2452_v35 = vrot.slane %v5511_v33, %v4837_v22 }
0x1e93   :  { %v4384_v51 = vpop.f32.mrf.mxu1 }
0x1e94   :  { %v2423_v37 = vrot.slane %v2415_v36, %v4837_v22 }
0x1e95   :  { %v2417_v6 = vpop.f32.mrf.mxu1 }
0x1e96   :  { %v2424_v39 = vadd.f32 %v2423_v37, %v2233_v49 }
0x1e97   :  { %v4385_v40 = vpop.f32.mrf.mxu1 }
0x1e98   :  { %v2425_v41 = vsel %vm107_vm1, %v2424_v39, 0.0 }
0x1e99   :  { %2426 = vadd.xlane.f32.xlu0 %v2425_v41 }
0x1f22   :  { %v2427_v42 = vpop.xlane.xlu0 %2426 }
0x1f23   :  { %v2428_v43 = vmul.f32 0.03125, %v2427_v42  ;;  %v2751_v42 = vpop.f32.mrf.mxu0 }
0x1f25   :  { %v2429_v44 = vsub.f32 %v2424_v39, %v2428_v43  ;;  %v4428_v43 = vpop.f32.mrf.mxu0 }
0x1f27   :  { %v2430_v21 = vmul.f32 %v2429_v44, %v2429_v44 }
0x1f29   :  { %v2431_v45 = vsel %vm107_vm1, %v2430_v21, 0.0 }
0x1f2a   :  { %2432 = vadd.xlane.f32.xlu1 %v2431_v45  ;;  %v2712_v45 = vrot.slane %v5326_v2, 6 }
0x1f2c   :  { %v2752_v46 = vadd.f32 %v2751_v42, %v2712_v45 }
0x1f2e   :  { %v2760_v53 = vrot.slane %v2752_v46, %v4837_v22 }
0x1f30   :  { %v2761_v59 = vadd.f32 %v5442_v52, %v2760_v53  ;;  %v2778_v53 = vrot.slane %v5326_v2, %v5084_v0 }
0x1f32   :  { %v2762_v3 = vsel %vm107_vm1, %v2761_v59, 0.0 }
0x1fb3   :  { %v2433_v58 = vpop.xlane.xlu1 %2432 }
0x1fb4   :  { %v2434_v5 = vmul.f32 0.03125, %v2433_v58 }
0x1fb6   :  { %v2435_v8 = vadd.f32 1e-05, %v2434_v5 }
0x1fb8   :  { %4701 = vrsqrt.f32 %v2435_v8 }
0x1fc5   :  { %v4702_v10 = vpop.eup %4701 }
0x1fc6   :  { %v2437_v11 = vmul.f32 %v4702_v10, %v2429_v44  ;;  %v2754_v44 = vpop.f32.mrf.mxu0 }
0x1fc8   :  { %v2442_v13 = vmul.f32 %v2441_v9, %v2437_v11  ;;  %v4429_v21 = vpop.f32.mrf.mxu0 }
0x1fca   :  { %v5458_v14 = vadd.f32 %v2446_v12, %v2442_v13 }
0x1fcc   :  { %v2448_v49 = vpack.c.bf16 %v5458_v14, %v5458_v14 }
0x1fce   :  { %4391 = vmatmul.mubr.msk.bf16.vlgmr.msra.gmra.mxu1 %vm107_vm1, %v2448_v49  ;;  %v4646_v49 = vld [vmem:[%s5764_s2 + $0x40] sm:$0xff]  }
0x1fcf   :  { %4395 = vmatpush3.bf16.msra.mxu1 %v4635_v15  ;;  %4410 = vmatprep.mubr.msk.bf16.mxu1 %vm4743_vm0, %v4742_v1  ;;  %v4645_v15 = vld [vmem:[%s5764_s2 + $0x48] sm:$0xff]  }
0x1fd0   :  { %4396 = vmatprep.subr.bf16.mxu1 %v4742_v1  ;;  %4431 = vmatpush3.bf16.msra.mxu0 %v4645_v15  ;;  %v4651_v15 = vld [vmem:[%s5768_s6 + $0x78] sm:$0xff]  }
0x1fd1   :  { %4432 = vmatprep.subr.bf16.mxu0 %v4742_v1 }
0x1fd3   :  { %4397 = vmatpush3.bf16.msra.mxu1 %v4636_v20 }
0x1fd4   :  { %4398 = vmatprep.subr.bf16.mxu1 %v4742_v1  ;;  %4433 = vmatpush3.bf16.msra.mxu0 %v4646_v49  ;;  %v4652_v49 = vld [vmem:[%s5768_s6 + $0x70] sm:$0xff]  }
0x1fd5   :  { %4438 = vmatprep.subr.bf16.mxu0 %v4742_v1 }
0x1fd7   :  { %4399 = vmatpush3.bf16.msra.mxu1 %v4637_v16 }
0x1fd8   :  { %4400 = vmatprep.subr.bf16.mxu1 %v4742_v1 }
0x1fdb   :  { %4401 = vmatpush3.bf16.msra.mxu1 %v4638_v17 }
0x1fdc   :  { %4402 = vmatprep.subr.bf16.mxu1 %v4742_v1 }
0x1fdf   :  { %4403 = vmatpush3.bf16.msra.mxu1 %v4639_v18  ;;  %v2619_v18 = vrot.slane %v5422_v34, %v4921_v26 }
0x1fe0   :  { %4404 = vmatprep.subr.bf16.mxu1 %v4742_v1 }
0x1fe3   :  { %4405 = vmatpush3.bf16.msra.mxu1 %v4640_v19 }
0x1fe4   :  { %4406 = vmatprep.subr.bf16.mxu1 %v4742_v1 }
0x1fe7   :  { %4407 = vmatpush3.bf16.msra.mxu1 %v4641_v23 }
0x1fe8   :  { %4408 = vmatprep.subr.bf16.mxu1 %v4742_v1 }
0x1feb   :  { %4409 = vmatpush3.bf16.msra.mxu1 %v4642_v24  ;;  %v2624_v24 = vrot.slane %v5422_v34, %v4924_v27 }
0x1fec   :  { %4446 = vmatprep.subr.bf16.mxu1 %v4742_v1 }
0x208e   :  { %v2502_v36 = vpop.f32.mrf.mxu1 }
0x208f   :  { %v2503_v51 = vadd.f32 %v2502_v36, %v2452_v35 }
0x2090   :  { %v4392_v37 = vpop.f32.mrf.mxu1 }
0x2091   :  { %v2508_v6 = vmax.f32 %v2503_v51, 0.0  ;;  %v4647_v51 = vld [vmem:[%s5764_s2 + $0x58] sm:$0xff]  }
0x2092   :  { %v2505_v39 = vpop.f32.mrf.mxu1 }
0x2093   :  { %v2509_v40 = vpack.c.bf16 %v2508_v6, %v2508_v6  ;;  %v4648_v6 = vld [vmem:[%s5764_s2 + $0x50] sm:$0xff]  }
0x2094   :  { %v4393_v41 = vpop.f32.mrf.mxu1 }
0x2095   :  { %4411 = vmatmul.mubr.bf16.vlgmr.msra.gmra.mxu1 %v2509_v40 }
0x2096   :  { %4450 = vmatprep.mubr.msk.bf16.mxu1 %vm4743_vm0, %v4742_v1 }
0x2155   :  { %v2596_v54 = vpop.f32.mrf.mxu1 }
0x2156   :  { %v2597_v55 = vadd.f32 %v2596_v54, %v2513_v50  ;;  %v5562_v54 = vld [vmem:[%s5765_s3 + $0x8] sm:$0x7f] }
0x2157   :  { %v4412_v56 = vpop.f32.mrf.mxu1 }
0x2158   :  { %v2602_v57 = vadd.f32 %v2597_v55, %v5458_v14  ;;  %v2855_v55 = vrot.slane %v5562_v54, 1 }
0x2159   :  { %v2599_v60 = vpop.f32.mrf.mxu1 }
0x215a   :  { %v2603_v61 = vsel %vm107_vm1, %v2602_v57, 0.0 }
0x215b   :  { %2604 = vadd.xlane.f32.xlu0 %v2603_v61  ;;  %v4413_v63 = vpop.f32.mrf.mxu1 }
0x215f   :  { %2763 = vadd.xlane.f32.xlu0 %v2762_v3 }
0x21e4   :  { %v2605_v58 = vpop.xlane.xlu0 %2604 }
0x21e5   :  { %v2606_v5 = vmul.f32 0.03125, %v2605_v58 }
0x21e7   :  { %v2607_v8 = vsub.f32 %v2602_v57, %v2606_v5  ;;  %v2783_v57 = vrot.slane %v5562_v54, %v4837_v22 }
0x21e8   :  { %v2764_v9 = vpop.xlane.xlu0 %2763 }
0x21e9   :  { %v2608_v10 = vmul.f32 %v2607_v8, %v2607_v8  ;;  %v2765_v11 = vmul.f32 0.03125, %v2764_v9 }
0x21eb   :  { %v2609_v12 = vsel %vm107_vm1, %v2608_v10, 0.0  ;;  %v2766_v13 = vsub.f32 %v2761_v59, %v2765_v11 }
0x21ec   :  { %2610 = vadd.xlane.f32.xlu1 %v2609_v12 }
0x21ed   :  { %v2767_v14 = vmul.f32 %v2766_v13, %v2766_v13 }
0x21ef   :  { %v2768_v52 = vsel %vm107_vm1, %v2767_v14, 0.0  ;;  %v4649_v14 = vld [vmem:[%s5766_s4 + $0x18] sm:$0xff]  }
0x21f0   :  { %2769 = vadd.xlane.f32.xlu1 %v2768_v52  ;;  %4447 = vmatpush3.bf16.msra.mxu1 %v4649_v14  ;;  %v4650_v52 = vld [vmem:[%s5766_s4 + $0x10] sm:$0xff]  }
0x21f1   :  { %4448 = vmatprep.subr.bf16.mxu1 %v4742_v1 }
0x21f4   :  { %4449 = vmatpush3.bf16.msra.mxu1 %v4650_v52 }
0x21f5   :  { %4474 = vmatprep.subr.bf16.mxu1 %v4742_v1 }
0x2275   :  { %v2611_v20 = vpop.xlane.xlu1 %2610 }
0x2276   :  { %v2612_v16 = vmul.f32 0.03125, %v2611_v20  ;;  %v4653_v20 = vld [vmem:[%s5768_s6 + $0x68] sm:$0xff]  }
0x2278   :  { %v2613_v17 = vadd.f32 1e-05, %v2612_v16  ;;  %v4654_v16 = vld [vmem:[%s5768_s6 + $0x60] sm:$0xff]  }
0x2279   :  { %v2770_v44 = vpop.xlane.xlu1 %2769 }
0x227a   :  { %4703 = vrsqrt.f32 %v2613_v17  ;;  %v2771_v21 = vmul.f32 0.03125, %v2770_v44  ;;  %v4655_v17 = vld [vmem:[%s5768_s6 + $0x58] sm:$0xff]  }
0x227c   :  { %v2772_v45 = vadd.f32 1e-05, %v2771_v21  ;;  %v2993_v21 = vrot.slane %v5562_v54, %v5151_v62 }
0x227e   :  { %4705 = vrsqrt.f32 %v2772_v45 }
0x2287   :  { %v4704_v19 = vpop.eup %4703 }
0x2288   :  { %v2615_v23 = vmul.f32 %v4704_v19, %v2607_v8 }
0x228a   :  { %v2620_v25 = vmul.f32 %v2619_v18, %v2615_v23  ;;  %v4656_v18 = vld [vmem:[%s5768_s6 + $0x50] sm:$0xff]  }
0x228b   :  { %v4706_v46 = vpop.eup %4705 }
0x228c   :  { %v2625_v28 = vadd.f32 %v2624_v24, %v2620_v25  ;;  %v2774_v50 = vmul.f32 %v4706_v46, %v2766_v13  ;;  %v2921_v25 = vrot.slane %v5562_v54, %v4879_v48 }
0x228e   :  { %v2626_v29 = vsel %vm107_vm1, %v2625_v28, 0.0  ;;  %v2779_v56 = vmul.f32 %v2778_v53, %v2774_v50 }
0x228f   :  { %v2627_v7 = vrot.slane %v2626_v29, 4 }
0x2290   :  { %v2784_v3 = vadd.f32 %v2783_v57, %v2779_v56 }
0x2291   :  { %v2628_v30 = vadd.f32 %v2627_v7, %v2626_v29  ;;  %v2926_v7 = vrot.slane %v5562_v54, %v4921_v26 }
0x2293   :  { %v2629_v31 = vrot.slane %v2628_v30, 2 }
0x2295   :  { %v2630_v32 = vadd.f32 %v2629_v31, %v2628_v30 }
0x2297   :  { %v2631_v35 = vrot.slane %v2630_v32, 1 }
0x2299   :  { %v2632_v36 = vadd.f32 %v2631_v35, %v2630_v32  ;;  %v4657_v35 = vld [vmem:[%s5768_s6 + $0x48] sm:$0xff]  }
0x229b   :  { %v5543_v37 = vpack.c.bf16 %v2632_v36, %v2632_v36  ;;  %v4658_v36 = vld [vmem:[%s5768_s6 + $0x40] sm:$0xff]  }
0x229d   :  { %4435 = vmatmul.mubr.msk.bf16.vlgmr.msra.gmra.mxu0 %vm107_vm1, %v5543_v37 }
0x229e   :  { %4439 = vmatpush3.bf16.msra.mxu0 %v4647_v51  ;;  %4442 = vmatprep.mubr.msk.bf16.mxu0 %vm4743_vm0, %v4742_v1  ;;  %v2932_v51 = vrot.slane %v5382_v38, %v4876_v47 }
0x229f   :  { %4440 = vmatprep.subr.bf16.mxu0 %v4742_v1 }
0x22a2   :  { %4441 = vmatpush3.bf16.msra.mxu0 %v4648_v6 }
0x22a3   :  { %4454 = vmatprep.subr.bf16.mxu0 %v4742_v1 }
0x235d   :  { %v2835_v39 = vpop.f32.mrf.mxu0 }
0x235e   :  { %v2841_v40 = vpack.c.bf16 %v2835_v39, %v2835_v39 }
0x235f   :  { %v4436_v41 = vpop.f32.mrf.mxu0 }
0x2360   :  { %4443 = vmatmul.mubr.msk.bf16.vlgmr.msra.gmra.mxu0 %vm107_vm1, %v2841_v40 }
0x2361   :  { %v2838_v42 = vpop.f32.mrf.mxu0  ;;  %4470 = vmatprep.mubr.msk.bf16.mxu0 %vm4743_vm0, %v4742_v1  ;;  %4455 = vmatpush3.bf16.msra.mxu0 %v4651_v15 }
0x2362   :  { %4456 = vmatprep.subr.bf16.mxu0 %v4742_v1 }
0x2363   :  { %v4437_v43 = vpop.f32.mrf.mxu0 }
0x2365   :  { %4457 = vmatpush3.bf16.msra.mxu0 %v4652_v49 }
0x2366   :  { %4458 = vmatprep.subr.bf16.mxu0 %v4742_v1 }
0x2369   :  { %4459 = vmatpush3.bf16.msra.mxu0 %v4653_v20 }
0x236a   :  { %4460 = vmatprep.subr.bf16.mxu0 %v4742_v1 }
0x236d   :  { %4461 = vmatpush3.bf16.msra.mxu0 %v4654_v16 }
0x236e   :  { %4462 = vmatprep.subr.bf16.mxu0 %v4742_v1 }
0x2371   :  { %4463 = vmatpush3.bf16.msra.mxu0 %v4655_v17 }
0x2372   :  { %4464 = vmatprep.subr.bf16.mxu0 %v4742_v1 }
0x2375   :  { %4465 = vmatpush3.bf16.msra.mxu0 %v4656_v18 }
0x2376   :  { %4466 = vmatprep.subr.bf16.mxu0 %v4742_v1 }
0x2379   :  { %4467 = vmatpush3.bf16.msra.mxu0 %v4657_v35  ;;  %v4666_v35 = vld [vmem:[%s5764_s2 + $0xb0] sm:$0xff]  }
0x237a   :  { %4468 = vmatprep.subr.bf16.mxu0 %v4742_v1 }
0x237d   :  { %4469 = vmatpush3.bf16.msra.mxu0 %v4658_v36  ;;  %v3183_v36 = vrot.slane %v5422_v34, 6 }
0x237e   :  { %4506 = vmatprep.subr.bf16.mxu0 %v4742_v1 }
0x2420   :  { %v2894_v59 = vpop.f32.mrf.mxu0 }
0x2421   :  { %v2895_v60 = vadd.f32 %v2894_v59, %v2855_v55 }
0x2422   :  { %v4444_v61 = vpop.f32.mrf.mxu0 }
0x2423   :  { %v2903_v63 = vrot.slane %v2895_v60, %v4837_v22 }
0x2424   :  { %v2897_v58 = vpop.f32.mrf.mxu0 }
0x2425   :  { %v2904_v5 = vadd.f32 %v2903_v63, %v2784_v3  ;;  %v4659_v3 = vld [vmem:[%s5764_s2 + $0x88] sm:$0xff]   ;;  %v4660_v58 = vld [vmem:[%s5764_s2 + $0x80] sm:$0xff]  }
0x2426   :  { %v4445_v2 = vpop.f32.mrf.mxu0 }
0x2427   :  { %v2905_v8 = vsel %vm107_vm1, %v2904_v5, 0.0 }
0x2428   :  { %2906 = vadd.xlane.f32.xlu0 %v2905_v8 }
0x24b1   :  { %v2907_v9 = vpop.xlane.xlu0 %2906 }
0x24b2   :  { %v2908_v10 = vmul.f32 0.03125, %v2907_v9  ;;  %v3099_v9 = vrot.slane %v5562_v54, %v4924_v27 }
0x24b4   :  { %v2909_v11 = vsub.f32 %v2904_v5, %v2908_v10 }
0x24b6   :  { %v2910_v12 = vmul.f32 %v2909_v11, %v2909_v11 }
0x24b8   :  { %v2911_v13 = vsel %vm107_vm1, %v2910_v12, 0.0  ;;  %v3104_v12 = vrot.slane %v5562_v54, %v4906_v4  ;;  %v4662_v54 = vld [vmem:[%s5764_s2 + $0x90] sm:$0xff]  }
0x24b9   :  { %2912 = vadd.xlane.f32.xlu1 %v2911_v13 }
0x2542   :  { %v2913_v19 = vpop.xlane.xlu1 %2912 }
0x2543   :  { %v2914_v23 = vmul.f32 0.03125, %v2913_v19  ;;  %v4661_v19 = vld [vmem:[%s5764_s2 + $0x98] sm:$0xff]  }
0x2545   :  { %v2915_v24 = vadd.f32 1e-05, %v2914_v23 }
0x2547   :  { %4707 = vrsqrt.f32 %v2915_v24 }
0x2554   :  { %v4708_v28 = vpop.eup %4707 }
0x2555   :  { %v2917_v29 = vmul.f32 %v4708_v28, %v2909_v11 }
0x2557   :  { %v2922_v30 = vmul.f32 %v2921_v25, %v2917_v29  ;;  %v4663_v25 = vld [vmem:[%s5764_s2 + $0xa8] sm:$0xff]  }
0x2559   :  { %v2927_v31 = vadd.f32 %v2926_v7, %v2922_v30  ;;  %v4664_v30 = vld [vmem:[%s5764_s2 + $0xa0] sm:$0xff]  }
0x255b   :  { %v2928_v32 = vpack.c.bf16 %v2927_v31, %v2927_v31 }
0x255d   :  { %4451 = vmatmul.mubr.msk.bf16.vlgmr.msra.gmra.mxu1 %vm107_vm1, %v2928_v32  ;;  %v4665_v32 = vld [vmem:[%s5764_s2 + $0xb8] sm:$0xff]  }
0x255e   :  { %4478 = vmatprep.mubr.msk.bf16.mxu1 %vm4743_vm0, %v4742_v1  ;;  %4475 = vmatpush3.bf16.msra.mxu1 %v4659_v3 }
0x255f   :  { %4476 = vmatprep.subr.bf16.mxu1 %v4742_v1 }
0x2562   :  { %4477 = vmatpush3.bf16.msra.mxu1 %v4660_v58 }
0x2563   :  { %4482 = vmatprep.subr.bf16.mxu1 %v4742_v1 }
0x261d   :  { %v2982_v6 = vpop.f32.mrf.mxu1 }
0x261e   :  { %v2983_v39 = vadd.f32 %v2982_v6, %v2932_v51 }
0x261f   :  { %v4452_v40 = vpop.f32.mrf.mxu1 }
0x2620   :  { %v2988_v41 = vmax.f32 %v2983_v39, 0.0 }
0x2621   :  { %v2985_v42 = vpop.f32.mrf.mxu1 }
0x2622   :  { %v2989_v43 = vpack.c.bf16 %v2988_v41, %v2988_v41 }
0x2623   :  { %v4453_v44 = vpop.f32.mrf.mxu1 }
0x2624   :  { %4471 = vmatmul.mubr.bf16.vlgmr.msra.gmra.mxu0 %v2989_v43 }
0x2625   :  { %4510 = vmatprep.mubr.msk.bf16.mxu0 %vm4743_vm0, %v4742_v1 }
0x26e4   :  { %v3076_v45 = vpop.f32.mrf.mxu0 }
0x26e5   :  { %v3077_v46 = vadd.f32 %v3076_v45, %v2993_v21 }
0x26e6   :  { %v4472_v50 = vpop.f32.mrf.mxu0 }
0x26e7   :  { %v3082_v53 = vadd.f32 %v3077_v46, %v2927_v31 }
0x26e8   :  { %v3079_v55 = vpop.f32.mrf.mxu0 }
0x26e9   :  { %v3083_v38 = vsel %vm107_vm1, %v3082_v53, 0.0 }
0x26ea   :  { %3084 = vadd.xlane.f32.xlu0 %v3083_v38  ;;  %v4473_v56 = vpop.f32.mrf.mxu0 }
0x2773   :  { %v3085_v57 = vpop.xlane.xlu0 %3084 }
0x2774   :  { %v3086_v59 = vmul.f32 0.03125, %v3085_v57 }
0x2776   :  { %v3087_v60 = vsub.f32 %v3082_v53, %v3086_v59 }
0x2778   :  { %v3088_v61 = vmul.f32 %v3087_v60, %v3087_v60 }
0x277a   :  { %v3089_v63 = vsel %vm107_vm1, %v3088_v61, 0.0 }
0x277b   :  { %3090 = vadd.xlane.f32.xlu1 %v3089_v63 }
0x2804   :  { %v3091_v5 = vpop.xlane.xlu1 %3090 }
0x2805   :  { %v3092_v2 = vmul.f32 0.03125, %v3091_v5 }
0x2807   :  { %v3093_v8 = vadd.f32 1e-05, %v3092_v2  ;;  %v5682_v2 = vld [vmem:[%s5765_s3 + $0x18] sm:$0x7f] }
0x2809   :  { %4709 = vrsqrt.f32 %v3093_v8  ;;  %v3322_v8 = vrot.slane %v5682_v2, 1 }
0x2816   :  { %v4710_v10 = vpop.eup %4709 }
0x2817   :  { %v3095_v11 = vmul.f32 %v4710_v10, %v3087_v60 }
0x2819   :  { %v3100_v13 = vmul.f32 %v3099_v9, %v3095_v11  ;;  %v3249_v9 = vrot.slane %v5422_v34, %v5084_v0  ;;  %v4667_v34 = vld [vmem:[%s5766_s4 + $0x38] sm:$0xff]  }
0x281a   :  { %4507 = vmatpush3.bf16.msra.mxu0 %v4667_v34 }
0x281b   :  { %v3105_v14 = vadd.f32 %v3104_v12, %v3100_v13  ;;  %v3254_v13 = vrot.slane %v5682_v2, %v4837_v22  ;;  %4508 = vmatprep.subr.bf16.mxu0 %v4742_v1 }
0x281d   :  { %v3106_v52 = vsel %vm107_vm1, %v3105_v14, 0.0 }
0x281e   :  { %v3107_v15 = vrot.slane %v3106_v52, 4 }
0x2820   :  { %v3108_v49 = vadd.f32 %v3107_v15, %v3106_v52 }
0x2822   :  { %v3109_v20 = vrot.slane %v3108_v49, 2 }
0x2824   :  { %v3110_v16 = vadd.f32 %v3109_v20, %v3108_v49 }
0x2826   :  { %v3111_v17 = vrot.slane %v3110_v16, 1 }
0x2828   :  { %v3112_v18 = vadd.f32 %v3111_v17, %v3110_v16 }
0x282a   :  { %v3113_v23 = vpack.c.bf16 %v3112_v18, %v3112_v18 }
0x282c   :  { %4479 = vmatmul.mubr.msk.bf16.vlgmr.msra.gmra.mxu1 %vm107_vm1, %v3113_v23  ;;  %v4669_v23 = vld [vmem:[%s5768_s6 + $0xf8] sm:$0xff]  }
0x282d   :  { %4483 = vmatpush3.bf16.msra.mxu1 %v4661_v19  ;;  %4486 = vmatprep.mubr.msk.bf16.mxu1 %vm4743_vm0, %v4742_v1 }
0x282e   :  { %4484 = vmatprep.subr.bf16.mxu1 %v4742_v1 }
0x2831   :  { %4485 = vmatpush3.bf16.msra.mxu1 %v4662_v54  ;;  %v4670_v54 = vld [vmem:[%s5768_s6 + $0xf0] sm:$0xff]  }
0x2832   :  { %4490 = vmatprep.subr.bf16.mxu1 %v4742_v1 }
0x28ec   :  { %v3163_v24 = vpop.f32.mrf.mxu1 }
0x28ed   :  { %v3169_v28 = vpack.c.bf16 %v3163_v24, %v3163_v24  ;;  %v4671_v24 = vld [vmem:[%s5768_s6 + $0xe8] sm:$0xff]  }
0x28ee   :  { %v4480_v29 = vpop.f32.mrf.mxu1 }
0x28ef   :  { %4487 = vmatmul.mubr.msk.bf16.vlgmr.msra.gmra.mxu1 %vm107_vm1, %v3169_v28  ;;  %v4673_v28 = vld [vmem:[%s5768_s6 + $0xd8] sm:$0xff]   ;;  %v4674_v29 = vld [vmem:[%s5768_s6 + $0xd0] sm:$0xff]  }
0x28f0   :  { %v3166_v7 = vpop.f32.mrf.mxu1  ;;  %4491 = vmatpush3.bf16.msra.mxu1 %v4663_v25  ;;  %4494 = vmatprep.mubr.msk.bf16.mxu1 %vm4743_vm0, %v4742_v1  ;;  %v4672_v25 = vld [vmem:[%s5768_s6 + $0xe0] sm:$0xff]  }
0x28f1   :  { %4492 = vmatprep.subr.bf16.mxu1 %v4742_v1 }
0x28f2   :  { %v4481_v31 = vpop.f32.mrf.mxu1 }
0x28f4   :  { %4493 = vmatpush3.bf16.msra.mxu1 %v4664_v30 }
0x28f5   :  { %4498 = vmatprep.subr.bf16.mxu1 %v4742_v1 }
0x28f7   :  { %4495 = vmatmul.mubr.msk.bf16.vlgmr.msra.gmra.mxu1 %vm107_vm1, %v5543_v37 }
0x28f8   :  { %4502 = vmatprep.mubr.msk.bf16.mxu1 %vm4743_vm0, %v4742_v1  ;;  %4499 = vmatpush3.bf16.msra.mxu1 %v4665_v32  ;;  %v3388_v32 = vrot.slane %v5682_v2, %v4879_v48  ;;  %v4718_v48 = vld [vmem:[%s5769_s7] sm:$0xff]  }
0x28f9   :  { %4500 = vmatprep.subr.bf16.mxu1 %v4742_v1 }
0x28fc   :  { %4501 = vmatpush3.bf16.msra.mxu1 %v4666_v35 }
0x28fd   :  { %4514 = vmatprep.subr.bf16.mxu1 %v4742_v1 }
0x29af   :  { %v3222_v37 = vpop.f32.mrf.mxu1 }
0x29b0   :  { %v3223_v51 = vadd.f32 %v3222_v37, %v3183_v36  ;;  %v3393_v37 = vrot.slane %v5682_v2, %v4921_v26  ;;  %v4675_v26 = vld [vmem:[%s5768_s6 + $0xc8] sm:$0xff]  }
0x29b1   :  { %v4488_v6 = vpop.f32.mrf.mxu1 }
0x29b2   :  { %v3231_v39 = vrot.slane %v3223_v51, %v4837_v22 }
0x29b3   :  { %v3225_v40 = vpop.f32.mrf.mxu1 }
0x29b4   :  { %v3232_v41 = vadd.f32 %v3231_v39, %v3105_v14  ;;  %v4717_v40 = vld [vmem:[%s5769_s7 + $0x8] sm:$0xff]  }
0x29b5   :  { %v4489_v42 = vpop.f32.mrf.mxu1 }
0x29b6   :  { %v3233_v43 = vsel %vm107_vm1, %v3232_v41, 0.0  ;;  %v3399_v42 = vrot.slane %v5511_v33, %v4876_v47 }
0x29b7   :  { %3234 = vadd.xlane.f32.xlu0 %v3233_v43  ;;  %v3302_v44 = vpop.f32.mrf.mxu1 }
0x29b8   :  { %v3308_v21 = vpack.c.bf16 %v3302_v44, %v3302_v44 }
0x29b9   :  { %v4496_v45 = vpop.f32.mrf.mxu1 }
0x29ba   :  { %4503 = vmatmul.mubr.msk.bf16.vlgmr.msra.gmra.mxu1 %vm107_vm1, %v3308_v21 }
0x29bb   :  { %v3305_v46 = vpop.f32.mrf.mxu1  ;;  %4530 = vmatprep.mubr.msk.bf16.mxu1 %vm4743_vm0, %v4742_v1  ;;  %4515 = vmatpush3.bf16.msra.mxu1 %v4669_v23 }
0x29bc   :  { %4516 = vmatprep.subr.bf16.mxu1 %v4742_v1 }
0x29bd   :  { %v4497_v50 = vpop.f32.mrf.mxu1 }
0x29bf   :  { %4517 = vmatpush3.bf16.msra.mxu1 %v4670_v54 }
0x29c0   :  { %4518 = vmatprep.subr.bf16.mxu1 %v4742_v1 }
0x29c3   :  { %4519 = vmatpush3.bf16.msra.mxu1 %v4671_v24 }
0x29c4   :  { %4520 = vmatprep.subr.bf16.mxu1 %v4742_v1 }
0x29c7   :  { %4521 = vmatpush3.bf16.msra.mxu1 %v4672_v25 }
0x29c8   :  { %4522 = vmatprep.subr.bf16.mxu1 %v4742_v1 }
0x29cb   :  { %4523 = vmatpush3.bf16.msra.mxu1 %v4673_v28 }
0x29cc   :  { %4524 = vmatprep.subr.bf16.mxu1 %v4742_v1 }
0x29cf   :  { %4525 = vmatpush3.bf16.msra.mxu1 %v4674_v29 }
0x29d0   :  { %4526 = vmatprep.subr.bf16.mxu1 %v4742_v1 }
0x29d3   :  { %4527 = vmatpush3.bf16.msra.mxu1 %v4675_v26 }
0x29d4   :  { %4528 = vmatprep.subr.bf16.mxu1 %v4742_v1 }
0x2a40   :  { %v3235_v53 = vpop.xlane.xlu0 %3234 }
0x2a41   :  { %v3236_v55 = vmul.f32 0.03125, %v3235_v53 }
0x2a43   :  { %v3237_v38 = vsub.f32 %v3232_v41, %v3236_v55  ;;  %v4676_v41 = vld [vmem:[%s5768_s6 + $0xc0] sm:$0xff]   ;;  %v3460_v55 = vrot.slane %v5682_v2, %v5151_v62  ;;  %v3566_v62 = vrot.slane %v5682_v2, %v4924_v27  ;;  %s4744_s6 = smov [#allocation2]  }
0x2a44   :  { %4529 = vmatpush3.bf16.msra.mxu1 %v4676_v41  ;;  %s3624_s7 = sshll.u32 %s4744_s6, 4  ;;  %s3625_s7 = int_to_ptr.vmem [resolvable:$true] %s3624_s7 }
0x2a45   :  { %v3238_v56 = vmul.f32 %v3237_v38, %v3237_v38  ;;  %s4720_s18 = scalar_lea.vmem %s3625_s7, 256  ;;  %p4725_p1 = scmp.lt.s32.totalorder %s3625_s7, %s3625_s7 }
0x2a46   :  { %p4721_p0 = scmp.ne.s32.totalorder %s3625_s7, %s4720_s18  ;;  %p4726_p2 = scmp.lt.s32.totalorder %s4720_s18, %s4720_s18 }
0x2a47   :  { %v3239_v57 = vsel %vm107_vm1, %v3238_v56, 0.0 }
0x2a48   :  { %3240 = vadd.xlane.f32.xlu1 %v3239_v57  ;;  %p4727_p3 = por %p4726_p2, %p4725_p1 }
0x2a4a   :  { %p4728_p4 = pnand %p4727_p3, %p4721_p0 }
0x2a7a   :  { %v3361_v59 = vpop.f32.mrf.mxu1 }
0x2a7b   :  { %v3362_v11 = vadd.f32 %v3361_v59, %v3322_v8 }
0x2a7c   :  { %v4504_v60 = vpop.f32.mrf.mxu1 }
0x2a7d   :  { %v3370_v52 = vrot.slane %v3362_v11, %v4837_v22  ;;  %v4668_v22 = vld [vmem:[%s5766_s4 + $0x30] sm:$0xff]  }
0x2a7e   :  { %v3364_v61 = vpop.f32.mrf.mxu1  ;;  %4509 = vmatpush3.bf16.msra.mxu0 %v4668_v22 }
0x2a7f   :  { %4534 = vmatprep.subr.bf16.mxu0 %v4742_v1 }
0x2a80   :  { %v4505_v63 = vpop.f32.mrf.mxu1 }
0x2ad1   :  { %v3241_v3 = vpop.xlane.xlu1 %3240 }
0x2ad2   :  { %v3242_v58 = vmul.f32 0.03125, %v3241_v3 }
0x2ad4   :  { %v3243_v5 = vadd.f32 1e-05, %v3242_v58 }
0x2ad6   :  { %4711 = vrsqrt.f32 %v3243_v5 }
0x2ae3   :  { %v4712_v10 = vpop.eup %4711 }
0x2ae4   :  { %v3245_v12 = vmul.f32 %v4712_v10, %v3237_v38 }
0x2ae6   :  { %v3250_v14 = vmul.f32 %v3249_v9, %v3245_v12  ;;  %v3571_v12 = vrot.slane %v5682_v2, %v4906_v4 }
0x2ae8   :  { %v3255_v15 = vadd.f32 %v3254_v13, %v3250_v14 }
0x2aea   :  { %v3371_v49 = vadd.f32 %v3370_v52, %v3255_v15 }
0x2aec   :  { %v3372_v20 = vsel %vm107_vm1, %v3371_v49, 0.0 }
0x2aed   :  { %3373 = vadd.xlane.f32.xlu0 %v3372_v20 }
0x2b76   :  { %v3374_v16 = vpop.xlane.xlu0 %3373 }
0x2b77   :  { %v3375_v17 = vmul.f32 0.03125, %v3374_v16 }
0x2b79   :  { %v3376_v18 = vsub.f32 %v3371_v49, %v3375_v17  ;;  %v4719_v49 = vld [vmem:[%s5770_s8] ss:$0 sm:$0xff] }
0x2b7b   :  { %v3377_v19 = vmul.f32 %v3376_v18, %v3376_v18 }
0x2b7d   :  { %v3378_v0 = vsel %vm107_vm1, %v3377_v19, 0.0 }
0x2b7e   :  { %3379 = vadd.xlane.f32.xlu1 %v3378_v0 }
0x2c07   :  { %v3380_v7 = vpop.xlane.xlu1 %3379 }
0x2c08   :  { %v3381_v30 = vmul.f32 0.03125, %v3380_v7 }
0x2c0a   :  { %v3382_v31 = vadd.f32 1e-05, %v3381_v30 }
0x2c0c   :  { %4713 = vrsqrt.f32 %v3382_v31 }
0x2c19   :  { %v4714_v35 = vpop.eup %4713 }
0x2c1a   :  { %v3384_v36 = vmul.f32 %v4714_v35, %v3376_v18 }
0x2c1c   :  { %v3389_v51 = vmul.f32 %v3388_v32, %v3384_v36 }
0x2c1e   :  { %v3394_v6 = vadd.f32 %v3393_v37, %v3389_v51 }
0x2c20   :  { %v3395_v39 = vpack.c.bf16 %v3394_v6, %v3394_v6 }
0x2c22   :  { %4511 = vmatmul.mubr.msk.bf16.vlgmr.msra.gmra.mxu0 %vm107_vm1, %v3395_v39 }
0x2c23   :  { %4535 = vmatpush3.bf16.msra.mxu0 %v4717_v40  ;;  %4538 = vmatprep.mubr.msk.bf16.mxu0 %vm4743_vm0, %v4742_v1 }
0x2c24   :  { %4536 = vmatprep.subr.bf16.mxu0 %v4742_v1 }
0x2c27   :  { %4537 = vmatpush3.bf16.msra.mxu0 %v4718_v48 }
0x2ce2   :  { %v3449_v43 = vpop.f32.mrf.mxu0 }
0x2ce3   :  { %v3450_v44 = vadd.f32 %v3449_v43, %v3399_v42 }
0x2ce4   :  { %v4512_v21 = vpop.f32.mrf.mxu0 }
0x2ce5   :  { %v3455_v45 = vmax.f32 %v3450_v44, 0.0 }
0x2ce6   :  { %v3452_v46 = vpop.f32.mrf.mxu0 }
0x2ce7   :  { %v3456_v50 = vpack.c.bf16 %v3455_v45, %v3455_v45 }
0x2ce8   :  { %v4513_v53 = vpop.f32.mrf.mxu0 }
0x2ce9   :  { %4531 = vmatmul.mubr.bf16.vlgmr.msra.gmra.mxu1 %v3456_v50 }
0x2da9   :  { %v3543_v1 = vpop.f32.mrf.mxu1 }
0x2daa   :  { %v3544_v38 = vadd.f32 %v3543_v1, %v3460_v55 }
0x2dab   :  { %v4532_v56 = vpop.f32.mrf.mxu1 }
0x2dac   :  { %v3549_v57 = vadd.f32 %v3544_v38, %v3394_v6 }
0x2dad   :  { %v3546_v59 = vpop.f32.mrf.mxu1 }
0x2dae   :  { %v3550_v60 = vsel %vm107_vm1, %v3549_v57, 0.0 }
0x2daf   :  { %3551 = vadd.xlane.f32.xlu0 %v3550_v60  ;;  %v4533_v47 = vpop.f32.mrf.mxu1 }
0x2e38   :  { %v3552_v33 = vpop.xlane.xlu0 %3551 }
0x2e39   :  { %v3553_v61 = vmul.f32 0.03125, %v3552_v33 }
0x2e3b   :  { %v3554_v63 = vsub.f32 %v3549_v57, %v3553_v61 }
0x2e3d   :  { %v3555_v3 = vmul.f32 %v3554_v63, %v3554_v63 }
0x2e3f   :  { %v3556_v58 = vsel %vm107_vm1, %v3555_v3, 0.0 }
0x2e40   :  { %3557 = vadd.xlane.f32.xlu1 %v3556_v58 }
0x2ec9   :  { %v3558_v5 = vpop.xlane.xlu1 %3557 }
0x2eca   :  { %v3559_v8 = vmul.f32 0.03125, %v3558_v5 }
0x2ecc   :  { %v3560_v9 = vadd.f32 1e-05, %v3559_v8 }
0x2ece   :  { %4715 = vrsqrt.f32 %v3560_v9 }
0x2edb   :  { %v4716_v10 = vpop.eup %4715 }
0x2edc   :  { %v3562_v11 = vmul.f32 %v4716_v10, %v3554_v63 }
0x2ede   :  { %v3567_v13 = vmul.f32 %v3566_v62, %v3562_v11 }
0x2ee0   :  { %v3572_v14 = vadd.f32 %v3571_v12, %v3567_v13 }
0x2ee2   :  { %v3573_v52 = vpack.c.bf16 %v3572_v14, %v3572_v14 }
0x2ee4   :  { %4539 = vmatmul.mubr.msk.bf16.vlgmr.msra.gmra.mxu0 %vm107_vm1, %v3573_v52 }
0x2fa4   :  { %v3611_v15 = vpop.f32.mrf.mxu0 }
0x2fa5   :  { %v3612_v20 = vadd.f32 %v4719_v49, %v3611_v15 }
0x2fa6   :  { %v4540_v27 = vpop.f32.mrf.mxu0 }
0x2fa7   :  { %3618 = vst [vmem:[#allocation2 + $0x8] sm:$0xff] %v3612_v20 }
0x2fa8   :  { %v3614_v16 = vpop.f32.mrf.mxu0 }
0x2fa9   :  { %4731 = shalt.err (!%p4728_p4)
}
0x2faa   :  { %s4745_s3 = smov 128   ;;  %s4746_s19 = smov 8   ;;  %v4541_v4 = vpop.f32.mrf.mxu0 }
0x2fab   :  { %3630 = dma.vmem_to_hbm [thread:$0]  %s3625_s7, 256, %s5771_s9, [#allocation3], %s4745_s3, %s4745_s3, %s4746_s19  }
0x2fac   :  { %4740 = dma.done.wait [#allocation3], 256  }
0x2fad   :  { %4741 = vsyncadd [#allocation3], 4294967040 }
0x2fae   :  { %3634 = vsyncpa [#allocation3], 1 }

</bundles_post_ra>
